<compile_context>
chip_gen: v7x
topology: tpu7x:2x2x1
jax: 0.10.0
libtpu: 0.0.40
codegen_flags: <defaults>
</compile_context>

<pallas_src>
from functools import partial

import jax
import jax.numpy as jnp
from jax.experimental import pallas as pl
from jax.experimental.pallas import tpu as pltpu


# ----------------------------- Pallas kernel ------------------------------ #
def sentence_gru_kernel(x_ref, len_ref,
                        w1ih_ref, w1hh_ref, b1c_ref, b1hn_ref,
                        w2ih_ref, w2hh_ref, b2c_ref, b2hn_ref,
                        out_ref, gi_scr):
    """Fused 2-layer GRU (layers interleaved per timestep).

    x_ref:   (T*Bp, D)   time-major, batch-padded input
    len_ref: (Bp, 1)     int32 sequence lengths
    w*ih:    (Din, 3Hp)  transposed, lane-padded input-projection weights
    w*hh:    (Hp, 3Hp)   transposed, lane-padded hidden-projection weights
    b*c:     (1, 3Hp)    hoisted bias (b_ih + b_hh for r/z, b_ih for n)
    b*hn:    (1, Hp)     hidden-side bias of the n gate (stays in the loop)
    out_ref: (T, Bp, Hp) lane-dense output slab
    gi_scr:  (T*Bp, 3Hp) hoisted layer-1 input-projection scratch
    """
    T, Bp, Hp = out_ref.shape

    def gru_cell(h_prev, gi, whh_ref, b_hn):
        # gi already contains W_ih x + b_ih (+ b_hh for the r/z gates).
        gh = jnp.dot(h_prev, whh_ref[...], preferred_element_type=jnp.float32)
        r = jax.nn.sigmoid(gi[:, 0 * Hp:1 * Hp] + gh[:, 0 * Hp:1 * Hp])
        z = jax.nn.sigmoid(gi[:, 1 * Hp:2 * Hp] + gh[:, 1 * Hp:2 * Hp])
        n = jnp.tanh(gi[:, 2 * Hp:3 * Hp] + r * (gh[:, 2 * Hp:3 * Hp] + b_hn))
        return n + z * (h_prev - n)          # == (1-z)*n + z*h_prev, one op less

    # ---- layer-1 input projection hoisted: one MXU matmul for all T steps ----
    gi_scr[...] = (jnp.dot(x_ref[...], w1ih_ref[...],
                           preferred_element_type=jnp.float32) + b1c_ref[...])

    # Loop-invariant small values hoisted out of the (fully unrolled) time loop.
    b1hn = b1hn_ref[...]
    b2hn = b2hn_ref[...]
    b2c = b2c_ref[...]
    lens = len_ref[...]                       # (Bp, 1) int32

    h1 = jnp.zeros((Bp, Hp), jnp.float32)
    h2 = jnp.zeros((Bp, Hp), jnp.float32)
    for t in range(T):                        # fully unrolled (T static & small)
        # layer 1, step t  (consumes the hoisted projection slab)
        h1 = gru_cell(h1, gi_scr[t * Bp:(t + 1) * Bp, :], w1hh_ref, b1hn)
        # layer 2, step t  (h1 stays in vregs -> no VMEM round trip; the small
        # per-step projection overlaps with layer-1 step t+1 in the scheduler)
        gi2 = jnp.dot(h1, w2ih_ref[...], preferred_element_type=jnp.float32) + b2c
        h2 = gru_cell(h2, gi2, w2hh_ref, b2hn)
        # pad_packed_sequence zero-pads positions t >= len[b]; full-tile store.
        out_ref[t] = jnp.where(lens > t, h2, 0.0)


# ------------------------------ param packing ------------------------------ #
def _round_up(x, m):
    return ((x + m - 1) // m) * m


def pack_gru_layer(w_ih, w_hh, b_ih, b_hh, d_in_pad, hp):
    """Transpose + zero-pad one GRU layer so every gate block is 128-lane
    aligned, and pre-combine the r/z biases (folded into the hoisted
    projection); only b_hh_n stays separate for the in-loop add."""
    H = w_hh.shape[1]
    d_in = w_ih.shape[1]
    wihT = jnp.zeros((d_in_pad, 3 * hp), jnp.float32)
    whhT = jnp.zeros((hp, 3 * hp), jnp.float32)
    bc = jnp.zeros((1, 3 * hp), jnp.float32)
    bhn = jnp.zeros((1, hp), jnp.float32)
    for g in range(3):  # PyTorch gate order: r, z, n
        wihT = wihT.at[:d_in, g * hp:g * hp + H].set(w_ih[g * H:(g + 1) * H, :].T)
        whhT = whhT.at[:H, g * hp:g * hp + H].set(w_hh[g * H:(g + 1) * H, :].T)
    bc = bc.at[0, 0 * hp:0 * hp + H].set(b_ih[0:H] + b_hh[0:H])          # r
    bc = bc.at[0, 1 * hp:1 * hp + H].set(b_ih[H:2 * H] + b_hh[H:2 * H])  # z
    bc = bc.at[0, 2 * hp:2 * hp + H].set(b_ih[2 * H:3 * H])              # n (input side)
    bhn = bhn.at[0, :H].set(b_hh[2 * H:3 * H])                           # n (hidden side)
    return wihT, whhT, bc, bhn


# ------------------------------ model wrapper ------------------------------ #
def init_gru_params(key, input_dim, hidden_dim, num_layers):
    params = []
    for layer in range(num_layers):
        d_in = input_dim if layer == 0 else hidden_dim
        k = 1.0 / jnp.sqrt(hidden_dim)
        key, k1, k2, k3, k4 = jax.random.split(key, 5)
        w_ih = jax.random.uniform(k1, (3 * hidden_dim, d_in), jnp.float32, -k, k)
        w_hh = jax.random.uniform(k2, (3 * hidden_dim, hidden_dim), jnp.float32, -k, k)
        b_ih = jax.random.uniform(k3, (3 * hidden_dim,), jnp.float32, -k, k)
        b_hh = jax.random.uniform(k4, (3 * hidden_dim,), jnp.float32, -k, k)
        params.append((w_ih, w_hh, b_ih, b_hh))
    return params


@partial(jax.jit, static_argnames=("hidden_dim",))
def sentence_model_forward(params, x, len_original_x, *, hidden_dim):
    """x: (B, T, D) batch_first (as the torch module); returns (B, T, H)."""
    B, T, D = x.shape
    Bp = _round_up(B, 8)             # sublane multiple
    Hp = _round_up(hidden_dim, 128)  # lane multiple

    # Layout plumbing (tiny vs the GRU compute): time-major, batch-pad, flatten.
    x_tm = jnp.transpose(x, (1, 0, 2))                       # (T, B, D)
    x_tm = jnp.pad(x_tm, ((0, 0), (0, Bp - B), (0, 0)))      # (T, Bp, D)
    x2d = x_tm.reshape(T * Bp, D)
    lens = jnp.pad(len_original_x.astype(jnp.int32), (0, Bp - B)).reshape(Bp, 1)

    (w1ih, w1hh, b1i, b1h), (w2ih, w2hh, b2i, b2h) = params
    l1 = pack_gru_layer(w1ih, w1hh, b1i, b1h, D, Hp)
    l2 = pack_gru_layer(w2ih, w2hh, b2i, b2h, Hp, Hp)

    out_tm = pl.pallas_call(
        sentence_gru_kernel,
        out_shape=jax.ShapeDtypeStruct((T, Bp, Hp), jnp.float32),
        in_specs=[pl.BlockSpec(memory_space=pltpu.MemorySpace.VMEM)] * 10,
        out_specs=pl.BlockSpec(memory_space=pltpu.MemorySpace.VMEM),
        scratch_shapes=[
            pltpu.VMEM((T * Bp, 3 * Hp), jnp.float32),  # hoisted layer-1 gate projections
        ],
    )(x2d, lens, *l1, *l2)

    # Back to batch_first, drop batch/hidden padding.
    out = jnp.transpose(out_tm, (1, 0, 2))[:B, :, :hidden_dim]
    return out


# ----------------------------- pure-JAX reference -------------------------- #
def gru_reference(params, x, len_original_x):
    B, T, _ = x.shape
    outs = x
    for (w_ih, w_hh, b_ih, b_hh) in params:
        H = w_hh.shape[1]
        h = jnp.zeros((B, H), jnp.float32)
        ys = []
        for t in range(T):
            xt = outs[:, t, :]
            gi = xt @ w_ih.T + b_ih
            gh = h @ w_hh.T + b_hh
            r = jax.nn.sigmoid(gi[:, :H] + gh[:, :H])
            z = jax.nn.sigmoid(gi[:, H:2 * H] + gh[:, H:2 * H])
            n = jnp.tanh(gi[:, 2 * H:] + r * gh[:, 2 * H:])
            h = (1.0 - z) * n + z * h
            ys.append(h)
        outs = jnp.stack(ys, axis=1)
    mask = (jnp.arange(T)[None, :] < len_original_x[:, None]).astype(outs.dtype)
    return outs * mask[:, :, None]


# ---------------------------------- main ----------------------------------- #
if __name__ == "__main__":
    # Small shapes consistent with the module's forward: (B, T, input_dim)
    B, T, INPUT_DIM, HIDDEN_DIM, NUM_LAYERS = 4, 8, 16, 32, 2

    key = jax.random.PRNGKey(0)
    k_x, k_p = jax.random.split(key)
    x = jax.random.normal(k_x, (B, T, INPUT_DIM), jnp.float32)
    # lengths of un-padded sequences; max(len) == T so output T matches
    # pad_packed_sequence exactly.
    len_original_x = jnp.array([8, 5, 3, 6], dtype=jnp.int32)

    params = init_gru_params(k_p, INPUT_DIM, HIDDEN_DIM, NUM_LAYERS)

    out = sentence_model_forward(params, x, len_original_x, hidden_dim=HIDDEN_DIM)
    out = jax.block_until_ready(out)

    ref = gru_reference(params, x, len_original_x)
    max_err = float(jnp.max(jnp.abs(out - ref)))
    assert out.shape == (B, T, HIDDEN_DIM), out.shape
    assert max_err < 1e-4, f"mismatch vs reference: {max_err}"

    print("KERNEL_OK")
</pallas_src>

<mosaic_0001>
module attributes {stable_mosaic.version = 11 : i64} {
  func.func @sentence_gru_kernel(%arg0: memref<64x16xf32, #tpu.memory_space<vmem>>, %arg1: memref<8x1xi32, #tpu.memory_space<vmem>>, %arg2: memref<16x384xf32, #tpu.memory_space<vmem>>, %arg3: memref<128x384xf32, #tpu.memory_space<vmem>>, %arg4: memref<1x384xf32, #tpu.memory_space<vmem>>, %arg5: memref<1x128xf32, #tpu.memory_space<vmem>>, %arg6: memref<128x384xf32, #tpu.memory_space<vmem>>, %arg7: memref<128x384xf32, #tpu.memory_space<vmem>>, %arg8: memref<1x384xf32, #tpu.memory_space<vmem>>, %arg9: memref<1x128xf32, #tpu.memory_space<vmem>>, %arg10: memref<8x8x128xf32, #tpu.memory_space<vmem>>, %arg11: memref<64x384xf32, #tpu.memory_space<vmem>>) attributes {dimension_semantics = [], scalar_prefetch = 0 : i64, scratch_operands = 1 : i64, tpu.core_type = #tpu.core_type<tc>} {
    %c0 = arith.constant 0 : index
    %c0_0 = arith.constant 0 : index
    %0 = vector.load %arg0[%c0, %c0_0] : memref<64x16xf32, #tpu.memory_space<vmem>>, vector<64x16xf32>
    %c0_1 = arith.constant 0 : index
    %c0_2 = arith.constant 0 : index
    %1 = vector.load %arg2[%c0_1, %c0_2] : memref<16x384xf32, #tpu.memory_space<vmem>>, vector<16x384xf32>
    %cst = arith.constant dense<0.000000e+00> : vector<64x384xf32>
    %2 = tpu.matmul %0, %1, %cst {dimension_numbers = #tpu.dot_dimension_numbers<[1], [0], [0], [1], [0, 0, 1, 1], [], []>} : vector<64x16xf32>, vector<16x384xf32>, vector<64x384xf32> -> vector<64x384xf32>
    %c0_3 = arith.constant 0 : index
    %c0_4 = arith.constant 0 : index
    %3 = vector.load %arg4[%c0_3, %c0_4] : memref<1x384xf32, #tpu.memory_space<vmem>>, vector<1x384xf32>
    %4 = vector.broadcast %3 : vector<1x384xf32> to vector<64x384xf32>
    %5 = arith.addf %2, %4 : vector<64x384xf32>
    %c0_5 = arith.constant 0 : index
    %c0_6 = arith.constant 0 : index
    %6 = vector.load %arg11[%c0_5, %c0_6] : memref<64x384xf32, #tpu.memory_space<vmem>>, vector<64x384xf32>
    tpu.vector_store %arg11[%c0_5, %c0_6], %5 {strides = array<i32>} : memref<64x384xf32, #tpu.memory_space<vmem>>, vector<64x384xf32>,
    %c0_7 = arith.constant 0 : index
    %c0_8 = arith.constant 0 : index
    %7 = vector.load %arg5[%c0_7, %c0_8] : memref<1x128xf32, #tpu.memory_space<vmem>>, vector<1x128xf32>
    %c0_9 = arith.constant 0 : index
    %c0_10 = arith.constant 0 : index
    %8 = vector.load %arg9[%c0_9, %c0_10] : memref<1x128xf32, #tpu.memory_space<vmem>>, vector<1x128xf32>
    %c0_11 = arith.constant 0 : index
    %c0_12 = arith.constant 0 : index
    %9 = vector.load %arg8[%c0_11, %c0_12] : memref<1x384xf32, #tpu.memory_space<vmem>>, vector<1x384xf32>
    %c0_13 = arith.constant 0 : index
    %c0_14 = arith.constant 0 : index
    %10 = vector.load %arg1[%c0_13, %c0_14] : memref<8x1xi32, #tpu.memory_space<vmem>>, vector<8x1xi32>
    %cst_15 = arith.constant 0.000000e+00 : f32
    %11 = vector.broadcast %cst_15 : f32 to vector<8x128xf32>
    %cst_16 = arith.constant 0.000000e+00 : f32
    %12 = vector.broadcast %cst_16 : f32 to vector<8x128xf32>
    %c0_17 = arith.constant 0 : index
    %c0_18 = arith.constant 0 : index
    %13 = vector.load %arg11[%c0_17, %c0_18] : memref<64x384xf32, #tpu.memory_space<vmem>>, vector<8x384xf32>
    %c0_19 = arith.constant 0 : index
    %c0_20 = arith.constant 0 : index
    %14 = vector.load %arg3[%c0_19, %c0_20] : memref<128x384xf32, #tpu.memory_space<vmem>>, vector<128x384xf32>
    %cst_21 = arith.constant dense<0.000000e+00> : vector<8x384xf32>
    %15 = tpu.matmul %11, %14, %cst_21 {dimension_numbers = #tpu.dot_dimension_numbers<[1], [0], [0], [1], [0, 0, 1, 1], [], []>} : vector<8x128xf32>, vector<128x384xf32>, vector<8x384xf32> -> vector<8x384xf32>
    %16 = vector.extract_strided_slice %13 {offsets = [0, 0], sizes = [8, 128], strides = [1, 1]} : vector<8x384xf32> to vector<8x128xf32>
    %17 = vector.extract_strided_slice %15 {offsets = [0, 0], sizes = [8, 128], strides = [1, 1]} : vector<8x384xf32> to vector<8x128xf32>
    %18 = arith.addf %16, %17 : vector<8x128xf32>
    %19 = arith.negf %18 : vector<8x128xf32>
    %20 = math.exp %19 : vector<8x128xf32>
    %cst_22 = arith.constant 1.000000e+00 : f32
    %21 = vector.broadcast %cst_22 : f32 to vector<8x128xf32>
    %22 = arith.addf %21, %20 : vector<8x128xf32>
    %23 = arith.divf %21, %22 : vector<8x128xf32>
    %24 = vector.extract_strided_slice %13 {offsets = [0, 128], sizes = [8, 128], strides = [1, 1]} : vector<8x384xf32> to vector<8x128xf32>
    %25 = vector.extract_strided_slice %15 {offsets = [0, 128], sizes = [8, 128], strides = [1, 1]} : vector<8x384xf32> to vector<8x128xf32>
    %26 = arith.addf %24, %25 : vector<8x128xf32>
    %27 = arith.negf %26 : vector<8x128xf32>
    %28 = math.exp %27 : vector<8x128xf32>
    %cst_23 = arith.constant 1.000000e+00 : f32
    %29 = vector.broadcast %cst_23 : f32 to vector<8x128xf32>
    %30 = arith.addf %29, %28 : vector<8x128xf32>
    %31 = arith.divf %29, %30 : vector<8x128xf32>
    %32 = vector.extract_strided_slice %13 {offsets = [0, 256], sizes = [8, 128], strides = [1, 1]} : vector<8x384xf32> to vector<8x128xf32>
    %33 = vector.extract_strided_slice %15 {offsets = [0, 256], sizes = [8, 128], strides = [1, 1]} : vector<8x384xf32> to vector<8x128xf32>
    %34 = vector.broadcast %7 : vector<1x128xf32> to vector<8x128xf32>
    %35 = arith.addf %33, %34 : vector<8x128xf32>
    %36 = arith.mulf %23, %35 : vector<8x128xf32>
    %37 = arith.addf %32, %36 : vector<8x128xf32>
    %38 = math.tanh %37 : vector<8x128xf32>
    %39 = arith.subf %11, %38 : vector<8x128xf32>
    %40 = arith.mulf %31, %39 : vector<8x128xf32>
    %41 = arith.addf %38, %40 : vector<8x128xf32>
    %c0_24 = arith.constant 0 : index
    %c0_25 = arith.constant 0 : index
    %42 = vector.load %arg6[%c0_24, %c0_25] : memref<128x384xf32, #tpu.memory_space<vmem>>, vector<128x384xf32>
    %cst_26 = arith.constant dense<0.000000e+00> : vector<8x384xf32>
    %43 = tpu.matmul %41, %42, %cst_26 {dimension_numbers = #tpu.dot_dimension_numbers<[1], [0], [0], [1], [0, 0, 1, 1], [], []>} : vector<8x128xf32>, vector<128x384xf32>, vector<8x384xf32> -> vector<8x384xf32>
    %44 = vector.broadcast %9 : vector<1x384xf32> to vector<8x384xf32>
    %45 = arith.addf %43, %44 : vector<8x384xf32>
    %c0_27 = arith.constant 0 : index
    %c0_28 = arith.constant 0 : index
    %46 = vector.load %arg7[%c0_27, %c0_28] : memref<128x384xf32, #tpu.memory_space<vmem>>, vector<128x384xf32>
    %cst_29 = arith.constant dense<0.000000e+00> : vector<8x384xf32>
    %47 = tpu.matmul %12, %46, %cst_29 {dimension_numbers = #tpu.dot_dimension_numbers<[1], [0], [0], [1], [0, 0, 1, 1], [], []>} : vector<8x128xf32>, vector<128x384xf32>, vector<8x384xf32> -> vector<8x384xf32>
    %48 = vector.extract_strided_slice %45 {offsets = [0, 0], sizes = [8, 128], strides = [1, 1]} : vector<8x384xf32> to vector<8x128xf32>
    %49 = vector.extract_strided_slice %47 {offsets = [0, 0], sizes = [8, 128], strides = [1, 1]} : vector<8x384xf32> to vector<8x128xf32>
    %50 = arith.addf %48, %49 : vector<8x128xf32>
    %51 = arith.negf %50 : vector<8x128xf32>
    %52 = math.exp %51 : vector<8x128xf32>
    %cst_30 = arith.constant 1.000000e+00 : f32
    %53 = vector.broadcast %cst_30 : f32 to vector<8x128xf32>
    %54 = arith.addf %53, %52 : vector<8x128xf32>
    %55 = arith.divf %53, %54 : vector<8x128xf32>
    %56 = vector.extract_strided_slice %45 {offsets = [0, 128], sizes = [8, 128], strides = [1, 1]} : vector<8x384xf32> to vector<8x128xf32>
    %57 = vector.extract_strided_slice %47 {offsets = [0, 128], sizes = [8, 128], strides = [1, 1]} : vector<8x384xf32> to vector<8x128xf32>
    %58 = arith.addf %56, %57 : vector<8x128xf32>
    %59 = arith.negf %58 : vector<8x128xf32>
    %60 = math.exp %59 : vector<8x128xf32>
    %cst_31 = arith.constant 1.000000e+00 : f32
    %61 = vector.broadcast %cst_31 : f32 to vector<8x128xf32>
    %62 = arith.addf %61, %60 : vector<8x128xf32>
    %63 = arith.divf %61, %62 : vector<8x128xf32>
    %64 = vector.extract_strided_slice %45 {offsets = [0, 256], sizes = [8, 128], strides = [1, 1]} : vector<8x384xf32> to vector<8x128xf32>
    %65 = vector.extract_strided_slice %47 {offsets = [0, 256], sizes = [8, 128], strides = [1, 1]} : vector<8x384xf32> to vector<8x128xf32>
    %66 = vector.broadcast %8 : vector<1x128xf32> to vector<8x128xf32>
    %67 = arith.addf %65, %66 : vector<8x128xf32>
    %68 = arith.mulf %55, %67 : vector<8x128xf32>
    %69 = arith.addf %64, %68 : vector<8x128xf32>
    %70 = math.tanh %69 : vector<8x128xf32>
    %71 = arith.subf %12, %70 : vector<8x128xf32>
    %72 = arith.mulf %63, %71 : vector<8x128xf32>
    %73 = arith.addf %70, %72 : vector<8x128xf32>
    %c0_i32 = arith.constant 0 : i32
    %74 = vector.broadcast %c0_i32 : i32 to vector<8x1xi32>
    %75 = arith.cmpi sgt, %10, %74 : vector<8x1xi32>
    %cst_32 = arith.constant 0.000000e+00 : f32
    %76 = vector.shape_cast %75 : vector<8x1xi1> to vector<8x1xi1>
    %77 = vector.broadcast %76 : vector<8x1xi1> to vector<8x128xi1>
    %78 = vector.broadcast %cst_32 : f32 to vector<8x128xf32>
    %79 = arith.select %77, %73, %78 : vector<8x128xi1>, vector<8x128xf32>
    %c0_33 = arith.constant 0 : index
    %c0_34 = arith.constant 0 : index
    %c0_35 = arith.constant 0 : index
    %80 = vector.load %arg10[%c0_33, %c0_34, %c0_35] : memref<8x8x128xf32, #tpu.memory_space<vmem>>, vector<1x8x128xf32>
    %81 = vector.shape_cast %80 : vector<1x8x128xf32> to vector<8x128xf32>
    %82 = vector.shape_cast %79 : vector<8x128xf32> to vector<1x8x128xf32>
    tpu.vector_store %arg10[%c0_33, %c0_34, %c0_35], %82 {strides = array<i32>} : memref<8x8x128xf32, #tpu.memory_space<vmem>>, vector<1x8x128xf32>,
    %c8 = arith.constant 8 : index
    %c0_36 = arith.constant 0 : index
    %83 = vector.load %arg11[%c8, %c0_36] : memref<64x384xf32, #tpu.memory_space<vmem>>, vector<8x384xf32>
    %c0_37 = arith.constant 0 : index
    %c0_38 = arith.constant 0 : index
    %84 = vector.load %arg3[%c0_37, %c0_38] : memref<128x384xf32, #tpu.memory_space<vmem>>, vector<128x384xf32>
    %cst_39 = arith.constant dense<0.000000e+00> : vector<8x384xf32>
    %85 = tpu.matmul %41, %84, %cst_39 {dimension_numbers = #tpu.dot_dimension_numbers<[1], [0], [0], [1], [0, 0, 1, 1], [], []>} : vector<8x128xf32>, vector<128x384xf32>, vector<8x384xf32> -> vector<8x384xf32>
    %86 = vector.extract_strided_slice %83 {offsets = [0, 0], sizes = [8, 128], strides = [1, 1]} : vector<8x384xf32> to vector<8x128xf32>
    %87 = vector.extract_strided_slice %85 {offsets = [0, 0], sizes = [8, 128], strides = [1, 1]} : vector<8x384xf32> to vector<8x128xf32>
    %88 = arith.addf %86, %87 : vector<8x128xf32>
    %89 = arith.negf %88 : vector<8x128xf32>
    %90 = math.exp %89 : vector<8x128xf32>
    %cst_40 = arith.constant 1.000000e+00 : f32
    %91 = vector.broadcast %cst_40 : f32 to vector<8x128xf32>
    %92 = arith.addf %91, %90 : vector<8x128xf32>
    %93 = arith.divf %91, %92 : vector<8x128xf32>
    %94 = vector.extract_strided_slice %83 {offsets = [0, 128], sizes = [8, 128], strides = [1, 1]} : vector<8x384xf32> to vector<8x128xf32>
    %95 = vector.extract_strided_slice %85 {offsets = [0, 128], sizes = [8, 128], strides = [1, 1]} : vector<8x384xf32> to vector<8x128xf32>
    %96 = arith.addf %94, %95 : vector<8x128xf32>
    %97 = arith.negf %96 : vector<8x128xf32>
    %98 = math.exp %97 : vector<8x128xf32>
    %cst_41 = arith.constant 1.000000e+00 : f32
    %99 = vector.broadcast %cst_41 : f32 to vector<8x128xf32>
    %100 = arith.addf %99, %98 : vector<8x128xf32>
    %101 = arith.divf %99, %100 : vector<8x128xf32>
    %102 = vector.extract_strided_slice %83 {offsets = [0, 256], sizes = [8, 128], strides = [1, 1]} : vector<8x384xf32> to vector<8x128xf32>
    %103 = vector.extract_strided_slice %85 {offsets = [0, 256], sizes = [8, 128], strides = [1, 1]} : vector<8x384xf32> to vector<8x128xf32>
    %104 = vector.broadcast %7 : vector<1x128xf32> to vector<8x128xf32>
    %105 = arith.addf %103, %104 : vector<8x128xf32>
    %106 = arith.mulf %93, %105 : vector<8x128xf32>
    %107 = arith.addf %102, %106 : vector<8x128xf32>
    %108 = math.tanh %107 : vector<8x128xf32>
    %109 = arith.subf %41, %108 : vector<8x128xf32>
    %110 = arith.mulf %101, %109 : vector<8x128xf32>
    %111 = arith.addf %108, %110 : vector<8x128xf32>
    %c0_42 = arith.constant 0 : index
    %c0_43 = arith.constant 0 : index
    %112 = vector.load %arg6[%c0_42, %c0_43] : memref<128x384xf32, #tpu.memory_space<vmem>>, vector<128x384xf32>
    %cst_44 = arith.constant dense<0.000000e+00> : vector<8x384xf32>
    %113 = tpu.matmul %111, %112, %cst_44 {dimension_numbers = #tpu.dot_dimension_numbers<[1], [0], [0], [1], [0, 0, 1, 1], [], []>} : vector<8x128xf32>, vector<128x384xf32>, vector<8x384xf32> -> vector<8x384xf32>
    %114 = vector.broadcast %9 : vector<1x384xf32> to vector<8x384xf32>
    %115 = arith.addf %113, %114 : vector<8x384xf32>
    %c0_45 = arith.constant 0 : index
    %c0_46 = arith.constant 0 : index
    %116 = vector.load %arg7[%c0_45, %c0_46] : memref<128x384xf32, #tpu.memory_space<vmem>>, vector<128x384xf32>
    %cst_47 = arith.constant dense<0.000000e+00> : vector<8x384xf32>
    %117 = tpu.matmul %73, %116, %cst_47 {dimension_numbers = #tpu.dot_dimension_numbers<[1], [0], [0], [1], [0, 0, 1, 1], [], []>} : vector<8x128xf32>, vector<128x384xf32>, vector<8x384xf32> -> vector<8x384xf32>
    %118 = vector.extract_strided_slice %115 {offsets = [0, 0], sizes = [8, 128], strides = [1, 1]} : vector<8x384xf32> to vector<8x128xf32>
    %119 = vector.extract_strided_slice %117 {offsets = [0, 0], sizes = [8, 128], strides = [1, 1]} : vector<8x384xf32> to vector<8x128xf32>
    %120 = arith.addf %118, %119 : vector<8x128xf32>
    %121 = arith.negf %120 : vector<8x128xf32>
    %122 = math.exp %121 : vector<8x128xf32>
    %cst_48 = arith.constant 1.000000e+00 : f32
    %123 = vector.broadcast %cst_48 : f32 to vector<8x128xf32>
    %124 = arith.addf %123, %122 : vector<8x128xf32>
    %125 = arith.divf %123, %124 : vector<8x128xf32>
    %126 = vector.extract_strided_slice %115 {offsets = [0, 128], sizes = [8, 128], strides = [1, 1]} : vector<8x384xf32> to vector<8x128xf32>
    %127 = vector.extract_strided_slice %117 {offsets = [0, 128], sizes = [8, 128], strides = [1, 1]} : vector<8x384xf32> to vector<8x128xf32>
    %128 = arith.addf %126, %127 : vector<8x128xf32>
    %129 = arith.negf %128 : vector<8x128xf32>
    %130 = math.exp %129 : vector<8x128xf32>
    %cst_49 = arith.constant 1.000000e+00 : f32
    %131 = vector.broadcast %cst_49 : f32 to vector<8x128xf32>
    %132 = arith.addf %131, %130 : vector<8x128xf32>
    %133 = arith.divf %131, %132 : vector<8x128xf32>
    %134 = vector.extract_strided_slice %115 {offsets = [0, 256], sizes = [8, 128], strides = [1, 1]} : vector<8x384xf32> to vector<8x128xf32>
    %135 = vector.extract_strided_slice %117 {offsets = [0, 256], sizes = [8, 128], strides = [1, 1]} : vector<8x384xf32> to vector<8x128xf32>
    %136 = vector.broadcast %8 : vector<1x128xf32> to vector<8x128xf32>
    %137 = arith.addf %135, %136 : vector<8x128xf32>
    %138 = arith.mulf %125, %137 : vector<8x128xf32>
    %139 = arith.addf %134, %138 : vector<8x128xf32>
    %140 = math.tanh %139 : vector<8x128xf32>
    %141 = arith.subf %73, %140 : vector<8x128xf32>
    %142 = arith.mulf %133, %141 : vector<8x128xf32>
    %143 = arith.addf %140, %142 : vector<8x128xf32>
    %c1_i32 = arith.constant 1 : i32
    %144 = vector.broadcast %c1_i32 : i32 to vector<8x1xi32>
    %145 = arith.cmpi sgt, %10, %144 : vector<8x1xi32>
    %cst_50 = arith.constant 0.000000e+00 : f32
    %146 = vector.shape_cast %145 : vector<8x1xi1> to vector<8x1xi1>
    %147 = vector.broadcast %146 : vector<8x1xi1> to vector<8x128xi1>
    %148 = vector.broadcast %cst_50 : f32 to vector<8x128xf32>
    %149 = arith.select %147, %143, %148 : vector<8x128xi1>, vector<8x128xf32>
    %c1 = arith.constant 1 : index
    %c0_51 = arith.constant 0 : index
    %c0_52 = arith.constant 0 : index
    %150 = vector.load %arg10[%c1, %c0_51, %c0_52] : memref<8x8x128xf32, #tpu.memory_space<vmem>>, vector<1x8x128xf32>
    %151 = vector.shape_cast %150 : vector<1x8x128xf32> to vector<8x128xf32>
    %152 = vector.shape_cast %149 : vector<8x128xf32> to vector<1x8x128xf32>
    tpu.vector_store %arg10[%c1, %c0_51, %c0_52], %152 {strides = array<i32>} : memref<8x8x128xf32, #tpu.memory_space<vmem>>, vector<1x8x128xf32>,
    %c16 = arith.constant 16 : index
    %c0_53 = arith.constant 0 : index
    %153 = vector.load %arg11[%c16, %c0_53] : memref<64x384xf32, #tpu.memory_space<vmem>>, vector<8x384xf32>
    %c0_54 = arith.constant 0 : index
    %c0_55 = arith.constant 0 : index
    %154 = vector.load %arg3[%c0_54, %c0_55] : memref<128x384xf32, #tpu.memory_space<vmem>>, vector<128x384xf32>
    %cst_56 = arith.constant dense<0.000000e+00> : vector<8x384xf32>
    %155 = tpu.matmul %111, %154, %cst_56 {dimension_numbers = #tpu.dot_dimension_numbers<[1], [0], [0], [1], [0, 0, 1, 1], [], []>} : vector<8x128xf32>, vector<128x384xf32>, vector<8x384xf32> -> vector<8x384xf32>
    %156 = vector.extract_strided_slice %153 {offsets = [0, 0], sizes = [8, 128], strides = [1, 1]} : vector<8x384xf32> to vector<8x128xf32>
    %157 = vector.extract_strided_slice %155 {offsets = [0, 0], sizes = [8, 128], strides = [1, 1]} : vector<8x384xf32> to vector<8x128xf32>
    %158 = arith.addf %156, %157 : vector<8x128xf32>
    %159 = arith.negf %158 : vector<8x128xf32>
    %160 = math.exp %159 : vector<8x128xf32>
    %cst_57 = arith.constant 1.000000e+00 : f32
    %161 = vector.broadcast %cst_57 : f32 to vector<8x128xf32>
    %162 = arith.addf %161, %160 : vector<8x128xf32>
    %163 = arith.divf %161, %162 : vector<8x128xf32>
    %164 = vector.extract_strided_slice %153 {offsets = [0, 128], sizes = [8, 128], strides = [1, 1]} : vector<8x384xf32> to vector<8x128xf32>
    %165 = vector.extract_strided_slice %155 {offsets = [0, 128], sizes = [8, 128], strides = [1, 1]} : vector<8x384xf32> to vector<8x128xf32>
    %166 = arith.addf %164, %165 : vector<8x128xf32>
    %167 = arith.negf %166 : vector<8x128xf32>
    %168 = math.exp %167 : vector<8x128xf32>
    %cst_58 = arith.constant 1.000000e+00 : f32
    %169 = vector.broadcast %cst_58 : f32 to vector<8x128xf32>
    %170 = arith.addf %169, %168 : vector<8x128xf32>
    %171 = arith.divf %169, %170 : vector<8x128xf32>
    %172 = vector.extract_strided_slice %153 {offsets = [0, 256], sizes = [8, 128], strides = [1, 1]} : vector<8x384xf32> to vector<8x128xf32>
    %173 = vector.extract_strided_slice %155 {offsets = [0, 256], sizes = [8, 128], strides = [1, 1]} : vector<8x384xf32> to vector<8x128xf32>
    %174 = vector.broadcast %7 : vector<1x128xf32> to vector<8x128xf32>
    %175 = arith.addf %173, %174 : vector<8x128xf32>
    %176 = arith.mulf %163, %175 : vector<8x128xf32>
    %177 = arith.addf %172, %176 : vector<8x128xf32>
    %178 = math.tanh %177 : vector<8x128xf32>
    %179 = arith.subf %111, %178 : vector<8x128xf32>
    %180 = arith.mulf %171, %179 : vector<8x128xf32>
    %181 = arith.addf %178, %180 : vector<8x128xf32>
    %c0_59 = arith.constant 0 : index
    %c0_60 = arith.constant 0 : index
    %182 = vector.load %arg6[%c0_59, %c0_60] : memref<128x384xf32, #tpu.memory_space<vmem>>, vector<128x384xf32>
    %cst_61 = arith.constant dense<0.000000e+00> : vector<8x384xf32>
    %183 = tpu.matmul %181, %182, %cst_61 {dimension_numbers = #tpu.dot_dimension_numbers<[1], [0], [0], [1], [0, 0, 1, 1], [], []>} : vector<8x128xf32>, vector<128x384xf32>, vector<8x384xf32> -> vector<8x384xf32>
    %184 = vector.broadcast %9 : vector<1x384xf32> to vector<8x384xf32>
    %185 = arith.addf %183, %184 : vector<8x384xf32>
    %c0_62 = arith.constant 0 : index
    %c0_63 = arith.constant 0 : index
    %186 = vector.load %arg7[%c0_62, %c0_63] : memref<128x384xf32, #tpu.memory_space<vmem>>, vector<128x384xf32>
    %cst_64 = arith.constant dense<0.000000e+00> : vector<8x384xf32>
    %187 = tpu.matmul %143, %186, %cst_64 {dimension_numbers = #tpu.dot_dimension_numbers<[1], [0], [0], [1], [0, 0, 1, 1], [], []>} : vector<8x128xf32>, vector<128x384xf32>, vector<8x384xf32> -> vector<8x384xf32>
    %188 = vector.extract_strided_slice %185 {offsets = [0, 0], sizes = [8, 128], strides = [1, 1]} : vector<8x384xf32> to vector<8x128xf32>
    %189 = vector.extract_strided_slice %187 {offsets = [0, 0], sizes = [8, 128], strides = [1, 1]} : vector<8x384xf32> to vector<8x128xf32>
    %190 = arith.addf %188, %189 : vector<8x128xf32>
    %191 = arith.negf %190 : vector<8x128xf32>
    %192 = math.exp %191 : vector<8x128xf32>
    %cst_65 = arith.constant 1.000000e+00 : f32
    %193 = vector.broadcast %cst_65 : f32 to vector<8x128xf32>
    %194 = arith.addf %193, %192 : vector<8x128xf32>
    %195 = arith.divf %193, %194 : vector<8x128xf32>
    %196 = vector.extract_strided_slice %185 {offsets = [0, 128], sizes = [8, 128], strides = [1, 1]} : vector<8x384xf32> to vector<8x128xf32>
    %197 = vector.extract_strided_slice %187 {offsets = [0, 128], sizes = [8, 128], strides = [1, 1]} : vector<8x384xf32> to vector<8x128xf32>
    %198 = arith.addf %196, %197 : vector<8x128xf32>
    %199 = arith.negf %198 : vector<8x128xf32>
    %200 = math.exp %199 : vector<8x128xf32>
    %cst_66 = arith.constant 1.000000e+00 : f32
    %201 = vector.broadcast %cst_66 : f32 to vector<8x128xf32>
    %202 = arith.addf %201, %200 : vector<8x128xf32>
    %203 = arith.divf %201, %202 : vector<8x128xf32>
    %204 = vector.extract_strided_slice %185 {offsets = [0, 256], sizes = [8, 128], strides = [1, 1]} : vector<8x384xf32> to vector<8x128xf32>
    %205 = vector.extract_strided_slice %187 {offsets = [0, 256], sizes = [8, 128], strides = [1, 1]} : vector<8x384xf32> to vector<8x128xf32>
    %206 = vector.broadcast %8 : vector<1x128xf32> to vector<8x128xf32>
    %207 = arith.addf %205, %206 : vector<8x128xf32>
    %208 = arith.mulf %195, %207 : vector<8x128xf32>
    %209 = arith.addf %204, %208 : vector<8x128xf32>
    %210 = math.tanh %209 : vector<8x128xf32>
    %211 = arith.subf %143, %210 : vector<8x128xf32>
    %212 = arith.mulf %203, %211 : vector<8x128xf32>
    %213 = arith.addf %210, %212 : vector<8x128xf32>
    %c2_i32 = arith.constant 2 : i32
    %214 = vector.broadcast %c2_i32 : i32 to vector<8x1xi32>
    %215 = arith.cmpi sgt, %10, %214 : vector<8x1xi32>
    %cst_67 = arith.constant 0.000000e+00 : f32
    %216 = vector.shape_cast %215 : vector<8x1xi1> to vector<8x1xi1>
    %217 = vector.broadcast %216 : vector<8x1xi1> to vector<8x128xi1>
    %218 = vector.broadcast %cst_67 : f32 to vector<8x128xf32>
    %219 = arith.select %217, %213, %218 : vector<8x128xi1>, vector<8x128xf32>
    %c2 = arith.constant 2 : index
    %c0_68 = arith.constant 0 : index
    %c0_69 = arith.constant 0 : index
    %220 = vector.load %arg10[%c2, %c0_68, %c0_69] : memref<8x8x128xf32, #tpu.memory_space<vmem>>, vector<1x8x128xf32>
    %221 = vector.shape_cast %220 : vector<1x8x128xf32> to vector<8x128xf32>
    %222 = vector.shape_cast %219 : vector<8x128xf32> to vector<1x8x128xf32>
    tpu.vector_store %arg10[%c2, %c0_68, %c0_69], %222 {strides = array<i32>} : memref<8x8x128xf32, #tpu.memory_space<vmem>>, vector<1x8x128xf32>,
    %c24 = arith.constant 24 : index
    %c0_70 = arith.constant 0 : index
    %223 = vector.load %arg11[%c24, %c0_70] : memref<64x384xf32, #tpu.memory_space<vmem>>, vector<8x384xf32>
    %c0_71 = arith.constant 0 : index
    %c0_72 = arith.constant 0 : index
    %224 = vector.load %arg3[%c0_71, %c0_72] : memref<128x384xf32, #tpu.memory_space<vmem>>, vector<128x384xf32>
    %cst_73 = arith.constant dense<0.000000e+00> : vector<8x384xf32>
    %225 = tpu.matmul %181, %224, %cst_73 {dimension_numbers = #tpu.dot_dimension_numbers<[1], [0], [0], [1], [0, 0, 1, 1], [], []>} : vector<8x128xf32>, vector<128x384xf32>, vector<8x384xf32> -> vector<8x384xf32>
    %226 = vector.extract_strided_slice %223 {offsets = [0, 0], sizes = [8, 128], strides = [1, 1]} : vector<8x384xf32> to vector<8x128xf32>
    %227 = vector.extract_strided_slice %225 {offsets = [0, 0], sizes = [8, 128], strides = [1, 1]} : vector<8x384xf32> to vector<8x128xf32>
    %228 = arith.addf %226, %227 : vector<8x128xf32>
    %229 = arith.negf %228 : vector<8x128xf32>
    %230 = math.exp %229 : vector<8x128xf32>
    %cst_74 = arith.constant 1.000000e+00 : f32
    %231 = vector.broadcast %cst_74 : f32 to vector<8x128xf32>
    %232 = arith.addf %231, %230 : vector<8x128xf32>
    %233 = arith.divf %231, %232 : vector<8x128xf32>
    %234 = vector.extract_strided_slice %223 {offsets = [0, 128], sizes = [8, 128], strides = [1, 1]} : vector<8x384xf32> to vector<8x128xf32>
    %235 = vector.extract_strided_slice %225 {offsets = [0, 128], sizes = [8, 128], strides = [1, 1]} : vector<8x384xf32> to vector<8x128xf32>
    %236 = arith.addf %234, %235 : vector<8x128xf32>
    %237 = arith.negf %236 : vector<8x128xf32>
    %238 = math.exp %237 : vector<8x128xf32>
    %cst_75 = arith.constant 1.000000e+00 : f32
    %239 = vector.broadcast %cst_75 : f32 to vector<8x128xf32>
    %240 = arith.addf %239, %238 : vector<8x128xf32>
    %241 = arith.divf %239, %240 : vector<8x128xf32>
    %242 = vector.extract_strided_slice %223 {offsets = [0, 256], sizes = [8, 128], strides = [1, 1]} : vector<8x384xf32> to vector<8x128xf32>
    %243 = vector.extract_strided_slice %225 {offsets = [0, 256], sizes = [8, 128], strides = [1, 1]} : vector<8x384xf32> to vector<8x128xf32>
    %244 = vector.broadcast %7 : vector<1x128xf32> to vector<8x128xf32>
    %245 = arith.addf %243, %244 : vector<8x128xf32>
    %246 = arith.mulf %233, %245 : vector<8x128xf32>
    %247 = arith.addf %242, %246 : vector<8x128xf32>
    %248 = math.tanh %247 : vector<8x128xf32>
    %249 = arith.subf %181, %248 : vector<8x128xf32>
    %250 = arith.mulf %241, %249 : vector<8x128xf32>
    %251 = arith.addf %248, %250 : vector<8x128xf32>
    %c0_76 = arith.constant 0 : index
    %c0_77 = arith.constant 0 : index
    %252 = vector.load %arg6[%c0_76, %c0_77] : memref<128x384xf32, #tpu.memory_space<vmem>>, vector<128x384xf32>
    %cst_78 = arith.constant dense<0.000000e+00> : vector<8x384xf32>
    %253 = tpu.matmul %251, %252, %cst_78 {dimension_numbers = #tpu.dot_dimension_numbers<[1], [0], [0], [1], [0, 0, 1, 1], [], []>} : vector<8x128xf32>, vector<128x384xf32>, vector<8x384xf32> -> vector<8x384xf32>
    %254 = vector.broadcast %9 : vector<1x384xf32> to vector<8x384xf32>
    %255 = arith.addf %253, %254 : vector<8x384xf32>
    %c0_79 = arith.constant 0 : index
    %c0_80 = arith.constant 0 : index
    %256 = vector.load %arg7[%c0_79, %c0_80] : memref<128x384xf32, #tpu.memory_space<vmem>>, vector<128x384xf32>
    %cst_81 = arith.constant dense<0.000000e+00> : vector<8x384xf32>
    %257 = tpu.matmul %213, %256, %cst_81 {dimension_numbers = #tpu.dot_dimension_numbers<[1], [0], [0], [1], [0, 0, 1, 1], [], []>} : vector<8x128xf32>, vector<128x384xf32>, vector<8x384xf32> -> vector<8x384xf32>
    %258 = vector.extract_strided_slice %255 {offsets = [0, 0], sizes = [8, 128], strides = [1, 1]} : vector<8x384xf32> to vector<8x128xf32>
    %259 = vector.extract_strided_slice %257 {offsets = [0, 0], sizes = [8, 128], strides = [1, 1]} : vector<8x384xf32> to vector<8x128xf32>
    %260 = arith.addf %258, %259 : vector<8x128xf32>
    %261 = arith.negf %260 : vector<8x128xf32>
    %262 = math.exp %261 : vector<8x128xf32>
    %cst_82 = arith.constant 1.000000e+00 : f32
    %263 = vector.broadcast %cst_82 : f32 to vector<8x128xf32>
    %264 = arith.addf %263, %262 : vector<8x128xf32>
    %265 = arith.divf %263, %264 : vector<8x128xf32>
    %266 = vector.extract_strided_slice %255 {offsets = [0, 128], sizes = [8, 128], strides = [1, 1]} : vector<8x384xf32> to vector<8x128xf32>
    %267 = vector.extract_strided_slice %257 {offsets = [0, 128], sizes = [8, 128], strides = [1, 1]} : vector<8x384xf32> to vector<8x128xf32>
    %268 = arith.addf %266, %267 : vector<8x128xf32>
    %269 = arith.negf %268 : vector<8x128xf32>
    %270 = math.exp %269 : vector<8x128xf32>
    %cst_83 = arith.constant 1.000000e+00 : f32
    %271 = vector.broadcast %cst_83 : f32 to vector<8x128xf32>
    %272 = arith.addf %271, %270 : vector<8x128xf32>
    %273 = arith.divf %271, %272 : vector<8x128xf32>
    %274 = vector.extract_strided_slice %255 {offsets = [0, 256], sizes = [8, 128], strides = [1, 1]} : vector<8x384xf32> to vector<8x128xf32>
    %275 = vector.extract_strided_slice %257 {offsets = [0, 256], sizes = [8, 128], strides = [1, 1]} : vector<8x384xf32> to vector<8x128xf32>
    %276 = vector.broadcast %8 : vector<1x128xf32> to vector<8x128xf32>
    %277 = arith.addf %275, %276 : vector<8x128xf32>
    %278 = arith.mulf %265, %277 : vector<8x128xf32>
    %279 = arith.addf %274, %278 : vector<8x128xf32>
    %280 = math.tanh %279 : vector<8x128xf32>
    %281 = arith.subf %213, %280 : vector<8x128xf32>
    %282 = arith.mulf %273, %281 : vector<8x128xf32>
    %283 = arith.addf %280, %282 : vector<8x128xf32>
    %c3_i32 = arith.constant 3 : i32
    %284 = vector.broadcast %c3_i32 : i32 to vector<8x1xi32>
    %285 = arith.cmpi sgt, %10, %284 : vector<8x1xi32>
    %cst_84 = arith.constant 0.000000e+00 : f32
    %286 = vector.shape_cast %285 : vector<8x1xi1> to vector<8x1xi1>
    %287 = vector.broadcast %286 : vector<8x1xi1> to vector<8x128xi1>
    %288 = vector.broadcast %cst_84 : f32 to vector<8x128xf32>
    %289 = arith.select %287, %283, %288 : vector<8x128xi1>, vector<8x128xf32>
    %c3 = arith.constant 3 : index
    %c0_85 = arith.constant 0 : index
    %c0_86 = arith.constant 0 : index
    %290 = vector.load %arg10[%c3, %c0_85, %c0_86] : memref<8x8x128xf32, #tpu.memory_space<vmem>>, vector<1x8x128xf32>
    %291 = vector.shape_cast %290 : vector<1x8x128xf32> to vector<8x128xf32>
    %292 = vector.shape_cast %289 : vector<8x128xf32> to vector<1x8x128xf32>
    tpu.vector_store %arg10[%c3, %c0_85, %c0_86], %292 {strides = array<i32>} : memref<8x8x128xf32, #tpu.memory_space<vmem>>, vector<1x8x128xf32>,
    %c32 = arith.constant 32 : index
    %c0_87 = arith.constant 0 : index
    %293 = vector.load %arg11[%c32, %c0_87] : memref<64x384xf32, #tpu.memory_space<vmem>>, vector<8x384xf32>
    %c0_88 = arith.constant 0 : index
    %c0_89 = arith.constant 0 : index
    %294 = vector.load %arg3[%c0_88, %c0_89] : memref<128x384xf32, #tpu.memory_space<vmem>>, vector<128x384xf32>
    %cst_90 = arith.constant dense<0.000000e+00> : vector<8x384xf32>
    %295 = tpu.matmul %251, %294, %cst_90 {dimension_numbers = #tpu.dot_dimension_numbers<[1], [0], [0], [1], [0, 0, 1, 1], [], []>} : vector<8x128xf32>, vector<128x384xf32>, vector<8x384xf32> -> vector<8x384xf32>
    %296 = vector.extract_strided_slice %293 {offsets = [0, 0], sizes = [8, 128], strides = [1, 1]} : vector<8x384xf32> to vector<8x128xf32>
    %297 = vector.extract_strided_slice %295 {offsets = [0, 0], sizes = [8, 128], strides = [1, 1]} : vector<8x384xf32> to vector<8x128xf32>
    %298 = arith.addf %296, %297 : vector<8x128xf32>
    %299 = arith.negf %298 : vector<8x128xf32>
    %300 = math.exp %299 : vector<8x128xf32>
    %cst_91 = arith.constant 1.000000e+00 : f32
    %301 = vector.broadcast %cst_91 : f32 to vector<8x128xf32>
    %302 = arith.addf %301, %300 : vector<8x128xf32>
    %303 = arith.divf %301, %302 : vector<8x128xf32>
    %304 = vector.extract_strided_slice %293 {offsets = [0, 128], sizes = [8, 128], strides = [1, 1]} : vector<8x384xf32> to vector<8x128xf32>
    %305 = vector.extract_strided_slice %295 {offsets = [0, 128], sizes = [8, 128], strides = [1, 1]} : vector<8x384xf32> to vector<8x128xf32>
    %306 = arith.addf %304, %305 : vector<8x128xf32>
    %307 = arith.negf %306 : vector<8x128xf32>
    %308 = math.exp %307 : vector<8x128xf32>
    %cst_92 = arith.constant 1.000000e+00 : f32
    %309 = vector.broadcast %cst_92 : f32 to vector<8x128xf32>
    %310 = arith.addf %309, %308 : vector<8x128xf32>
    %311 = arith.divf %309, %310 : vector<8x128xf32>
    %312 = vector.extract_strided_slice %293 {offsets = [0, 256], sizes = [8, 128], strides = [1, 1]} : vector<8x384xf32> to vector<8x128xf32>
    %313 = vector.extract_strided_slice %295 {offsets = [0, 256], sizes = [8, 128], strides = [1, 1]} : vector<8x384xf32> to vector<8x128xf32>
    %314 = vector.broadcast %7 : vector<1x128xf32> to vector<8x128xf32>
    %315 = arith.addf %313, %314 : vector<8x128xf32>
    %316 = arith.mulf %303, %315 : vector<8x128xf32>
    %317 = arith.addf %312, %316 : vector<8x128xf32>
    %318 = math.tanh %317 : vector<8x128xf32>
    %319 = arith.subf %251, %318 : vector<8x128xf32>
    %320 = arith.mulf %311, %319 : vector<8x128xf32>
    %321 = arith.addf %318, %320 : vector<8x128xf32>
    %c0_93 = arith.constant 0 : index
    %c0_94 = arith.constant 0 : index
    %322 = vector.load %arg6[%c0_93, %c0_94] : memref<128x384xf32, #tpu.memory_space<vmem>>, vector<128x384xf32>
    %cst_95 = arith.constant dense<0.000000e+00> : vector<8x384xf32>
    %323 = tpu.matmul %321, %322, %cst_95 {dimension_numbers = #tpu.dot_dimension_numbers<[1], [0], [0], [1], [0, 0, 1, 1], [], []>} : vector<8x128xf32>, vector<128x384xf32>, vector<8x384xf32> -> vector<8x384xf32>
    %324 = vector.broadcast %9 : vector<1x384xf32> to vector<8x384xf32>
    %325 = arith.addf %323, %324 : vector<8x384xf32>
    %c0_96 = arith.constant 0 : index
    %c0_97 = arith.constant 0 : index
    %326 = vector.load %arg7[%c0_96, %c0_97] : memref<128x384xf32, #tpu.memory_space<vmem>>, vector<128x384xf32>
    %cst_98 = arith.constant dense<0.000000e+00> : vector<8x384xf32>
    %327 = tpu.matmul %283, %326, %cst_98 {dimension_numbers = #tpu.dot_dimension_numbers<[1], [0], [0], [1], [0, 0, 1, 1], [], []>} : vector<8x128xf32>, vector<128x384xf32>, vector<8x384xf32> -> vector<8x384xf32>
    %328 = vector.extract_strided_slice %325 {offsets = [0, 0], sizes = [8, 128], strides = [1, 1]} : vector<8x384xf32> to vector<8x128xf32>
    %329 = vector.extract_strided_slice %327 {offsets = [0, 0], sizes = [8, 128], strides = [1, 1]} : vector<8x384xf32> to vector<8x128xf32>
    %330 = arith.addf %328, %329 : vector<8x128xf32>
    %331 = arith.negf %330 : vector<8x128xf32>
    %332 = math.exp %331 : vector<8x128xf32>
    %cst_99 = arith.constant 1.000000e+00 : f32
    %333 = vector.broadcast %cst_99 : f32 to vector<8x128xf32>
    %334 = arith.addf %333, %332 : vector<8x128xf32>
    %335 = arith.divf %333, %334 : vector<8x128xf32>
    %336 = vector.extract_strided_slice %325 {offsets = [0, 128], sizes = [8, 128], strides = [1, 1]} : vector<8x384xf32> to vector<8x128xf32>
    %337 = vector.extract_strided_slice %327 {offsets = [0, 128], sizes = [8, 128], strides = [1, 1]} : vector<8x384xf32> to vector<8x128xf32>
    %338 = arith.addf %336, %337 : vector<8x128xf32>
    %339 = arith.negf %338 : vector<8x128xf32>
    %340 = math.exp %339 : vector<8x128xf32>
    %cst_100 = arith.constant 1.000000e+00 : f32
    %341 = vector.broadcast %cst_100 : f32 to vector<8x128xf32>
    %342 = arith.addf %341, %340 : vector<8x128xf32>
    %343 = arith.divf %341, %342 : vector<8x128xf32>
    %344 = vector.extract_strided_slice %325 {offsets = [0, 256], sizes = [8, 128], strides = [1, 1]} : vector<8x384xf32> to vector<8x128xf32>
    %345 = vector.extract_strided_slice %327 {offsets = [0, 256], sizes = [8, 128], strides = [1, 1]} : vector<8x384xf32> to vector<8x128xf32>
    %346 = vector.broadcast %8 : vector<1x128xf32> to vector<8x128xf32>
    %347 = arith.addf %345, %346 : vector<8x128xf32>
    %348 = arith.mulf %335, %347 : vector<8x128xf32>
    %349 = arith.addf %344, %348 : vector<8x128xf32>
    %350 = math.tanh %349 : vector<8x128xf32>
    %351 = arith.subf %283, %350 : vector<8x128xf32>
    %352 = arith.mulf %343, %351 : vector<8x128xf32>
    %353 = arith.addf %350, %352 : vector<8x128xf32>
    %c4_i32 = arith.constant 4 : i32
    %354 = vector.broadcast %c4_i32 : i32 to vector<8x1xi32>
    %355 = arith.cmpi sgt, %10, %354 : vector<8x1xi32>
    %cst_101 = arith.constant 0.000000e+00 : f32
    %356 = vector.shape_cast %355 : vector<8x1xi1> to vector<8x1xi1>
    %357 = vector.broadcast %356 : vector<8x1xi1> to vector<8x128xi1>
    %358 = vector.broadcast %cst_101 : f32 to vector<8x128xf32>
    %359 = arith.select %357, %353, %358 : vector<8x128xi1>, vector<8x128xf32>
    %c4 = arith.constant 4 : index
    %c0_102 = arith.constant 0 : index
    %c0_103 = arith.constant 0 : index
    %360 = vector.load %arg10[%c4, %c0_102, %c0_103] : memref<8x8x128xf32, #tpu.memory_space<vmem>>, vector<1x8x128xf32>
    %361 = vector.shape_cast %360 : vector<1x8x128xf32> to vector<8x128xf32>
    %362 = vector.shape_cast %359 : vector<8x128xf32> to vector<1x8x128xf32>
    tpu.vector_store %arg10[%c4, %c0_102, %c0_103], %362 {strides = array<i32>} : memref<8x8x128xf32, #tpu.memory_space<vmem>>, vector<1x8x128xf32>,
    %c40 = arith.constant 40 : index
    %c0_104 = arith.constant 0 : index
    %363 = vector.load %arg11[%c40, %c0_104] : memref<64x384xf32, #tpu.memory_space<vmem>>, vector<8x384xf32>
    %c0_105 = arith.constant 0 : index
    %c0_106 = arith.constant 0 : index
    %364 = vector.load %arg3[%c0_105, %c0_106] : memref<128x384xf32, #tpu.memory_space<vmem>>, vector<128x384xf32>
    %cst_107 = arith.constant dense<0.000000e+00> : vector<8x384xf32>
    %365 = tpu.matmul %321, %364, %cst_107 {dimension_numbers = #tpu.dot_dimension_numbers<[1], [0], [0], [1], [0, 0, 1, 1], [], []>} : vector<8x128xf32>, vector<128x384xf32>, vector<8x384xf32> -> vector<8x384xf32>
    %366 = vector.extract_strided_slice %363 {offsets = [0, 0], sizes = [8, 128], strides = [1, 1]} : vector<8x384xf32> to vector<8x128xf32>
    %367 = vector.extract_strided_slice %365 {offsets = [0, 0], sizes = [8, 128], strides = [1, 1]} : vector<8x384xf32> to vector<8x128xf32>
    %368 = arith.addf %366, %367 : vector<8x128xf32>
    %369 = arith.negf %368 : vector<8x128xf32>
    %370 = math.exp %369 : vector<8x128xf32>
    %cst_108 = arith.constant 1.000000e+00 : f32
    %371 = vector.broadcast %cst_108 : f32 to vector<8x128xf32>
    %372 = arith.addf %371, %370 : vector<8x128xf32>
    %373 = arith.divf %371, %372 : vector<8x128xf32>
    %374 = vector.extract_strided_slice %363 {offsets = [0, 128], sizes = [8, 128], strides = [1, 1]} : vector<8x384xf32> to vector<8x128xf32>
    %375 = vector.extract_strided_slice %365 {offsets = [0, 128], sizes = [8, 128], strides = [1, 1]} : vector<8x384xf32> to vector<8x128xf32>
    %376 = arith.addf %374, %375 : vector<8x128xf32>
    %377 = arith.negf %376 : vector<8x128xf32>
    %378 = math.exp %377 : vector<8x128xf32>
    %cst_109 = arith.constant 1.000000e+00 : f32
    %379 = vector.broadcast %cst_109 : f32 to vector<8x128xf32>
    %380 = arith.addf %379, %378 : vector<8x128xf32>
    %381 = arith.divf %379, %380 : vector<8x128xf32>
    %382 = vector.extract_strided_slice %363 {offsets = [0, 256], sizes = [8, 128], strides = [1, 1]} : vector<8x384xf32> to vector<8x128xf32>
    %383 = vector.extract_strided_slice %365 {offsets = [0, 256], sizes = [8, 128], strides = [1, 1]} : vector<8x384xf32> to vector<8x128xf32>
    %384 = vector.broadcast %7 : vector<1x128xf32> to vector<8x128xf32>
    %385 = arith.addf %383, %384 : vector<8x128xf32>
    %386 = arith.mulf %373, %385 : vector<8x128xf32>
    %387 = arith.addf %382, %386 : vector<8x128xf32>
    %388 = math.tanh %387 : vector<8x128xf32>
    %389 = arith.subf %321, %388 : vector<8x128xf32>
    %390 = arith.mulf %381, %389 : vector<8x128xf32>
    %391 = arith.addf %388, %390 : vector<8x128xf32>
    %c0_110 = arith.constant 0 : index
    %c0_111 = arith.constant 0 : index
    %392 = vector.load %arg6[%c0_110, %c0_111] : memref<128x384xf32, #tpu.memory_space<vmem>>, vector<128x384xf32>
    %cst_112 = arith.constant dense<0.000000e+00> : vector<8x384xf32>
    %393 = tpu.matmul %391, %392, %cst_112 {dimension_numbers = #tpu.dot_dimension_numbers<[1], [0], [0], [1], [0, 0, 1, 1], [], []>} : vector<8x128xf32>, vector<128x384xf32>, vector<8x384xf32> -> vector<8x384xf32>
    %394 = vector.broadcast %9 : vector<1x384xf32> to vector<8x384xf32>
    %395 = arith.addf %393, %394 : vector<8x384xf32>
    %c0_113 = arith.constant 0 : index
    %c0_114 = arith.constant 0 : index
    %396 = vector.load %arg7[%c0_113, %c0_114] : memref<128x384xf32, #tpu.memory_space<vmem>>, vector<128x384xf32>
    %cst_115 = arith.constant dense<0.000000e+00> : vector<8x384xf32>
    %397 = tpu.matmul %353, %396, %cst_115 {dimension_numbers = #tpu.dot_dimension_numbers<[1], [0], [0], [1], [0, 0, 1, 1], [], []>} : vector<8x128xf32>, vector<128x384xf32>, vector<8x384xf32> -> vector<8x384xf32>
    %398 = vector.extract_strided_slice %395 {offsets = [0, 0], sizes = [8, 128], strides = [1, 1]} : vector<8x384xf32> to vector<8x128xf32>
    %399 = vector.extract_strided_slice %397 {offsets = [0, 0], sizes = [8, 128], strides = [1, 1]} : vector<8x384xf32> to vector<8x128xf32>
    %400 = arith.addf %398, %399 : vector<8x128xf32>
    %401 = arith.negf %400 : vector<8x128xf32>
    %402 = math.exp %401 : vector<8x128xf32>
    %cst_116 = arith.constant 1.000000e+00 : f32
    %403 = vector.broadcast %cst_116 : f32 to vector<8x128xf32>
    %404 = arith.addf %403, %402 : vector<8x128xf32>
    %405 = arith.divf %403, %404 : vector<8x128xf32>
    %406 = vector.extract_strided_slice %395 {offsets = [0, 128], sizes = [8, 128], strides = [1, 1]} : vector<8x384xf32> to vector<8x128xf32>
    %407 = vector.extract_strided_slice %397 {offsets = [0, 128], sizes = [8, 128], strides = [1, 1]} : vector<8x384xf32> to vector<8x128xf32>
    %408 = arith.addf %406, %407 : vector<8x128xf32>
    %409 = arith.negf %408 : vector<8x128xf32>
    %410 = math.exp %409 : vector<8x128xf32>
    %cst_117 = arith.constant 1.000000e+00 : f32
    %411 = vector.broadcast %cst_117 : f32 to vector<8x128xf32>
    %412 = arith.addf %411, %410 : vector<8x128xf32>
    %413 = arith.divf %411, %412 : vector<8x128xf32>
    %414 = vector.extract_strided_slice %395 {offsets = [0, 256], sizes = [8, 128], strides = [1, 1]} : vector<8x384xf32> to vector<8x128xf32>
    %415 = vector.extract_strided_slice %397 {offsets = [0, 256], sizes = [8, 128], strides = [1, 1]} : vector<8x384xf32> to vector<8x128xf32>
    %416 = vector.broadcast %8 : vector<1x128xf32> to vector<8x128xf32>
    %417 = arith.addf %415, %416 : vector<8x128xf32>
    %418 = arith.mulf %405, %417 : vector<8x128xf32>
    %419 = arith.addf %414, %418 : vector<8x128xf32>
    %420 = math.tanh %419 : vector<8x128xf32>
    %421 = arith.subf %353, %420 : vector<8x128xf32>
    %422 = arith.mulf %413, %421 : vector<8x128xf32>
    %423 = arith.addf %420, %422 : vector<8x128xf32>
    %c5_i32 = arith.constant 5 : i32
    %424 = vector.broadcast %c5_i32 : i32 to vector<8x1xi32>
    %425 = arith.cmpi sgt, %10, %424 : vector<8x1xi32>
    %cst_118 = arith.constant 0.000000e+00 : f32
    %426 = vector.shape_cast %425 : vector<8x1xi1> to vector<8x1xi1>
    %427 = vector.broadcast %426 : vector<8x1xi1> to vector<8x128xi1>
    %428 = vector.broadcast %cst_118 : f32 to vector<8x128xf32>
    %429 = arith.select %427, %423, %428 : vector<8x128xi1>, vector<8x128xf32>
    %c5 = arith.constant 5 : index
    %c0_119 = arith.constant 0 : index
    %c0_120 = arith.constant 0 : index
    %430 = vector.load %arg10[%c5, %c0_119, %c0_120] : memref<8x8x128xf32, #tpu.memory_space<vmem>>, vector<1x8x128xf32>
    %431 = vector.shape_cast %430 : vector<1x8x128xf32> to vector<8x128xf32>
    %432 = vector.shape_cast %429 : vector<8x128xf32> to vector<1x8x128xf32>
    tpu.vector_store %arg10[%c5, %c0_119, %c0_120], %432 {strides = array<i32>} : memref<8x8x128xf32, #tpu.memory_space<vmem>>, vector<1x8x128xf32>,
    %c48 = arith.constant 48 : index
    %c0_121 = arith.constant 0 : index
    %433 = vector.load %arg11[%c48, %c0_121] : memref<64x384xf32, #tpu.memory_space<vmem>>, vector<8x384xf32>
    %c0_122 = arith.constant 0 : index
    %c0_123 = arith.constant 0 : index
    %434 = vector.load %arg3[%c0_122, %c0_123] : memref<128x384xf32, #tpu.memory_space<vmem>>, vector<128x384xf32>
    %cst_124 = arith.constant dense<0.000000e+00> : vector<8x384xf32>
    %435 = tpu.matmul %391, %434, %cst_124 {dimension_numbers = #tpu.dot_dimension_numbers<[1], [0], [0], [1], [0, 0, 1, 1], [], []>} : vector<8x128xf32>, vector<128x384xf32>, vector<8x384xf32> -> vector<8x384xf32>
    %436 = vector.extract_strided_slice %433 {offsets = [0, 0], sizes = [8, 128], strides = [1, 1]} : vector<8x384xf32> to vector<8x128xf32>
    %437 = vector.extract_strided_slice %435 {offsets = [0, 0], sizes = [8, 128], strides = [1, 1]} : vector<8x384xf32> to vector<8x128xf32>
    %438 = arith.addf %436, %437 : vector<8x128xf32>
    %439 = arith.negf %438 : vector<8x128xf32>
    %440 = math.exp %439 : vector<8x128xf32>
    %cst_125 = arith.constant 1.000000e+00 : f32
    %441 = vector.broadcast %cst_125 : f32 to vector<8x128xf32>
    %442 = arith.addf %441, %440 : vector<8x128xf32>
    %443 = arith.divf %441, %442 : vector<8x128xf32>
    %444 = vector.extract_strided_slice %433 {offsets = [0, 128], sizes = [8, 128], strides = [1, 1]} : vector<8x384xf32> to vector<8x128xf32>
    %445 = vector.extract_strided_slice %435 {offsets = [0, 128], sizes = [8, 128], strides = [1, 1]} : vector<8x384xf32> to vector<8x128xf32>
    %446 = arith.addf %444, %445 : vector<8x128xf32>
    %447 = arith.negf %446 : vector<8x128xf32>
    %448 = math.exp %447 : vector<8x128xf32>
    %cst_126 = arith.constant 1.000000e+00 : f32
    %449 = vector.broadcast %cst_126 : f32 to vector<8x128xf32>
    %450 = arith.addf %449, %448 : vector<8x128xf32>
    %451 = arith.divf %449, %450 : vector<8x128xf32>
    %452 = vector.extract_strided_slice %433 {offsets = [0, 256], sizes = [8, 128], strides = [1, 1]} : vector<8x384xf32> to vector<8x128xf32>
    %453 = vector.extract_strided_slice %435 {offsets = [0, 256], sizes = [8, 128], strides = [1, 1]} : vector<8x384xf32> to vector<8x128xf32>
    %454 = vector.broadcast %7 : vector<1x128xf32> to vector<8x128xf32>
    %455 = arith.addf %453, %454 : vector<8x128xf32>
    %456 = arith.mulf %443, %455 : vector<8x128xf32>
    %457 = arith.addf %452, %456 : vector<8x128xf32>
    %458 = math.tanh %457 : vector<8x128xf32>
    %459 = arith.subf %391, %458 : vector<8x128xf32>
    %460 = arith.mulf %451, %459 : vector<8x128xf32>
    %461 = arith.addf %458, %460 : vector<8x128xf32>
    %c0_127 = arith.constant 0 : index
    %c0_128 = arith.constant 0 : index
    %462 = vector.load %arg6[%c0_127, %c0_128] : memref<128x384xf32, #tpu.memory_space<vmem>>, vector<128x384xf32>
    %cst_129 = arith.constant dense<0.000000e+00> : vector<8x384xf32>
    %463 = tpu.matmul %461, %462, %cst_129 {dimension_numbers = #tpu.dot_dimension_numbers<[1], [0], [0], [1], [0, 0, 1, 1], [], []>} : vector<8x128xf32>, vector<128x384xf32>, vector<8x384xf32> -> vector<8x384xf32>
    %464 = vector.broadcast %9 : vector<1x384xf32> to vector<8x384xf32>
    %465 = arith.addf %463, %464 : vector<8x384xf32>
    %c0_130 = arith.constant 0 : index
    %c0_131 = arith.constant 0 : index
    %466 = vector.load %arg7[%c0_130, %c0_131] : memref<128x384xf32, #tpu.memory_space<vmem>>, vector<128x384xf32>
    %cst_132 = arith.constant dense<0.000000e+00> : vector<8x384xf32>
    %467 = tpu.matmul %423, %466, %cst_132 {dimension_numbers = #tpu.dot_dimension_numbers<[1], [0], [0], [1], [0, 0, 1, 1], [], []>} : vector<8x128xf32>, vector<128x384xf32>, vector<8x384xf32> -> vector<8x384xf32>
    %468 = vector.extract_strided_slice %465 {offsets = [0, 0], sizes = [8, 128], strides = [1, 1]} : vector<8x384xf32> to vector<8x128xf32>
    %469 = vector.extract_strided_slice %467 {offsets = [0, 0], sizes = [8, 128], strides = [1, 1]} : vector<8x384xf32> to vector<8x128xf32>
    %470 = arith.addf %468, %469 : vector<8x128xf32>
    %471 = arith.negf %470 : vector<8x128xf32>
    %472 = math.exp %471 : vector<8x128xf32>
    %cst_133 = arith.constant 1.000000e+00 : f32
    %473 = vector.broadcast %cst_133 : f32 to vector<8x128xf32>
    %474 = arith.addf %473, %472 : vector<8x128xf32>
    %475 = arith.divf %473, %474 : vector<8x128xf32>
    %476 = vector.extract_strided_slice %465 {offsets = [0, 128], sizes = [8, 128], strides = [1, 1]} : vector<8x384xf32> to vector<8x128xf32>
    %477 = vector.extract_strided_slice %467 {offsets = [0, 128], sizes = [8, 128], strides = [1, 1]} : vector<8x384xf32> to vector<8x128xf32>
    %478 = arith.addf %476, %477 : vector<8x128xf32>
    %479 = arith.negf %478 : vector<8x128xf32>
    %480 = math.exp %479 : vector<8x128xf32>
    %cst_134 = arith.constant 1.000000e+00 : f32
    %481 = vector.broadcast %cst_134 : f32 to vector<8x128xf32>
    %482 = arith.addf %481, %480 : vector<8x128xf32>
    %483 = arith.divf %481, %482 : vector<8x128xf32>
    %484 = vector.extract_strided_slice %465 {offsets = [0, 256], sizes = [8, 128], strides = [1, 1]} : vector<8x384xf32> to vector<8x128xf32>
    %485 = vector.extract_strided_slice %467 {offsets = [0, 256], sizes = [8, 128], strides = [1, 1]} : vector<8x384xf32> to vector<8x128xf32>
    %486 = vector.broadcast %8 : vector<1x128xf32> to vector<8x128xf32>
    %487 = arith.addf %485, %486 : vector<8x128xf32>
    %488 = arith.mulf %475, %487 : vector<8x128xf32>
    %489 = arith.addf %484, %488 : vector<8x128xf32>
    %490 = math.tanh %489 : vector<8x128xf32>
    %491 = arith.subf %423, %490 : vector<8x128xf32>
    %492 = arith.mulf %483, %491 : vector<8x128xf32>
    %493 = arith.addf %490, %492 : vector<8x128xf32>
    %c6_i32 = arith.constant 6 : i32
    %494 = vector.broadcast %c6_i32 : i32 to vector<8x1xi32>
    %495 = arith.cmpi sgt, %10, %494 : vector<8x1xi32>
    %cst_135 = arith.constant 0.000000e+00 : f32
    %496 = vector.shape_cast %495 : vector<8x1xi1> to vector<8x1xi1>
    %497 = vector.broadcast %496 : vector<8x1xi1> to vector<8x128xi1>
    %498 = vector.broadcast %cst_135 : f32 to vector<8x128xf32>
    %499 = arith.select %497, %493, %498 : vector<8x128xi1>, vector<8x128xf32>
    %c6 = arith.constant 6 : index
    %c0_136 = arith.constant 0 : index
    %c0_137 = arith.constant 0 : index
    %500 = vector.load %arg10[%c6, %c0_136, %c0_137] : memref<8x8x128xf32, #tpu.memory_space<vmem>>, vector<1x8x128xf32>
    %501 = vector.shape_cast %500 : vector<1x8x128xf32> to vector<8x128xf32>
    %502 = vector.shape_cast %499 : vector<8x128xf32> to vector<1x8x128xf32>
    tpu.vector_store %arg10[%c6, %c0_136, %c0_137], %502 {strides = array<i32>} : memref<8x8x128xf32, #tpu.memory_space<vmem>>, vector<1x8x128xf32>,
    %c56 = arith.constant 56 : index
    %c0_138 = arith.constant 0 : index
    %503 = vector.load %arg11[%c56, %c0_138] : memref<64x384xf32, #tpu.memory_space<vmem>>, vector<8x384xf32>
    %c0_139 = arith.constant 0 : index
    %c0_140 = arith.constant 0 : index
    %504 = vector.load %arg3[%c0_139, %c0_140] : memref<128x384xf32, #tpu.memory_space<vmem>>, vector<128x384xf32>
    %cst_141 = arith.constant dense<0.000000e+00> : vector<8x384xf32>
    %505 = tpu.matmul %461, %504, %cst_141 {dimension_numbers = #tpu.dot_dimension_numbers<[1], [0], [0], [1], [0, 0, 1, 1], [], []>} : vector<8x128xf32>, vector<128x384xf32>, vector<8x384xf32> -> vector<8x384xf32>
    %506 = vector.extract_strided_slice %503 {offsets = [0, 0], sizes = [8, 128], strides = [1, 1]} : vector<8x384xf32> to vector<8x128xf32>
    %507 = vector.extract_strided_slice %505 {offsets = [0, 0], sizes = [8, 128], strides = [1, 1]} : vector<8x384xf32> to vector<8x128xf32>
    %508 = arith.addf %506, %507 : vector<8x128xf32>
    %509 = arith.negf %508 : vector<8x128xf32>
    %510 = math.exp %509 : vector<8x128xf32>
    %cst_142 = arith.constant 1.000000e+00 : f32
    %511 = vector.broadcast %cst_142 : f32 to vector<8x128xf32>
    %512 = arith.addf %511, %510 : vector<8x128xf32>
    %513 = arith.divf %511, %512 : vector<8x128xf32>
    %514 = vector.extract_strided_slice %503 {offsets = [0, 128], sizes = [8, 128], strides = [1, 1]} : vector<8x384xf32> to vector<8x128xf32>
    %515 = vector.extract_strided_slice %505 {offsets = [0, 128], sizes = [8, 128], strides = [1, 1]} : vector<8x384xf32> to vector<8x128xf32>
    %516 = arith.addf %514, %515 : vector<8x128xf32>
    %517 = arith.negf %516 : vector<8x128xf32>
    %518 = math.exp %517 : vector<8x128xf32>
    %cst_143 = arith.constant 1.000000e+00 : f32
    %519 = vector.broadcast %cst_143 : f32 to vector<8x128xf32>
    %520 = arith.addf %519, %518 : vector<8x128xf32>
    %521 = arith.divf %519, %520 : vector<8x128xf32>
    %522 = vector.extract_strided_slice %503 {offsets = [0, 256], sizes = [8, 128], strides = [1, 1]} : vector<8x384xf32> to vector<8x128xf32>
    %523 = vector.extract_strided_slice %505 {offsets = [0, 256], sizes = [8, 128], strides = [1, 1]} : vector<8x384xf32> to vector<8x128xf32>
    %524 = vector.broadcast %7 : vector<1x128xf32> to vector<8x128xf32>
    %525 = arith.addf %523, %524 : vector<8x128xf32>
    %526 = arith.mulf %513, %525 : vector<8x128xf32>
    %527 = arith.addf %522, %526 : vector<8x128xf32>
    %528 = math.tanh %527 : vector<8x128xf32>
    %529 = arith.subf %461, %528 : vector<8x128xf32>
    %530 = arith.mulf %521, %529 : vector<8x128xf32>
    %531 = arith.addf %528, %530 : vector<8x128xf32>
    %c0_144 = arith.constant 0 : index
    %c0_145 = arith.constant 0 : index
    %532 = vector.load %arg6[%c0_144, %c0_145] : memref<128x384xf32, #tpu.memory_space<vmem>>, vector<128x384xf32>
    %cst_146 = arith.constant dense<0.000000e+00> : vector<8x384xf32>
    %533 = tpu.matmul %531, %532, %cst_146 {dimension_numbers = #tpu.dot_dimension_numbers<[1], [0], [0], [1], [0, 0, 1, 1], [], []>} : vector<8x128xf32>, vector<128x384xf32>, vector<8x384xf32> -> vector<8x384xf32>
    %534 = vector.broadcast %9 : vector<1x384xf32> to vector<8x384xf32>
    %535 = arith.addf %533, %534 : vector<8x384xf32>
    %c0_147 = arith.constant 0 : index
    %c0_148 = arith.constant 0 : index
    %536 = vector.load %arg7[%c0_147, %c0_148] : memref<128x384xf32, #tpu.memory_space<vmem>>, vector<128x384xf32>
    %cst_149 = arith.constant dense<0.000000e+00> : vector<8x384xf32>
    %537 = tpu.matmul %493, %536, %cst_149 {dimension_numbers = #tpu.dot_dimension_numbers<[1], [0], [0], [1], [0, 0, 1, 1], [], []>} : vector<8x128xf32>, vector<128x384xf32>, vector<8x384xf32> -> vector<8x384xf32>
    %538 = vector.extract_strided_slice %535 {offsets = [0, 0], sizes = [8, 128], strides = [1, 1]} : vector<8x384xf32> to vector<8x128xf32>
    %539 = vector.extract_strided_slice %537 {offsets = [0, 0], sizes = [8, 128], strides = [1, 1]} : vector<8x384xf32> to vector<8x128xf32>
    %540 = arith.addf %538, %539 : vector<8x128xf32>
    %541 = arith.negf %540 : vector<8x128xf32>
    %542 = math.exp %541 : vector<8x128xf32>
    %cst_150 = arith.constant 1.000000e+00 : f32
    %543 = vector.broadcast %cst_150 : f32 to vector<8x128xf32>
    %544 = arith.addf %543, %542 : vector<8x128xf32>
    %545 = arith.divf %543, %544 : vector<8x128xf32>
    %546 = vector.extract_strided_slice %535 {offsets = [0, 128], sizes = [8, 128], strides = [1, 1]} : vector<8x384xf32> to vector<8x128xf32>
    %547 = vector.extract_strided_slice %537 {offsets = [0, 128], sizes = [8, 128], strides = [1, 1]} : vector<8x384xf32> to vector<8x128xf32>
    %548 = arith.addf %546, %547 : vector<8x128xf32>
    %549 = arith.negf %548 : vector<8x128xf32>
    %550 = math.exp %549 : vector<8x128xf32>
    %cst_151 = arith.constant 1.000000e+00 : f32
    %551 = vector.broadcast %cst_151 : f32 to vector<8x128xf32>
    %552 = arith.addf %551, %550 : vector<8x128xf32>
    %553 = arith.divf %551, %552 : vector<8x128xf32>
    %554 = vector.extract_strided_slice %535 {offsets = [0, 256], sizes = [8, 128], strides = [1, 1]} : vector<8x384xf32> to vector<8x128xf32>
    %555 = vector.extract_strided_slice %537 {offsets = [0, 256], sizes = [8, 128], strides = [1, 1]} : vector<8x384xf32> to vector<8x128xf32>
    %556 = vector.broadcast %8 : vector<1x128xf32> to vector<8x128xf32>
    %557 = arith.addf %555, %556 : vector<8x128xf32>
    %558 = arith.mulf %545, %557 : vector<8x128xf32>
    %559 = arith.addf %554, %558 : vector<8x128xf32>
    %560 = math.tanh %559 : vector<8x128xf32>
    %561 = arith.subf %493, %560 : vector<8x128xf32>
    %562 = arith.mulf %553, %561 : vector<8x128xf32>
    %563 = arith.addf %560, %562 : vector<8x128xf32>
    %c7_i32 = arith.constant 7 : i32
    %564 = vector.broadcast %c7_i32 : i32 to vector<8x1xi32>
    %565 = arith.cmpi sgt, %10, %564 : vector<8x1xi32>
    %cst_152 = arith.constant 0.000000e+00 : f32
    %566 = vector.shape_cast %565 : vector<8x1xi1> to vector<8x1xi1>
    %567 = vector.broadcast %566 : vector<8x1xi1> to vector<8x128xi1>
    %568 = vector.broadcast %cst_152 : f32 to vector<8x128xf32>
    %569 = arith.select %567, %563, %568 : vector<8x128xi1>, vector<8x128xf32>
    %c7 = arith.constant 7 : index
    %c0_153 = arith.constant 0 : index
    %c0_154 = arith.constant 0 : index
    %570 = vector.load %arg10[%c7, %c0_153, %c0_154] : memref<8x8x128xf32, #tpu.memory_space<vmem>>, vector<1x8x128xf32>
    %571 = vector.shape_cast %570 : vector<1x8x128xf32> to vector<8x128xf32>
    %572 = vector.shape_cast %569 : vector<8x128xf32> to vector<1x8x128xf32>
    tpu.vector_store %arg10[%c7, %c0_153, %c0_154], %572 {strides = array<i32>} : memref<8x8x128xf32, #tpu.memory_space<vmem>>, vector<1x8x128xf32>,
    return
  }
}

</mosaic_0001>

<bundles_post_ra>
// kernel: sentence_model_forward.1
= control target key start
LH: loop header
LB: loop body
LE: loop exit
PB: predicated region body
PF: predicated region fallthrough
CT: control target
= control target key end

     0   :  { %v11846_v3 = vmov 0.0   ;;  %vm66_vm0 = vcmask 130048   ;;  %v11848_v48 = vmov 0.0|0.0   ;;  %vm8260_vm1 = vmmov 0   ;;  %s11834_s2 = inlined_call_operand.vmem [shape: f32[16,384], index: 2, kind: input, shape index: {}]   ;;  %s11835_s0 = inlined_call_operand.vmem [shape: f32[64,16], index: 0, kind: input, shape index: {}]   ;;  %s11836_s3 = inlined_call_operand.vmem [shape: f32[128,384], index: 3, kind: input, shape index: {}]   ;;  %s11837_s6 = inlined_call_operand.vmem [shape: f32[128,384], index: 6, kind: input, shape index: {}]   ;;  %s11838_s7 = inlined_call_operand.vmem [shape: f32[128,384], index: 7, kind: input, shape index: {}]   ;;  %s11839_s4 = inlined_call_operand.vmem [shape: f32[1,384], index: 4, kind: input, shape index: {}]   ;;  %s11840_s1 = inlined_call_operand.vmem [shape: s32[8,1], index: 1, kind: input, shape index: {}]   ;;  %s11841_s5 = inlined_call_operand.vmem [shape: f32[1,128], index: 5, kind: input, shape index: {}]   ;;  %s11842_s8 = inlined_call_operand.vmem [shape: f32[1,384], index: 8, kind: input, shape index: {}]   ;;  %s11843_s9 = inlined_call_operand.vmem [shape: f32[1,128], index: 9, kind: input, shape index: {}]   ;;  %s11844_s10 = inlined_call_operand.vmem [shape: f32[8,8,128], index: 10, kind: output, shape index: {}]  }
   0x1   :  { %v44_v0 = vld [vmem:[%s11834_s2 + $0x8] sm:$0xff]  ;;  %v47_v1 = vld [vmem:[%s11834_s2 + $0x20] sm:$0xff]  ;;  %155 = vmatprep.mubr.f32.mxu0 %v11846_v3  ;;  %v46_v5 = vld [vmem:[%s11834_s2 + $0x18] sm:$0xff] }
   0x2   :  { %v43_v2 = vld [vmem:[%s11834_s2] sm:$0xff]  ;;  %v6667_v4 = vpack.c.bf16 %v47_v1, %v44_v0  ;;  %v341_v7 = vld [vmem:[%s11836_s3 + $0x8] sm:$0xff]  ;;  %v343_v11 = vld [vmem:[%s11836_s3 + $0x18] sm:$0xff] }
   0x3   :  { %v35_v6 = vld [vmem:[%s11835_s0] sm:$0xff]  ;;  %v6669_v8 = vpack.c.bf16 %v46_v5, %v43_v2  ;;  %v347_v13 = vld [vmem:[%s11836_s3 + $0x38] sm:$0xff]  ;;  %v350_v14 = vld [vmem:[%s11836_s3 + $0x50] sm:$0xff] }
   0x4   :  { %v344_v9 = vld [vmem:[%s11836_s3 + $0x20] sm:$0xff]  ;;  %5815 = vmatprep.mubr.msk.f32.mxu1 %vm66_vm0, %v35_v6  ;;  %6668 = vmatprep.subr.bf16.mxu0 %v6667_v4  ;;  %v8357_v16 = vpack.c.bf16 %v350_v14, %v347_v13  ;;  %v346_v17 = vld [vmem:[%s11836_s3 + $0x30] sm:$0xff]  ;;  %v349_v18 = vld [vmem:[%s11836_s3 + $0x48] sm:$0xff] }
   0x5   :  { %v340_v10 = vld [vmem:[%s11836_s3] sm:$0xff]  ;;  %v8346_v12 = vpack.c.bf16 %v344_v9, %v341_v7  ;;  %6670 = vmatpush1.bf16.msra.mxu0 %v6669_v8  ;;  %v353_v19 = vld [vmem:[%s11836_s3 + $0x68] sm:$0xff]  ;;  %v8377_v22 = vpack.c.bf16 %v349_v18, %v346_v17  ;;  %v355_v25 = vld [vmem:[%s11836_s3 + $0x78] sm:$0xff] }
   0x6   :  { %v8354_v15 = vpack.c.bf16 %v343_v11, %v340_v10  ;;  %v356_v20 = vld [vmem:[%s11836_s3 + $0x80] sm:$0xff]  ;;  %v36_v21 = vld [vmem:[%s11835_s0 + $0x8] sm:$0xff]  ;;  %v359_v26 = vld [vmem:[%s11836_s3 + $0x98] sm:$0xff] }
   0x7   :  { %6676 = vmatprep.subr.bf16.mxu0 %v8346_v12  ;;  %v8380_v23 = vpack.c.bf16 %v356_v20, %v353_v19  ;;  %v352_v24 = vld [vmem:[%s11836_s3 + $0x60] sm:$0xff]  ;;  %v362_v27 = vld [vmem:[%s11836_s3 + $0xb0] sm:$0xff]  ;;  %v48_v29 = vld [vmem:[%s11834_s2 + $0x28] sm:$0xff] }
   0x8   :  { %5336 = vmatmul.mubr.msk.f32.vlgmr.msra.gmra.mrb[0].mxu0 %vm66_vm0, %v35_v6  ;;  %v45_v28 = vld [vmem:[%s11834_s2 + $0x10] sm:$0xff]  ;;  %v8406_v31 = vpack.c.bf16 %v355_v25, %v352_v24  ;;  %v8409_v33 = vpack.c.bf16 %v362_v27, %v359_v26  ;;  %v361_v35 = vld [vmem:[%s11836_s3 + $0xa8] sm:$0xff]  ;;  %v368_v38 = vld [vmem:[%s11836_s3 + $0xe0] sm:$0xff] }
   0x9   :  { %6678 = vmatpush1.bf16.msra.mxu0 %v8354_v15  ;;  %161 = vmatprep.mubr.f32.mxu0 %v11846_v3  ;;  %v37_v30 = vld [vmem:[%s11835_s0 + $0x10] sm:$0xff]  ;;  %v6671_v32 = vpack.c.bf16 %v48_v29, %v45_v28  ;;  %v365_v37 = vld [vmem:[%s11836_s3 + $0xc8] sm:$0xff]  ;;  %v38_v41 = vld [vmem:[%s11835_s0 + $0x18] sm:$0xff] }
   0xa   :  { %6680 = vmatprep.subr.bf16.mxu0 %v8357_v16  ;;  %v358_v34 = vld [vmem:[%s11836_s3 + $0x90] sm:$0xff]  ;;  %v345_v39 = vld [vmem:[%s11836_s3 + $0x28] sm:$0xff]  ;;  %v348_v43 = vld [vmem:[%s11836_s3 + $0x40] sm:$0xff]  ;;  %v8446_v45 = vpack.c.bf16 %v368_v38, %v365_v37 }
   0xb   :  { %v342_v36 = vld [vmem:[%s11836_s3 + $0x10] sm:$0xff]  ;;  %6672 = vmatprep.subr.bf16.mxu1 %v6671_v32  ;;  %v8437_v42 = vpack.c.bf16 %v361_v35, %v358_v34  ;;  %v351_v44 = vld [vmem:[%s11836_s3 + $0x58] sm:$0xff]  ;;  %v364_v46 = vld [vmem:[%s11836_s3 + $0xc0] sm:$0xff] }
   0xc   :  { %5337 = vmatmul.mubr.msk.f32.gmra.mrb[2].mxu0 %vm66_vm0, %v36_v21  ;;  %6674 = vmatpush3.bf16.msra.mxu1 %v6671_v32  ;;  %v8430_v40 = vpack.c.bf16 %v345_v39, %v342_v36  ;;  %v367_v47 = vld [vmem:[%s11836_s3 + $0xd8] sm:$0xff]  ;;  %v374_v50 = vld [vmem:[%s11836_s3 + $0x110] sm:$0xff]  ;;  %v8464_v51 = vpack.c.bf16 %v351_v44, %v348_v43  ;;  %v39_v52 = vld [vmem:[%s11835_s0 + $0x20] sm:$0xff] }
   0xd   :  { %6682 = vmatpush1.bf16.msra.mxu0 %v8377_v22  ;;  %167 = vmatprep.mubr.f32.mxu0 %v11846_v3  ;;  %v371_v49 = vld [vmem:[%s11836_s3 + $0xf8] sm:$0xff]  ;;  %v8471_v53 = vpack.c.bf16 %v367_v47, %v364_v46  ;;  %v354_v54 = vld [vmem:[%s11836_s3 + $0x70] sm:$0xff]  ;;  %v357_v55 = vld [vmem:[%s11836_s3 + $0x88] sm:$0xff] }
   0xe   :  { %6684 = vmatprep.subr.bf16.mxu0 %v8380_v23  ;;  %6707 = vmatprep.subr.bf16.mxu1 %v11848_v48  ;;  %v8480_v56 = vpack.c.bf16 %v374_v50, %v371_v49  ;;  %v370_v57 = vld [vmem:[%s11836_s3 + $0xf0] sm:$0xff]  ;;  %v373_v58 = vld [vmem:[%s11836_s3 + $0x108] sm:$0xff]  ;;  %v380_v60 = vld [vmem:[%s11836_s3 + $0x140] sm:$0xff]  ;;  %v8498_v61 = vpack.c.bf16 %v357_v55, %v354_v54 }
   0xf   :  { %5816 = vmatmul.mubr.msk.f32.vlgmr.msra.gmra.mrb[0].mxu1 %vm66_vm0, %v36_v21  ;;  %v377_v59 = vld [vmem:[%s11836_s3 + $0x128] sm:$0xff]  ;;  %v8505_v63 = vpack.c.bf16 %v373_v58, %v370_v57  ;;  %v360_v0 = vld [vmem:[%s11836_s3 + $0xa0] sm:$0xff]  ;;  %v363_v1 = vld [vmem:[%s11836_s3 + $0xb8] sm:$0xff] }
  0x10   :  { %5338 = vmatmul.mubr.msk.f32.gmra.mrb[4].mxu0 %vm66_vm0, %v37_v30  ;;  %6709 = vmatpush3.bf16.msra.mxu1 %v8430_v40  ;;  %v40_v62 = vld [vmem:[%s11835_s0 + $0x28] sm:$0xff]  ;;  %v8514_v2 = vpack.c.bf16 %v380_v60, %v377_v59  ;;  %v376_v4 = vld [vmem:[%s11836_s3 + $0x120] sm:$0xff]  ;;  %v379_v5 = vld [vmem:[%s11836_s3 + $0x138] sm:$0xff]  ;;  %v8532_v8 = vpack.c.bf16 %v363_v1, %v360_v0 }
  0x11   :  { %6686 = vmatpush1.bf16.msra.mxu0 %v8406_v31  ;;  %173 = vmatprep.mubr.f32.mxu0 %v11846_v3  ;;  %v383_v6 = vld [vmem:[%s11836_s3 + $0x158] sm:$0xff]  ;;  %v386_v7 = vld [vmem:[%s11836_s3 + $0x170] sm:$0xff]  ;;  %v8539_v10 = vpack.c.bf16 %v379_v5, %v376_v4  ;;  %v369_v13 = vld [vmem:[%s11836_s3 + $0xe8] sm:$0xff] }
  0x12   :  { %6688 = vmatprep.subr.bf16.mxu0 %v8409_v33  ;;  %6710 = vmatprep.subr.bf16.mxu1 %v11848_v48  ;;  %v41_v9 = vld [vmem:[%s11835_s0 + $0x30] sm:$0xff]  ;;  %v8548_v14 = vpack.c.bf16 %v386_v7, %v383_v6  ;;  %v385_v18 = vld [vmem:[%s11836_s3 + $0x168] sm:$0xff]  ;;  %v42_v20 = vld [vmem:[%s11835_s0 + $0x38] sm:$0xff] }
  0x13   :  { %5818 = vmatprep.mubr.msk.f32.mxu1 %vm66_vm0, %v37_v30  ;;  %v366_v11 = vld [vmem:[%s11836_s3 + $0xd0] sm:$0xff]  ;;  %v372_v24 = vld [vmem:[%s11836_s3 + $0x100] sm:$0xff]  ;;  %v375_v25 = vld [vmem:[%s11836_s3 + $0x118] sm:$0xff] }
  0x14   :  { %5339 = vmatmul.mubr.msk.f32.gmra.mrb[6].mxu0 %vm66_vm0, %v38_v41  ;;  %6712 = vmatpush3.bf16.msra.mxu1 %v8464_v51  ;;  %v382_v17 = vld [vmem:[%s11836_s3 + $0x150] sm:$0xff]  ;;  %v8560_v19 = vpack.c.bf16 %v369_v13, %v366_v11  ;;  %v8580_v26 = vpack.c.bf16 %v375_v25, %v372_v24  ;;  %v381_v28 = vld [vmem:[%s11836_s3 + $0x148] sm:$0xff]  ;;  %v384_v30 = vld [vmem:[%s11836_s3 + $0x160] sm:$0xff] }
  0x15   :  { %6690 = vmatpush1.bf16.msra.mxu0 %v8437_v42  ;;  %179 = vmatprep.mubr.f32.mxu0 %v11846_v3  ;;  %v8567_v21 = vpack.c.bf16 %v385_v18, %v382_v17  ;;  %v378_v27 = vld [vmem:[%s11836_s3 + $0x130] sm:$0xff]  ;;  %v387_v32 = vld [vmem:[%s11836_s3 + $0x178] sm:$0xff]  ;;  %v557_v35 = vld [vmem:[%s11837_s6 + $0x8] sm:$0xff] }
  0x16   :  { %6692 = vmatprep.subr.bf16.mxu0 %v8446_v45  ;;  %6713 = vmatprep.subr.bf16.mxu1 %v11848_v48  ;;  %v8595_v29 = vpack.c.bf16 %v381_v28, %v378_v27  ;;  %v8608_v34 = vpack.c.bf16 %v387_v32, %v384_v30  ;;  %v560_v36 = vld [vmem:[%s11837_s6 + $0x20] sm:$0xff]  ;;  %v559_v39 = vld [vmem:[%s11837_s6 + $0x18] sm:$0xff]  ;;  %v561_v44 = vld [vmem:[%s11837_s6 + $0x28] sm:$0xff] }
  0x17   :  { %5819 = vmatmul.mubr.msk.f32.gmra.mrb[2].mxu1 %vm66_vm0, %v38_v41  ;;  %v8622_v37 = vpack.c.bf16 %v560_v36, %v557_v35  ;;  %v556_v38 = vld [vmem:[%s11837_s6] sm:$0xff]  ;;  %v558_v41 = vld [vmem:[%s11837_s6 + $0x10] sm:$0xff]  ;;  %v563_v47 = vld [vmem:[%s11837_s6 + $0x38] sm:$0xff] }
  0x18   :  { %5340 = vmatmul.mubr.msk.f32.gmra.mrb[8].mxu0 %vm66_vm0, %v39_v52  ;;  %6715 = vmatpush3.bf16.msra.mxu1 %v8498_v61  ;;  %v8633_v43 = vpack.c.bf16 %v559_v39, %v556_v38  ;;  %v8639_v46 = vpack.c.bf16 %v561_v44, %v558_v41  ;;  %v566_v49 = vld [vmem:[%s11837_s6 + $0x50] sm:$0xff]  ;;  %v565_v54 = vld [vmem:[%s11837_s6 + $0x48] sm:$0xff]  ;;  %v564_v55 = vld [vmem:[%s11837_s6 + $0x40] sm:$0xff] }
  0x19   :  { %6694 = vmatpush1.bf16.msra.mxu0 %v8471_v53  ;;  %185 = vmatprep.mubr.f32.mxu0 %v11846_v3  ;;  %v8649_v50 = vpack.c.bf16 %v566_v49, %v563_v47  ;;  %v567_v58 = vld [vmem:[%s11837_s6 + $0x58] sm:$0xff]  ;;  %v569_v59 = vld [vmem:[%s11837_s6 + $0x68] sm:$0xff]  ;;  %v572_v60 = vld [vmem:[%s11837_s6 + $0x80] sm:$0xff] }
  0x1a   :  { %6696 = vmatprep.subr.bf16.mxu0 %v8480_v56  ;;  %6716 = vmatprep.subr.bf16.mxu1 %v11848_v48  ;;  %v8675_v0 = vpack.c.bf16 %v572_v60, %v569_v59  ;;  %v568_v1 = vld [vmem:[%s11837_s6 + $0x60] sm:$0xff]  ;;  %v571_v4 = vld [vmem:[%s11837_s6 + $0x78] sm:$0xff]  ;;  %v570_v5 = vld [vmem:[%s11837_s6 + $0x70] sm:$0xff] }
  0x1b   :  { %5821 = vmatprep.mubr.msk.f32.mxu1 %vm66_vm0, %v39_v52  ;;  %v562_v52 = vld [vmem:[%s11837_s6 + $0x30] sm:$0xff]  ;;  %v8690_v6 = vpack.c.bf16 %v571_v4, %v568_v1  ;;  %v573_v7 = vld [vmem:[%s11837_s6 + $0x88] sm:$0xff]  ;;  %v575_v11 = vld [vmem:[%s11837_s6 + $0x98] sm:$0xff] }
  0x1c   :  { %5341 = vmatmul.mubr.msk.f32.gmra.mrb[10].mxu0 %vm66_vm0, %v40_v62  ;;  %6718 = vmatpush3.bf16.msra.mxu1 %v8532_v8  ;;  %v8661_v57 = vpack.c.bf16 %v565_v54, %v562_v52  ;;  %v578_v13 = vld [vmem:[%s11837_s6 + $0xb0] sm:$0xff]  ;;  %v576_v24 = vld [vmem:[%s11837_s6 + $0xa0] sm:$0xff]  ;;  %v579_v27 = vld [vmem:[%s11837_s6 + $0xb8] sm:$0xff] }
  0x1d   :  { %6698 = vmatpush1.bf16.msra.mxu0 %v8505_v63  ;;  %191 = vmatprep.mubr.f32.mxu0 %v11846_v3  ;;  %v8705_v17 = vpack.c.bf16 %v578_v13, %v575_v11  ;;  %v574_v18 = vld [vmem:[%s11837_s6 + $0x90] sm:$0xff]  ;;  %v8723_v28 = vpack.c.bf16 %v579_v27, %v576_v24  ;;  %v581_v30 = vld [vmem:[%s11837_s6 + $0xc8] sm:$0xff]  ;;  %v584_v32 = vld [vmem:[%s11837_s6 + $0xe0] sm:$0xff] }
  0x1e   :  { %6700 = vmatprep.subr.bf16.mxu0 %v8514_v2  ;;  %6719 = vmatprep.subr.bf16.mxu1 %v11848_v48  ;;  %v8733_v35 = vpack.c.bf16 %v584_v32, %v581_v30  ;;  %v580_v36 = vld [vmem:[%s11837_s6 + $0xc0] sm:$0xff]  ;;  %v583_v38 = vld [vmem:[%s11837_s6 + $0xd8] sm:$0xff]  ;;  %v582_v39 = vld [vmem:[%s11837_s6 + $0xd0] sm:$0xff] }
  0x1f   :  { %5822 = vmatmul.mubr.msk.f32.gmra.mrb[4].mxu1 %vm66_vm0, %v40_v62  ;;  %v8673_v62 = vpack.c.bf16 %v567_v58, %v564_v55  ;;  %v8745_v41 = vpack.c.bf16 %v583_v38, %v580_v36  ;;  %v585_v44 = vld [vmem:[%s11837_s6 + $0xe8] sm:$0xff]  ;;  %v587_v49 = vld [vmem:[%s11837_s6 + $0xf8] sm:$0xff]  ;;  %v590_v52 = vld [vmem:[%s11837_s6 + $0x110] sm:$0xff] }
  0x20   :  { %5342 = vmatmul.mubr.msk.f32.gmra.mrb[12].mxu0 %vm66_vm0, %v41_v9  ;;  %6721 = vmatpush3.bf16.msra.mxu1 %v8560_v19  ;;  %v8751_v47 = vpack.c.bf16 %v585_v44, %v582_v39  ;;  %v586_v54 = vld [vmem:[%s11837_s6 + $0xf0] sm:$0xff]  ;;  %v8763_v55 = vpack.c.bf16 %v590_v52, %v587_v49  ;;  %v589_v58 = vld [vmem:[%s11837_s6 + $0x108] sm:$0xff]  ;;  %v588_v59 = vld [vmem:[%s11837_s6 + $0x100] sm:$0xff] }
  0x21   :  { %6702 = vmatpush1.bf16.msra.mxu0 %v8539_v10  ;;  %197 = vmatprep.mubr.f32.mxu0 %v11846_v3  ;;  %v591_v60 = vld [vmem:[%s11837_s6 + $0x118] sm:$0xff]  ;;  %v8775_v1 = vpack.c.bf16 %v589_v58, %v586_v54  ;;  %v592_v11 = vld [vmem:[%s11837_s6 + $0x120] sm:$0xff]  ;;  %v597_v24 = vld [vmem:[%s11837_s6 + $0x148] sm:$0xff] }
  0x22   :  { %6704 = vmatprep.subr.bf16.mxu0 %v8548_v14  ;;  %6722 = vmatprep.subr.bf16.mxu1 %v11848_v48  ;;  %v8777_v4 = vpack.c.bf16 %v591_v60, %v588_v59  ;;  %v599_v27 = vld [vmem:[%s11837_s6 + $0x158] sm:$0xff]  ;;  %v602_v30 = vld [vmem:[%s11837_s6 + $0x170] sm:$0xff]  ;;  %v601_v44 = vld [vmem:[%s11837_s6 + $0x168] sm:$0xff] }
  0x23   :  { %5824 = vmatprep.mubr.msk.f32.mxu1 %vm66_vm0, %v41_v9  ;;  %v8695_v9 = vpack.c.bf16 %v573_v7, %v570_v5  ;;  %v593_v5 = vld [vmem:[%s11837_s6 + $0x128] sm:$0xff]  ;;  %v596_v7 = vld [vmem:[%s11837_s6 + $0x140] sm:$0xff]  ;;  %v8814_v38 = vpack.c.bf16 %v602_v30, %v599_v27  ;;  %v598_v39 = vld [vmem:[%s11837_s6 + $0x150] sm:$0xff] }
  0x24   :  { %5343 = vmatmul.mubr.msk.f32.gmra.mrb[14].mxu0 %vm66_vm0, %v42_v20  ;;  %5825 = vmatmul.mubr.msk.f32.gmra.mrb[6].mxu1 %vm66_vm0, %v42_v20  ;;  %v577_v20 = vld [vmem:[%s11837_s6 + $0xa8] sm:$0xff]  ;;  %v8790_v13 = vpack.c.bf16 %v596_v7, %v593_v5  ;;  %v600_v49 = vld [vmem:[%s11837_s6 + $0x160] sm:$0xff]  ;;  %v603_v52 = vld [vmem:[%s11837_s6 + $0x178] sm:$0xff]  ;;  %v8836_v59 = vpack.c.bf16 %v601_v44, %v598_v39  ;;  %v51_v7 = vlaneseq }
  0x25   :  { %6706 = vmatpush1.bf16.msra.mxu0 %v8567_v21  ;;  %452 = vmatprep.mubr.f32.mxu0 %v11846_v3  ;;  %v8717_v25 = vpack.c.bf16 %v577_v20, %v574_v18  ;;  %v595_v18 = vld [vmem:[%s11837_s6 + $0x138] sm:$0xff]  ;;  %v594_v20 = vld [vmem:[%s11837_s6 + $0x130] sm:$0xff]  ;;  %11956 = vst [vmem:[#allocation3_spill] sm:$0xff] %v8814_v38  ;;  %v762_v54 = vld [vmem:[%s11838_s7 + $0x8] sm:$0xff]  ;;  %v8840_v60 = vpack.c.bf16 %v603_v52, %v600_v49  ;;  %v11853_v49 = vmov 0  }
  0x26   :  { %6724 = vmatpush3.bf16.msra.mxu1 %v8580_v26  ;;  %5859 = vmatprep.mubr.msk.f32.mxu1 %vm8260_vm1, %v11846_v3  ;;  %v8808_v32 = vpack.c.bf16 %v595_v18, %v592_v11  ;;  %v8812_v36 = vpack.c.bf16 %v597_v24, %v594_v20  ;;  %v765_v58 = vld [vmem:[%s11838_s7 + $0x20] sm:$0xff]  ;;  %11957 = vst [vmem:[#allocation4_spill] sm:$0xff] %v8836_v59  ;;  %v8849_v11 = vshrl.u32 %v51_v7, 7 }
  0x27   :  { %6725 = vmatprep.subr.bf16.mxu1 %v11848_v48  ;;  %6732 = vmatprep.subr.bf16.mxu0 %v8622_v37  ;;  %11958 = vst [vmem:[#allocation5_spill] sm:$0xff] %v8840_v60  ;;  %v8842_v5 = vpack.c.bf16 %v765_v58, %v762_v54  ;;  %v49_v20 = vld [vmem:[%s11839_s4] sm:$0x7] }
  0x28   :  { %453 = vmatmul.mubr.f32.vlgmr.msra.gmra.mrb[0].mxu0 %v11846_v3  ;;  %v11845_v18 = vsub.s32 2, %v8849_v11  ;;  %8087 = vset.pattern.permute.xlu0 %v11853_v49  ;;  %v8863_v52 = vld [vmem:[%s11840_s1] sm:$0xff] }
  0x29   :  { %684 = vmatprep.mubr.f32.mxu0 %v11846_v3  ;;  %6734 = vmatpush1.bf16.msra.mxu0 %v8633_v43  ;;  %11959 = vst [vmem:[#allocation6_spill] sm:$0xff] %v8842_v5  ;;  %11961 = vst [vmem:[#allocation8_spill] sm:$0xff] %v8863_v52  ;;  %vm977_vm2 = vcmp.gt.s32.totalorder %v8863_v52, 0 }
  0x2a   :  { %6727 = vmatpush3.bf16.msra.mxu1 %v8595_v29  ;;  %6736 = vmatprep.subr.bf16.mxu0 %v8649_v50  ;;  %v62_v24 = vrot.slane %v49_v20, %v11845_v18  ;;  %v11856_v18 = vsub.s32 0, %v8849_v11 }
  0x2b   :  { %6728 = vmatprep.subr.bf16.mxu1 %v11848_v48  ;;  %8088 = vset.pattern.permute.xlu1 %v11853_v49 }
  0x2d   :  { %6738 = vmatpush1.bf16.msra.mxu0 %v8661_v57 }
  0x2e   :  { %6730 = vmatpush3.bf16.msra.mxu1 %v8608_v34  ;;  %6740 = vmatprep.subr.bf16.mxu0 %v8675_v0 }
  0x2f   :  { %6763 = vmatprep.subr.bf16.mxu1 %v11848_v48 }
  0x31   :  { %5860 = vmatmul.mubr.f32.vlgmr.msra.gmra.mrb[8].mxu1 %v11846_v3  ;;  %6742 = vmatpush1.bf16.msra.mxu0 %v8690_v6 }
  0x32   :  { %5894 = vmatprep.mubr.msk.f32.mxu1 %vm8260_vm1, %v11846_v3  ;;  %6765 = vmatpush3.bf16.msra.mxu1 %v8639_v46 }
  0x33   :  { %6766 = vmatprep.subr.bf16.mxu1 %v11848_v48  ;;  %6744 = vmatprep.subr.bf16.mxu0 %v8705_v17 }
  0x35   :  { %6746 = vmatpush1.bf16.msra.mxu0 %v8717_v25 }
  0x36   :  { %6768 = vmatpush3.bf16.msra.mxu1 %v8673_v62  ;;  %6748 = vmatprep.subr.bf16.mxu0 %v8733_v35 }
  0x37   :  { %6769 = vmatprep.subr.bf16.mxu1 %v11848_v48 }
  0x39   :  { %6750 = vmatpush1.bf16.msra.mxu0 %v8745_v41 }
  0x3a   :  { %6771 = vmatpush3.bf16.msra.mxu1 %v8695_v9  ;;  %6752 = vmatprep.subr.bf16.mxu0 %v8763_v55 }
  0x3b   :  { %6772 = vmatprep.subr.bf16.mxu1 %v11848_v48 }
  0x3d   :  { %6754 = vmatpush1.bf16.msra.mxu0 %v8775_v1 }
  0x3e   :  { %6774 = vmatpush3.bf16.msra.mxu1 %v8723_v28  ;;  %6756 = vmatprep.subr.bf16.mxu0 %v8790_v13 }
  0x3f   :  { %6775 = vmatprep.subr.bf16.mxu1 %v11848_v48 }
  0x41   :  { %6758 = vmatpush1.bf16.msra.mxu0 %v8808_v32 }
  0x42   :  { %6777 = vmatpush3.bf16.msra.mxu1 %v8751_v47  ;;  %6760 = vmatprep.subr.bf16.mxu0 %v8814_v38 }
  0x43   :  { %6778 = vmatprep.subr.bf16.mxu1 %v11848_v48 }
  0x45   :  { %6762 = vmatpush1.bf16.msra.mxu0 %v8836_v59 }
  0x46   :  { %6780 = vmatpush3.bf16.msra.mxu1 %v8777_v4  ;;  %6788 = vmatprep.subr.bf16.mxu0 %v8842_v5  ;;  %v8877_v5 = vrot.slane %v49_v20, %v11856_v18 }
  0x47   :  { %6781 = vmatprep.subr.bf16.mxu1 %v11848_v48 }
  0x4a   :  { %6783 = vmatpush3.bf16.msra.mxu1 %v8812_v36 }
  0x4b   :  { %6784 = vmatprep.subr.bf16.mxu1 %v11848_v48 }
  0x4e   :  { %6786 = vmatpush3.bf16.msra.mxu1 %v8840_v60 }
  0x4f   :  { %6819 = vmatprep.subr.bf16.mxu1 %v11848_v48 }
  0xe2   :  { %v5817_v27 = vpop.f32.mrb[0].mxu1 }
  0xe3   :  { %v8857_v30 = vadd.f32 %v5817_v27, %v62_v24  ;;  %v270_v39 = vpop.f32.mrb[1].mxu1  ;;  %v978_v27 = vsel %vm977_vm2, 1, %v11853_v49 }
  0xe4   :  { %980 = vperm.xlu0 %8087, %v978_v27   ;;  %v11858_v27 = vsub.s32 1, %v8849_v11 }
  0xe5   :  { %11960 = vst [vmem:[#allocation7_spill] sm:$0xff] %v8857_v30 }
  0xe6   :  { %v8889_v18 = vrot.slane %v49_v20, %v11858_v27  ;;  %v271_v20 = vadd.f32 %v270_v39, %v62_v24 }
  0xea   :  { %v5820_v44 = vpop.f32.mrb[2].mxu1 }
  0xeb   :  { %v8866_v54 = vadd.f32 %v5820_v44, %v62_v24  ;;  %v280_v58 = vpop.f32.mrb[3].mxu1 }
  0xec   :  { %v8869_v7 = vadd.f32 %v280_v58, %v62_v24 }
  0xed   :  { %11962 = vst [vmem:[#allocation9_spill] sm:$0xff] %v8866_v54 }
  0xee   :  { %11963 = vst [vmem:[#allocation10_spill] sm:$0xff] %v8869_v7 }
  0xf2   :  { %v5823_v3 = vpop.f32.mrb[4].mxu1 }
  0xf3   :  { %v8873_v48 = vadd.f32 %v5823_v3, %v62_v24  ;;  %v290_v30 = vpop.f32.mrb[5].mxu1 }
  0xf4   :  { %v8879_v44 = vadd.f32 %v290_v30, %v62_v24 }
  0xf5   :  { %11964 = vst [vmem:[#allocation11_spill] sm:$0xff] %v8873_v48 }
  0xf6   :  { %11965 = vst [vmem:[#allocation12_spill] sm:$0xff] %v8879_v44 }
  0xf7   :  { %v5826_v54 = vpop.f32.mrb[6].mxu1 }
  0xf8   :  { %v8881_v52 = vadd.f32 %v5826_v54, %v62_v24  ;;  %v300_v58 = vpop.f32.mrb[7].mxu1 }
  0xf9   :  { %v8885_v59 = vadd.f32 %v300_v58, %v62_v24  ;;  %v766_v24 = vld [vmem:[%s11838_s7 + $0x28] sm:$0xff] }
  0xfa   :  { %11966 = vst [vmem:[#allocation13_spill] sm:$0xff] %v8881_v52 }
  0xfb   :  { %v454_v60 = vpop.f32.mrb[0].mxu0  ;;  %11967 = vst [vmem:[#allocation14_spill] sm:$0xff] %v8885_v59 }
  0xfc   :  { %v8019_v49 = vadd.f32 %v454_v60, %v8877_v5  ;;  %v456_v7 = vpop.f32.mrb[1].mxu0  ;;  %v8895_v60 = vld [vmem:[%s11841_s5] ss:$0 sm:$0xff] }
  0xfd   :  { %v8020_v30 = vadd.f32 %v456_v7, %v8889_v18  ;;  %11968 = vst [vmem:[#allocation15_spill] sm:$0xff] %v8895_v60 }
  0xfe   :  { %v5352_v3 = vmul.f32 -1.442695, %v8019_v49 }
  0xff   :  { %v5353_v54 = vmul.f32 -1.442695, %v8020_v30  ;;  %v764_v30 = vld [vmem:[%s11838_s7 + $0x18] sm:$0xff] }
 0x100   :  { %8089 = vpow2.f32 %v5352_v3 }
 0x101   :  { %8091 = vpow2.f32 %v5353_v54 }
 0x104   :  { %v525_v48 = vpop.f32.mrb[8].mxu1 }
 0x105   :  { %v5861_v44 = vpop.f32.mrb[9].mxu1  ;;  %v549_v49 = vadd.f32 %v8895_v60, %v525_v48  ;;  %v763_v48 = vld [vmem:[%s11838_s7 + $0x10] sm:$0xff]  ;;  %v770_v60 = vld [vmem:[%s11838_s7 + $0x48] sm:$0xff] }
 0x10a   :  { %v8090_v52 = vpop.eup %8089 }
 0x10b   :  { %v533_v38 = vadd.f32 1.0, %v8090_v52  ;;  %v8092_v58 = vpop.eup %8091 }
 0x10c   :  { %v540_v59 = vadd.f32 1.0, %v8092_v58  ;;  %v8918_v58 = vpack.c.bf16 %v766_v24, %v763_v48 }
 0x10d   :  { %8093 = vrcp.f32 %v533_v38  ;;  %v761_v38 = vld [vmem:[%s11838_s7] sm:$0xff] }
 0x10e   :  { %11970 = vst [vmem:[#allocation17_spill] sm:$0xff] %v8918_v58 }
 0x117   :  { %v8094_v3 = vpop.eup %8093 }
 0x118   :  { %v550_v27 = vmul.f32 %v8094_v3, %v549_v49  ;;  %v8916_v49 = vpack.c.bf16 %v764_v30, %v761_v38  ;;  %v767_v3 = vld [vmem:[%s11838_s7 + $0x30] sm:$0xff]  ;;  %v772_v38 = vld [vmem:[%s11838_s7 + $0x58] sm:$0xff]  ;;  %v774_v30 = vld [vmem:[%s11838_s7 + $0x68] sm:$0xff] }
 0x119   :  { %v8946_v48 = vpack.c.bf16 %v770_v60, %v767_v3  ;;  %v775_v60 = vld [vmem:[%s11838_s7 + $0x70] sm:$0xff]  ;;  %v778_v3 = vld [vmem:[%s11838_s7 + $0x88] sm:$0xff] }
 0x11a   :  { %v551_v7 = vadd.f32 %v550_v27, %v271_v20  ;;  %v771_v27 = vld [vmem:[%s11838_s7 + $0x50] sm:$0xff]  ;;  %11969 = vst [vmem:[#allocation16_spill] sm:$0xff] %v8916_v49 }
 0x11b   :  { %11972 = vst [vmem:[#allocation19_spill] sm:$0xff] %v8946_v48 }
 0x11c   :  { %8095 = vtanh.f32 %v551_v7 }
 0x11d   :  { %8097 = vrcp.f32 %v540_v59  ;;  %v768_v59 = vld [vmem:[%s11838_s7 + $0x38] sm:$0xff] }
 0x11e   :  { %v8925_v7 = vpack.c.bf16 %v771_v27, %v768_v59  ;;  %v11974_v59 = vmov 0.0|0.0  }
 0x120   :  { %11971 = vst [vmem:[#allocation18_spill] sm:$0xff] %v8925_v7 }
 0x126   :  { %v8096_v44 = vpop.eup %8095 }
 0x127   :  { %v553_v52 = vsub.f32 0.0, %v8096_v44  ;;  %v8098_v39 = vpop.eup %8097 }
 0x129   :  { %v554_v54 = vmul.f32 %v8098_v39, %v553_v52  ;;  %v769_v52 = vld [vmem:[%s11838_s7 + $0x40] sm:$0xff] }
 0x12a   :  { %v8948_v24 = vpack.c.bf16 %v772_v38, %v769_v52  ;;  %v773_v39 = vld [vmem:[%s11838_s7 + $0x60] sm:$0xff]  ;;  %v780_v52 = vld [vmem:[%s11838_s7 + $0x98] sm:$0xff]  ;;  %v783_v38 = vld [vmem:[%s11838_s7 + $0xb0] sm:$0xff] }
 0x12b   :  { %v8923_v20 = vadd.f32 %v8096_v44, %v554_v54  ;;  %v777_v44 = vld [vmem:[%s11838_s7 + $0x80] sm:$0xff]  ;;  %v776_v54 = vld [vmem:[%s11838_s7 + $0x78] sm:$0xff] }
 0x12c   :  { %11973 = vst [vmem:[#allocation20_spill] sm:$0xff] %v8948_v24  ;;  %v8955_v27 = vpack.c.bf16 %v777_v44, %v774_v30  ;;  %v11976_v30 = vmov 0.0   ;;  %v8977_v44 = vpack.c.bf16 %v776_v54, %v773_v39  ;;  %v781_v39 = vld [vmem:[%s11838_s7 + $0xa0] sm:$0xff]  ;;  %v784_v54 = vld [vmem:[%s11838_s7 + $0xb8] sm:$0xff] }
 0x12d   :  { %685 = vmatmul.mubr.f32.vlgmr.msra.gmra.mrb[16].mxu0 %v8923_v20  ;;  %5895 = vmatmul.mubr.f32.vlgmr.msra.gmra.mrb[10].mxu1 %v8923_v20 }
 0x12e   :  { %6790 = vmatpush1.bf16.msra.mxu0 %v8916_v49  ;;  %6821 = vmatpush3.bf16.msra.mxu1 %v8918_v58  ;;  %11975 = vst [vmem:[#allocation21_spill] sm:$0xff] %v8955_v27  ;;  %11977 = vst [vmem:[#allocation22_spill] sm:$0xff] %v8977_v44  ;;  %v779_v58 = vld [vmem:[%s11838_s7 + $0x90] sm:$0xff]  ;;  %v8986_v49 = vpack.c.bf16 %v783_v38, %v780_v52  ;;  %v9007_v38 = vpack.c.bf16 %v784_v54, %v781_v39  ;;  %v792_v39 = vld [vmem:[%s11838_s7 + $0xf8] sm:$0xff] }
 0x12f   :  { %6792 = vmatprep.subr.bf16.mxu0 %v8925_v7  ;;  %6822 = vmatprep.subr.bf16.mxu1 %v11974_v59  ;;  %v8979_v7 = vpack.c.bf16 %v778_v3, %v775_v60  ;;  %v786_v60 = vld [vmem:[%s11838_s7 + $0xc8] sm:$0xff]  ;;  %v789_v3 = vld [vmem:[%s11838_s7 + $0xe0] sm:$0xff]  ;;  %v795_v54 = vld [vmem:[%s11838_s7 + $0x110] sm:$0xff] }
 0x130   :  { %873 = vmatprep.mubr.f32.mxu0 %v11976_v30  ;;  %5929 = vmatprep.mubr.msk.f32.mxu1 %vm8260_vm1, %v11976_v30  ;;  %11979 = vst [vmem:[#allocation24_spill] sm:$0xff] %v8986_v49  ;;  %11981 = vst [vmem:[#allocation26_spill] sm:$0xff] %v9007_v38 }
 0x131   :  { %11978 = vst [vmem:[#allocation23_spill] sm:$0xff] %v8979_v7 }
 0x132   :  { %6794 = vmatpush1.bf16.msra.mxu0 %v8946_v48  ;;  %6824 = vmatpush3.bf16.msra.mxu1 %v8948_v24  ;;  %v782_v48 = vld [vmem:[%s11838_s7 + $0xa8] sm:$0xff]  ;;  %v9014_v24 = vpack.c.bf16 %v789_v3, %v786_v60 }
 0x133   :  { %6796 = vmatprep.subr.bf16.mxu0 %v8955_v27  ;;  %6825 = vmatprep.subr.bf16.mxu1 %v11974_v59  ;;  %v9005_v52 = vpack.c.bf16 %v782_v48, %v779_v58  ;;  %v785_v27 = vld [vmem:[%s11838_s7 + $0xc0] sm:$0xff]  ;;  %v787_v58 = vld [vmem:[%s11838_s7 + $0xd0] sm:$0xff]  ;;  %v790_v48 = vld [vmem:[%s11838_s7 + $0xe8] sm:$0xff] }
 0x134   :  { %11982 = vst [vmem:[#allocation27_spill] sm:$0xff] %v9014_v24  ;;  %v9035_v3 = vpack.c.bf16 %v790_v48, %v787_v58  ;;  %v798_v58 = vld [vmem:[%s11838_s7 + $0x128] sm:$0xff]  ;;  %v801_v48 = vld [vmem:[%s11838_s7 + $0x140] sm:$0xff] }
 0x135   :  { %11980 = vst [vmem:[#allocation25_spill] sm:$0xff] %v9005_v52 }
 0x136   :  { %6798 = vmatpush1.bf16.msra.mxu0 %v8977_v44  ;;  %6827 = vmatpush3.bf16.msra.mxu1 %v8979_v7  ;;  %v788_v44 = vld [vmem:[%s11838_s7 + $0xd8] sm:$0xff]  ;;  %11984 = vst [vmem:[#allocation29_spill] sm:$0xff] %v9035_v3  ;;  %v9042_v7 = vpack.c.bf16 %v795_v54, %v792_v39 }
 0x137   :  { %6800 = vmatprep.subr.bf16.mxu0 %v8986_v49  ;;  %6828 = vmatprep.subr.bf16.mxu1 %v11974_v59  ;;  %v9033_v60 = vpack.c.bf16 %v788_v44, %v785_v27  ;;  %v791_v49 = vld [vmem:[%s11838_s7 + $0xf0] sm:$0xff]  ;;  %v793_v27 = vld [vmem:[%s11838_s7 + $0x100] sm:$0xff]  ;;  %v796_v44 = vld [vmem:[%s11838_s7 + $0x118] sm:$0xff] }
 0x138   :  { %11985 = vst [vmem:[#allocation30_spill] sm:$0xff] %v9042_v7  ;;  %v9063_v54 = vpack.c.bf16 %v796_v44, %v793_v27  ;;  %v804_v27 = vld [vmem:[%s11838_s7 + $0x158] sm:$0xff]  ;;  %v807_v44 = vld [vmem:[%s11838_s7 + $0x170] sm:$0xff] }
 0x139   :  { %11983 = vst [vmem:[#allocation28_spill] sm:$0xff] %v9033_v60 }
 0x13a   :  { %6802 = vmatpush1.bf16.msra.mxu0 %v9005_v52  ;;  %6830 = vmatpush3.bf16.msra.mxu1 %v9007_v38  ;;  %v794_v52 = vld [vmem:[%s11838_s7 + $0x108] sm:$0xff]  ;;  %v9070_v38 = vpack.c.bf16 %v801_v48, %v798_v58 }
 0x13b   :  { %6804 = vmatprep.subr.bf16.mxu0 %v9014_v24  ;;  %6831 = vmatprep.subr.bf16.mxu1 %v11974_v59  ;;  %v9061_v39 = vpack.c.bf16 %v794_v52, %v791_v49  ;;  %v797_v24 = vld [vmem:[%s11838_s7 + $0x120] sm:$0xff]  ;;  %v799_v49 = vld [vmem:[%s11838_s7 + $0x130] sm:$0xff]  ;;  %v802_v52 = vld [vmem:[%s11838_s7 + $0x148] sm:$0xff] }
 0x13c   :  { %v9091_v48 = vpack.c.bf16 %v802_v52, %v799_v49 }
 0x13d   :  { %11986 = vst [vmem:[#allocation31_spill] sm:$0xff] %v9061_v39 }
 0x13e   :  { %6806 = vmatpush1.bf16.msra.mxu0 %v9033_v60  ;;  %6833 = vmatpush3.bf16.msra.mxu1 %v9035_v3  ;;  %v800_v60 = vld [vmem:[%s11838_s7 + $0x138] sm:$0xff]  ;;  %v9098_v3 = vpack.c.bf16 %v807_v44, %v804_v27 }
 0x13f   :  { %6808 = vmatprep.subr.bf16.mxu0 %v9042_v7  ;;  %6834 = vmatprep.subr.bf16.mxu1 %v11974_v59  ;;  %v9089_v58 = vpack.c.bf16 %v800_v60, %v797_v24  ;;  %v803_v7 = vld [vmem:[%s11838_s7 + $0x150] sm:$0xff]  ;;  %v805_v24 = vld [vmem:[%s11838_s7 + $0x160] sm:$0xff]  ;;  %v808_v60 = vld [vmem:[%s11838_s7 + $0x178] sm:$0xff] }
 0x140   :  { %v9113_v52 = vpack.c.bf16 %v808_v60, %v805_v24 }
 0x142   :  { %6810 = vmatpush1.bf16.msra.mxu0 %v9061_v39  ;;  %6836 = vmatpush3.bf16.msra.mxu1 %v9063_v54  ;;  %v806_v39 = vld [vmem:[%s11838_s7 + $0x168] sm:$0xff] }
 0x143   :  { %6812 = vmatprep.subr.bf16.mxu0 %v9070_v38  ;;  %6837 = vmatprep.subr.bf16.mxu1 %v11974_v59  ;;  %v9111_v49 = vpack.c.bf16 %v806_v39, %v803_v7 }
 0x146   :  { %6814 = vmatpush1.bf16.msra.mxu0 %v9089_v58  ;;  %6839 = vmatpush3.bf16.msra.mxu1 %v9091_v48 }
 0x147   :  { %6816 = vmatprep.subr.bf16.mxu0 %v9098_v3  ;;  %6840 = vmatprep.subr.bf16.mxu1 %v11974_v59 }
 0x14a   :  { %6818 = vmatpush1.bf16.msra.mxu0 %v9111_v49  ;;  %6842 = vmatpush3.bf16.msra.mxu1 %v9113_v52 }
 0x14b   :  { %6844 = vmatprep.subr.bf16.mxu0 %v8346_v12  ;;  %6875 = vmatprep.subr.bf16.mxu1 %v11974_v59  ;;  %v11987_v12 = vld [vmem:[#allocation3_spill] sm:$0xff] }
 0x14d   :  { %874 = vmatmul.mubr.f32.vlgmr.msra.gmra.mrb[16].mxu0 %v11976_v30  ;;  %5930 = vmatmul.mubr.f32.vlgmr.msra.gmra.mrb[12].mxu1 %v11976_v30 }
 0x14e   :  { %6846 = vmatpush1.bf16.msra.mxu0 %v8354_v15  ;;  %6877 = vmatpush3.bf16.msra.mxu1 %v8430_v40  ;;  %v11988_v15 = vld [vmem:[#allocation4_spill] sm:$0xff]  ;;  %v11991_v40 = vsub.s32 0, %v8849_v11 }
 0x14f   :  { %6848 = vmatprep.subr.bf16.mxu0 %v8357_v16  ;;  %6878 = vmatprep.subr.bf16.mxu1 %v11974_v59  ;;  %v11989_v16 = vld [vmem:[#allocation5_spill] sm:$0xff] }
 0x150   :  { %1100 = vmatprep.mubr.f32.mxu0 %v11976_v30  ;;  %5964 = vmatprep.mubr.msk.f32.mxu1 %vm8260_vm1, %v11976_v30 }
 0x152   :  { %6850 = vmatpush1.bf16.msra.mxu0 %v8377_v22  ;;  %6880 = vmatpush3.bf16.msra.mxu1 %v8464_v51  ;;  %v11990_v22 = vld [vmem:[#allocation6_spill] sm:$0xff] }
 0x153   :  { %6852 = vmatprep.subr.bf16.mxu0 %v8380_v23  ;;  %6881 = vmatprep.subr.bf16.mxu1 %v11974_v59 }
 0x156   :  { %6854 = vmatpush1.bf16.msra.mxu0 %v8406_v31  ;;  %6883 = vmatpush3.bf16.msra.mxu1 %v8498_v61 }
 0x157   :  { %6856 = vmatprep.subr.bf16.mxu0 %v8409_v33  ;;  %6884 = vmatprep.subr.bf16.mxu1 %v11974_v59  ;;  %v335_v33 = vld [vmem:[%s11842_s8] sm:$0x7] }
 0x15a   :  { %6858 = vmatpush1.bf16.msra.mxu0 %v8437_v42  ;;  %6886 = vmatpush3.bf16.msra.mxu1 %v8532_v8  ;;  %v9200_v42 = vrot.slane %v335_v33, %v11991_v40 }
 0x15b   :  { %6860 = vmatprep.subr.bf16.mxu0 %v8446_v45  ;;  %6887 = vmatprep.subr.bf16.mxu1 %v11974_v59 }
 0x15c   :  { %11992 = vst [vmem:[#allocation3_spill] sm:$0xff] %v9200_v42 }
 0x15e   :  { %6862 = vmatpush1.bf16.msra.mxu0 %v8471_v53  ;;  %6889 = vmatpush3.bf16.msra.mxu1 %v8560_v19 }
 0x15f   :  { %6864 = vmatprep.subr.bf16.mxu0 %v8480_v56  ;;  %6890 = vmatprep.subr.bf16.mxu1 %v11974_v59 }
 0x162   :  { %6866 = vmatpush1.bf16.msra.mxu0 %v8505_v63  ;;  %6892 = vmatpush3.bf16.msra.mxu1 %v8580_v26  ;;  %v11995_v26 = vld [vmem:[#allocation8_spill] sm:$0xff] }
 0x163   :  { %6868 = vmatprep.subr.bf16.mxu0 %v8514_v2  ;;  %6893 = vmatprep.subr.bf16.mxu1 %v11974_v59  ;;  %v11993_v2 = vsub.s32 1, %v8849_v11  ;;  %vm1597_vm3 = vcmp.gt.s32.totalorder %v11995_v26, 1  ;;  %v12008_v26 = vld [vmem:[#allocation24_spill] sm:$0xff] }
 0x165   :  { %v9205_v8 = vrot.slane %v335_v33, %v11993_v2  ;;  %v12002_v2 = vld [vmem:[#allocation18_spill] sm:$0xff] }
 0x166   :  { %6870 = vmatpush1.bf16.msra.mxu0 %v8539_v10  ;;  %6895 = vmatpush3.bf16.msra.mxu1 %v8595_v29  ;;  %v11996_v29 = vmov 0  }
 0x167   :  { %6872 = vmatprep.subr.bf16.mxu0 %v8548_v14  ;;  %6896 = vmatprep.subr.bf16.mxu1 %v11974_v59  ;;  %11994 = vst [vmem:[#allocation4_spill] sm:$0xff] %v9205_v8 }
 0x16a   :  { %6874 = vmatpush1.bf16.msra.mxu0 %v8567_v21  ;;  %6898 = vmatpush3.bf16.msra.mxu1 %v8608_v34  ;;  %v1598_v34 = vsel %vm1597_vm3, 1, %v11996_v29 }
 0x16b   :  { %6900 = vmatprep.subr.bf16.mxu0 %v8622_v37  ;;  %6931 = vmatprep.subr.bf16.mxu1 %v11974_v59  ;;  %v9213_v37 = vld [vmem:[%s11843_s9] ss:$0 sm:$0xff] }
 0x16c   :  { %1600 = vperm.xlu0 %8087, %v1598_v34   ;;  %v12009_v34 = vld [vmem:[#allocation25_spill] sm:$0xff] }
 0x16d   :  { %1101 = vmatmul.mubr.f32.vlgmr.msra.gmra.mrb[2].mxu0 %v8923_v20  ;;  %5965 = vmatmul.mubr.f32.vlgmr.msra.gmra.mrb[14].mxu1 %v8923_v20 }
 0x16e   :  { %6902 = vmatpush1.bf16.msra.mxu0 %v8633_v43  ;;  %6933 = vmatpush3.bf16.msra.mxu1 %v8639_v46  ;;  %v11997_v43 = vsub.s32 2, %v8849_v11 }
 0x16f   :  { %6904 = vmatprep.subr.bf16.mxu0 %v8649_v50  ;;  %6934 = vmatprep.subr.bf16.mxu1 %v11974_v59 }
 0x170   :  { %1310 = vmatprep.mubr.f32.mxu0 %v11976_v30  ;;  %5999 = vmatprep.mubr.msk.f32.mxu1 %vm8260_vm1, %v11976_v30  ;;  %v9217_v46 = vrot.slane %v335_v33, %v11997_v43  ;;  %v12010_v43 = vld [vmem:[#allocation26_spill] sm:$0xff] }
 0x172   :  { %6906 = vmatpush1.bf16.msra.mxu0 %v8661_v57  ;;  %6936 = vmatpush3.bf16.msra.mxu1 %v8673_v62 }
 0x173   :  { %6908 = vmatprep.subr.bf16.mxu0 %v8675_v0  ;;  %6937 = vmatprep.subr.bf16.mxu1 %v11974_v59 }
 0x176   :  { %6910 = vmatpush1.bf16.msra.mxu0 %v8690_v6  ;;  %6939 = vmatpush3.bf16.msra.mxu1 %v8695_v9 }
 0x177   :  { %6912 = vmatprep.subr.bf16.mxu0 %v8705_v17  ;;  %6940 = vmatprep.subr.bf16.mxu1 %v11974_v59 }
 0x17a   :  { %6914 = vmatpush1.bf16.msra.mxu0 %v8717_v25  ;;  %6942 = vmatpush3.bf16.msra.mxu1 %v8723_v28 }
 0x17b   :  { %6916 = vmatprep.subr.bf16.mxu0 %v8733_v35  ;;  %6943 = vmatprep.subr.bf16.mxu1 %v11974_v59 }
 0x17e   :  { %6918 = vmatpush1.bf16.msra.mxu0 %v8745_v41  ;;  %6945 = vmatpush3.bf16.msra.mxu1 %v8751_v47 }
 0x17f   :  { %6920 = vmatprep.subr.bf16.mxu0 %v8763_v55  ;;  %6946 = vmatprep.subr.bf16.mxu1 %v11974_v59 }
 0x182   :  { %6922 = vmatpush1.bf16.msra.mxu0 %v8775_v1  ;;  %6948 = vmatpush3.bf16.msra.mxu1 %v8777_v4 }
 0x183   :  { %6924 = vmatprep.subr.bf16.mxu0 %v8790_v13  ;;  %6949 = vmatprep.subr.bf16.mxu1 %v11974_v59  ;;  %v981_v13 = vpop.permute.xlu0 %980 }
 0x184   :  { %vm982_vm4 = vcmp.eq.s32.totalorder %v981_v13, 1  ;;  %v1625_v13 = vld [vmem:[%s11836_s3 + $0x80] sm:$0xff] }
 0x186   :  { %6926 = vmatpush1.bf16.msra.mxu0 %v8808_v32  ;;  %6951 = vmatpush3.bf16.msra.mxu1 %v8812_v36 }
 0x187   :  { %6928 = vmatprep.subr.bf16.mxu0 %v11987_v12  ;;  %6952 = vmatprep.subr.bf16.mxu1 %v11974_v59  ;;  %v11998_v12 = vld [vmem:[#allocation15_spill] sm:$0xff] }
 0x18a   :  { %6930 = vmatpush1.bf16.msra.mxu0 %v11988_v15  ;;  %6954 = vmatpush3.bf16.msra.mxu1 %v11989_v16 }
 0x18b   :  { %6956 = vmatprep.subr.bf16.mxu0 %v11990_v22  ;;  %6987 = vmatprep.subr.bf16.mxu1 %v11974_v59 }
 0x200   :  { %v757_v23 = vpop.f32.mrb[10].mxu1 }
 0x201   :  { %v5896_v31 = vpop.f32.mrb[11].mxu1  ;;  %v758_v0 = vadd.f32 %v757_v23, %v9217_v46  ;;  %v11999_v23 = vld [vmem:[#allocation7_spill] sm:$0xff] }
 0x220   :  { %v875_v45 = vpop.f32.mrb[16].mxu0  ;;  %v946_v51 = vpop.f32.mrb[12].mxu1 }
 0x221   :  { %v8035_v53 = vadd.f32 %v875_v45, %v9200_v42  ;;  %v877_v56 = vpop.f32.mrb[17].mxu0  ;;  %v5931_v61 = vpop.f32.mrb[13].mxu1  ;;  %v970_v50 = vadd.f32 %v9213_v37, %v946_v51 }
 0x222   :  { %v8036_v10 = vadd.f32 %v877_v56, %v9205_v8  ;;  %v12000_v61 = vld [vmem:[#allocation16_spill] sm:$0xff] }
 0x223   :  { %v5355_v63 = vmul.f32 -1.442695, %v8035_v53 }
 0x224   :  { %v5356_v14 = vmul.f32 -1.442695, %v8036_v10  ;;  %v12004_v10 = vld [vmem:[#allocation20_spill] sm:$0xff] }
 0x225   :  { %8099 = vpow2.f32 %v5355_v63  ;;  %v12001_v63 = vld [vmem:[#allocation17_spill] sm:$0xff] }
 0x226   :  { %8101 = vpow2.f32 %v5356_v14  ;;  %v12005_v14 = vld [vmem:[#allocation21_spill] sm:$0xff] }
 0x22f   :  { %v8100_v19 = vpop.eup %8099 }
 0x230   :  { %v954_v21 = vadd.f32 1.0, %v8100_v19  ;;  %v8102_v57 = vpop.eup %8101  ;;  %v12006_v19 = vld [vmem:[#allocation22_spill] sm:$0xff] }
 0x231   :  { %v961_v9 = vadd.f32 1.0, %v8102_v57  ;;  %v12012_v57 = vld [vmem:[#allocation28_spill] sm:$0xff] }
 0x232   :  { %8103 = vrcp.f32 %v954_v21  ;;  %v12007_v21 = vld [vmem:[#allocation23_spill] sm:$0xff] }
 0x23c   :  { %v8104_v62 = vpop.eup %8103 }
 0x23d   :  { %v971_v6 = vmul.f32 %v8104_v62, %v970_v50  ;;  %v12011_v50 = vld [vmem:[#allocation27_spill] sm:$0xff]  ;;  %v12013_v62 = vld [vmem:[#allocation29_spill] sm:$0xff] }
 0x23f   :  { %v972_v17 = vadd.f32 %v971_v6, %v758_v0  ;;  %v12014_v0 = vld [vmem:[#allocation30_spill] sm:$0xff]  ;;  %v12015_v6 = vld [vmem:[#allocation31_spill] sm:$0xff] }
 0x240   :  { %v1102_v25 = vpop.f32.mrb[2].mxu0  ;;  %v1173_v28 = vpop.f32.mrb[14].mxu1 }
 0x241   :  { %8105 = vtanh.f32 %v972_v17  ;;  %v8021_v35 = vadd.f32 %v1102_v25, %v8877_v5  ;;  %v1104_v41 = vpop.f32.mrb[3].mxu0  ;;  %v5966_v47 = vpop.f32.mrb[15].mxu1  ;;  %v1191_v15 = vadd.f32 %v11998_v12, %v1173_v28  ;;  %v1613_v17 = vld [vmem:[%s11836_s3 + $0x20] sm:$0xff]  ;;  %v1612_v25 = vld [vmem:[%s11836_s3 + $0x18] sm:$0xff]  ;;  %v1619_v28 = vld [vmem:[%s11836_s3 + $0x50] sm:$0xff] }
 0x242   :  { %8107 = vrcp.f32 %v961_v9  ;;  %v8022_v1 = vadd.f32 %v1104_v41, %v8889_v18  ;;  %v1610_v9 = vld [vmem:[%s11836_s3 + $0x8] sm:$0xff]  ;;  %v1615_v47 = vld [vmem:[%s11836_s3 + $0x30] sm:$0xff] }
 0x243   :  { %v5358_v55 = vmul.f32 -1.442695, %v8021_v35  ;;  %v1631_v12 = vld [vmem:[%s11836_s3 + $0xb0] sm:$0xff] }
 0x244   :  { %v5359_v11 = vmul.f32 -1.442695, %v8022_v1  ;;  %v1620_v1 = vld [vmem:[%s11836_s3 + $0x58] sm:$0xff] }
 0x245   :  { %8109 = vpow2.f32 %v5358_v55 }
 0x246   :  { %8111 = vpow2.f32 %v5359_v11  ;;  %v1621_v11 = vld [vmem:[%s11836_s3 + $0x60] sm:$0xff] }
 0x24b   :  { %v8106_v4 = vpop.eup %8105 }
 0x24c   :  { %v974_v32 = vsub.f32 0.0, %v8106_v4  ;;  %v8108_v36 = vpop.eup %8107 }
 0x24e   :  { %v975_v7 = vmul.f32 %v8108_v36, %v974_v32 }
 0x24f   :  { %v8110_v39 = vpop.eup %8109 }
 0x250   :  { %v1181_v27 = vadd.f32 1.0, %v8110_v39  ;;  %v9223_v44 = vadd.f32 %v8106_v4, %v975_v7  ;;  %v8112_v60 = vpop.eup %8111  ;;  %v1622_v4 = vld [vmem:[%s11836_s3 + $0x68] sm:$0xff]  ;;  %v1624_v39 = vld [vmem:[%s11836_s3 + $0x78] sm:$0xff] }
 0x251   :  { %v1188_v33 = vadd.f32 1.0, %v8112_v60  ;;  %v9334_v7 = vpack.c.bf16 %v1625_v13, %v1622_v4  ;;  %v1628_v60 = vld [vmem:[%s11836_s3 + $0x98] sm:$0xff]  ;;  %v1651_v4 = vld [vmem:[%s11836_s3 + $0x150] sm:$0xff] }
 0x252   :  { %8113 = vrcp.f32 %v1181_v27  ;;  %v983_v24 = vsel %vm982_vm4, %v9223_v44, 0.0  ;;  %v1623_v27 = vld [vmem:[%s11836_s3 + $0x70] sm:$0xff] }
 0x253   :  { %984 = vst [vmem:[%s11844_s10] sm:$0xff] %v983_v24  ;;  %v1626_v24 = vld [vmem:[%s11836_s3 + $0x88] sm:$0xff] }
 0x25c   :  { %v8114_v16 = vpop.eup %8113 }
 0x25d   :  { %v1192_v22 = vmul.f32 %v8114_v16, %v1191_v15  ;;  %v9356_v15 = vpack.c.bf16 %v1624_v39, %v1621_v11  ;;  %v9358_v16 = vpack.c.bf16 %v1626_v24, %v1623_v27  ;;  %v1654_v11 = vld [vmem:[%s11836_s3 + $0x168] sm:$0xff]  ;;  %v1653_v39 = vld [vmem:[%s11836_s3 + $0x160] sm:$0xff]  ;;  %v1656_v27 = vld [vmem:[%s11836_s3 + $0x178] sm:$0xff] }
 0x25e   :  { %v9490_v24 = vpack.c.bf16 %v1654_v11, %v1651_v4  ;;  %v1836_v4 = vld [vmem:[%s11837_s6 + $0x88] sm:$0xff] }
 0x25f   :  { %v1193_v31 = vadd.f32 %v1192_v22, %v11999_v23  ;;  %v1627_v22 = vld [vmem:[%s11836_s3 + $0x90] sm:$0xff]  ;;  %v9365_v23 = vpack.c.bf16 %v1631_v12, %v1628_v60  ;;  %v9492_v60 = vpack.c.bf16 %v1656_v27, %v1653_v39  ;;  %v1820_v12 = vld [vmem:[%s11837_s6 + $0x8] sm:$0xff]  ;;  %v1838_v39 = vld [vmem:[%s11837_s6 + $0x98] sm:$0xff] }
 0x260   :  { %v1841_v27 = vld [vmem:[%s11837_s6 + $0xb0] sm:$0xff] }
 0x261   :  { %8115 = vtanh.f32 %v1193_v31  ;;  %v1630_v31 = vld [vmem:[%s11836_s3 + $0xa8] sm:$0xff] }
 0x262   :  { %8117 = vrcp.f32 %v1188_v33  ;;  %v1629_v33 = vld [vmem:[%s11836_s3 + $0xa0] sm:$0xff] }
 0x26b   :  { %v8116_v40 = vpop.eup %8115 }
 0x26c   :  { %v1195_v45 = vsub.f32 %v8923_v20, %v8116_v40  ;;  %v8118_v51 = vpop.eup %8117  ;;  %v12003_v20 = vld [vmem:[#allocation19_spill] sm:$0xff] }
 0x26e   :  { %v1196_v53 = vmul.f32 %v8118_v51, %v1195_v45  ;;  %v1634_v45 = vld [vmem:[%s11836_s3 + $0xc8] sm:$0xff]  ;;  %v1637_v51 = vld [vmem:[%s11836_s3 + $0xe0] sm:$0xff] }
 0x270   :  { %v9232_v56 = vadd.f32 %v8116_v40, %v1196_v53  ;;  %v1632_v40 = vld [vmem:[%s11836_s3 + $0xb8] sm:$0xff]  ;;  %v9384_v53 = vpack.c.bf16 %v1630_v31, %v1627_v22  ;;  %v1823_v22 = vld [vmem:[%s11837_s6 + $0x20] sm:$0xff] }
 0x271   :  { %v9510_v31 = vpack.c.bf16 %v1823_v22, %v1820_v12  ;;  %v9593_v12 = vpack.c.bf16 %v1841_v27, %v1838_v39  ;;  %v1837_v22 = vld [vmem:[%s11837_s6 + $0x90] sm:$0xff] }
 0x272   :  { %1311 = vmatmul.mubr.f32.vlgmr.msra.gmra.mrb[18].mxu0 %v9232_v56  ;;  %6000 = vmatmul.mubr.f32.vlgmr.msra.gmra.mrb[16].mxu1 %v9232_v56  ;;  %v1849_v39 = vld [vmem:[%s11837_s6 + $0xf0] sm:$0xff] }
 0x273   :  { %6958 = vmatpush1.bf16.msra.mxu0 %v12000_v61  ;;  %6989 = vmatpush3.bf16.msra.mxu1 %v12001_v63  ;;  %v9386_v61 = vpack.c.bf16 %v1632_v40, %v1629_v33  ;;  %v1633_v63 = vld [vmem:[%s11836_s3 + $0xc0] sm:$0xff]  ;;  %v1822_v40 = vld [vmem:[%s11837_s6 + $0x18] sm:$0xff] }
 0x274   :  { %6960 = vmatprep.subr.bf16.mxu0 %v12002_v2  ;;  %6990 = vmatprep.subr.bf16.mxu1 %v11974_v59  ;;  %v9393_v2 = vpack.c.bf16 %v1637_v51, %v1634_v45  ;;  %v1819_v33 = vld [vmem:[%s11837_s6] sm:$0xff]  ;;  %v1821_v45 = vld [vmem:[%s11837_s6 + $0x10] sm:$0xff] }
 0x275   :  { %1499 = vmatprep.mubr.f32.mxu0 %v11976_v30  ;;  %6034 = vmatprep.mubr.msk.f32.mxu1 %vm8260_vm1, %v11976_v30  ;;  %v9521_v51 = vpack.c.bf16 %v1822_v40, %v1819_v33  ;;  %v1840_v33 = vld [vmem:[%s11837_s6 + $0xa8] sm:$0xff]  ;;  %v1839_v40 = vld [vmem:[%s11837_s6 + $0xa0] sm:$0xff] }
 0x277   :  { %6962 = vmatpush1.bf16.msra.mxu0 %v12003_v20  ;;  %6992 = vmatpush3.bf16.msra.mxu1 %v12004_v10  ;;  %v1636_v20 = vld [vmem:[%s11836_s3 + $0xd8] sm:$0xff]  ;;  %v1635_v10 = vld [vmem:[%s11836_s3 + $0xd0] sm:$0xff] }
 0x278   :  { %6964 = vmatprep.subr.bf16.mxu0 %v12005_v14  ;;  %6993 = vmatprep.subr.bf16.mxu1 %v11974_v59  ;;  %v1638_v14 = vld [vmem:[%s11836_s3 + $0xe8] sm:$0xff] }
 0x27b   :  { %6966 = vmatpush1.bf16.msra.mxu0 %v12006_v19  ;;  %6995 = vmatpush3.bf16.msra.mxu1 %v12007_v21  ;;  %v1640_v19 = vld [vmem:[%s11836_s3 + $0xf8] sm:$0xff]  ;;  %v1643_v21 = vld [vmem:[%s11836_s3 + $0x110] sm:$0xff] }
 0x27c   :  { %6968 = vmatprep.subr.bf16.mxu0 %v12008_v26  ;;  %6996 = vmatprep.subr.bf16.mxu1 %v11974_v59  ;;  %v9412_v26 = vpack.c.bf16 %v1636_v20, %v1633_v63  ;;  %v1824_v63 = vld [vmem:[%s11837_s6 + $0x28] sm:$0xff] }
 0x27d   :  { %v9527_v20 = vpack.c.bf16 %v1824_v63, %v1821_v45  ;;  %v9605_v45 = vpack.c.bf16 %v1840_v33, %v1837_v22  ;;  %v1842_v63 = vld [vmem:[%s11837_s6 + $0xb8] sm:$0xff]  ;;  %v1852_v22 = vld [vmem:[%s11837_s6 + $0x108] sm:$0xff]  ;;  %v1851_v33 = vld [vmem:[%s11837_s6 + $0x100] sm:$0xff] }
 0x27f   :  { %6970 = vmatpush1.bf16.msra.mxu0 %v12009_v34  ;;  %6998 = vmatpush3.bf16.msra.mxu1 %v12010_v43  ;;  %v9414_v34 = vpack.c.bf16 %v1638_v14, %v1635_v10  ;;  %v1639_v43 = vld [vmem:[%s11836_s3 + $0xf0] sm:$0xff]  ;;  %v1826_v10 = vld [vmem:[%s11837_s6 + $0x38] sm:$0xff] }
 0x280   :  { %6972 = vmatprep.subr.bf16.mxu0 %v12011_v50  ;;  %6999 = vmatprep.subr.bf16.mxu1 %v11974_v59  ;;  %v9421_v50 = vpack.c.bf16 %v1643_v21, %v1640_v19  ;;  %v1829_v14 = vld [vmem:[%s11837_s6 + $0x50] sm:$0xff] }
 0x281   :  { %v9537_v19 = vpack.c.bf16 %v1829_v14, %v1826_v10  ;;  %v1825_v21 = vld [vmem:[%s11837_s6 + $0x30] sm:$0xff]  ;;  %v9611_v10 = vpack.c.bf16 %v1842_v63, %v1839_v40  ;;  %v1844_v14 = vld [vmem:[%s11837_s6 + $0xc8] sm:$0xff]  ;;  %v1854_v40 = vld [vmem:[%s11837_s6 + $0x118] sm:$0xff]  ;;  %v9663_v63 = vpack.c.bf16 %v1852_v22, %v1849_v39 }
 0x282   :  { %v1862_v39 = vld [vmem:[%s11837_s6 + $0x158] sm:$0xff]  ;;  %v1865_v22 = vld [vmem:[%s11837_s6 + $0x170] sm:$0xff] }
 0x283   :  { %6974 = vmatpush1.bf16.msra.mxu0 %v12012_v57  ;;  %7001 = vmatpush3.bf16.msra.mxu1 %v12013_v62  ;;  %v1642_v57 = vld [vmem:[%s11836_s3 + $0x108] sm:$0xff]  ;;  %v1641_v62 = vld [vmem:[%s11836_s3 + $0x100] sm:$0xff]  ;;  %12017 = vst [vmem:[#allocation6_spill] sm:$0xff] %v9663_v63 }
 0x284   :  { %6976 = vmatprep.subr.bf16.mxu0 %v12014_v0  ;;  %7002 = vmatprep.subr.bf16.mxu1 %v11974_v59  ;;  %v1644_v0 = vld [vmem:[%s11836_s3 + $0x118] sm:$0xff] }
 0x287   :  { %6978 = vmatpush1.bf16.msra.mxu0 %v12015_v6  ;;  %7004 = vmatpush3.bf16.msra.mxu1 %v9063_v54  ;;  %v1609_v54 = vld [vmem:[%s11836_s3] sm:$0xff]  ;;  %v1646_v6 = vld [vmem:[%s11836_s3 + $0x128] sm:$0xff] }
 0x288   :  { %6980 = vmatprep.subr.bf16.mxu0 %v9070_v38  ;;  %7005 = vmatprep.subr.bf16.mxu1 %v11974_v59  ;;  %v9276_v38 = vpack.c.bf16 %v1613_v17, %v1610_v9  ;;  %v9295_v35 = vpack.c.bf16 %v1612_v25, %v1609_v54  ;;  %v1649_v9 = vld [vmem:[%s11836_s3 + $0x140] sm:$0xff]  ;;  %v9440_v17 = vpack.c.bf16 %v1642_v57, %v1639_v43  ;;  %v1828_v43 = vld [vmem:[%s11837_s6 + $0x48] sm:$0xff] }
 0x289   :  { %v9442_v54 = vpack.c.bf16 %v1644_v0, %v1641_v62  ;;  %v1645_v25 = vld [vmem:[%s11836_s3 + $0x120] sm:$0xff]  ;;  %v9549_v62 = vpack.c.bf16 %v1828_v43, %v1825_v21  ;;  %v1830_v0 = vld [vmem:[%s11837_s6 + $0x58] sm:$0xff] }
 0x28a   :  { %v1827_v57 = vld [vmem:[%s11837_s6 + $0x40] sm:$0xff] }
 0x28b   :  { %6982 = vmatpush1.bf16.msra.mxu0 %v9089_v58  ;;  %7007 = vmatpush3.bf16.msra.mxu1 %v9091_v48  ;;  %v1611_v58 = vld [vmem:[%s11836_s3 + $0x10] sm:$0xff]  ;;  %v1614_v48 = vld [vmem:[%s11836_s3 + $0x28] sm:$0xff]  ;;  %v1847_v21 = vld [vmem:[%s11837_s6 + $0xe0] sm:$0xff] }
 0x28c   :  { %6984 = vmatprep.subr.bf16.mxu0 %v9098_v3  ;;  %7008 = vmatprep.subr.bf16.mxu1 %v11974_v59  ;;  %v1616_v3 = vld [vmem:[%s11836_s3 + $0x38] sm:$0xff]  ;;  %v9297_v41 = vpack.c.bf16 %v1614_v48, %v1611_v58  ;;  %v9449_v58 = vpack.c.bf16 %v1649_v9, %v1646_v6  ;;  %v9555_v6 = vpack.c.bf16 %v1830_v0, %v1827_v57  ;;  %v1832_v9 = vld [vmem:[%s11837_s6 + $0x68] sm:$0xff]  ;;  %v1843_v57 = vld [vmem:[%s11837_s6 + $0xc0] sm:$0xff] }
 0x28d   :  { %v9304_v55 = vpack.c.bf16 %v1619_v28, %v1616_v3  ;;  %v1648_v48 = vld [vmem:[%s11836_s3 + $0x138] sm:$0xff]  ;;  %v1647_v3 = vld [vmem:[%s11836_s3 + $0x130] sm:$0xff]  ;;  %v1650_v28 = vld [vmem:[%s11836_s3 + $0x148] sm:$0xff]  ;;  %v9621_v43 = vpack.c.bf16 %v1847_v21, %v1844_v14  ;;  %v9665_v14 = vpack.c.bf16 %v1854_v40, %v1851_v33 }
 0x28e   :  { %v1846_v0 = vld [vmem:[%s11837_s6 + $0xd8] sm:$0xff]  ;;  %v1856_v21 = vld [vmem:[%s11837_s6 + $0x128] sm:$0xff] }
 0x28f   :  { %6986 = vmatpush1.bf16.msra.mxu0 %v9111_v49  ;;  %7010 = vmatpush3.bf16.msra.mxu1 %v9113_v52  ;;  %v1618_v49 = vld [vmem:[%s11836_s3 + $0x48] sm:$0xff]  ;;  %v1617_v52 = vld [vmem:[%s11836_s3 + $0x40] sm:$0xff]  ;;  %12018 = vst [vmem:[#allocation8_spill] sm:$0xff] %v9665_v14 }
 0x290   :  { %7012 = vmatprep.subr.bf16.mxu0 %v9276_v38  ;;  %7043 = vmatprep.subr.bf16.mxu1 %v11974_v59  ;;  %v9325_v32 = vpack.c.bf16 %v1618_v49, %v1615_v47  ;;  %v9327_v36 = vpack.c.bf16 %v1620_v1, %v1617_v52  ;;  %v1652_v47 = vld [vmem:[%s11836_s3 + $0x158] sm:$0xff]  ;;  %v1655_v49 = vld [vmem:[%s11836_s3 + $0x170] sm:$0xff]  ;;  %v9468_v52 = vpack.c.bf16 %v1648_v48, %v1645_v25  ;;  %v1835_v25 = vld [vmem:[%s11837_s6 + $0x80] sm:$0xff] }
 0x291   :  { %v9470_v1 = vpack.c.bf16 %v1650_v28, %v1647_v3  ;;  %v9477_v13 = vpack.c.bf16 %v1655_v49, %v1652_v47  ;;  %v9565_v48 = vpack.c.bf16 %v1835_v25, %v1832_v9  ;;  %v1831_v3 = vld [vmem:[%s11837_s6 + $0x60] sm:$0xff]  ;;  %v1834_v28 = vld [vmem:[%s11837_s6 + $0x78] sm:$0xff]  ;;  %v1833_v47 = vld [vmem:[%s11837_s6 + $0x70] sm:$0xff]  ;;  %v9633_v25 = vpack.c.bf16 %v1846_v0, %v1843_v57 }
 0x292   :  { %1500 = vmatmul.mubr.f32.vlgmr.msra.gmra.mrb[18].mxu0 %v9223_v44  ;;  %6035 = vmatmul.mubr.f32.vlgmr.msra.gmra.mrb[18].mxu1 %v9223_v44  ;;  %v9577_v49 = vpack.c.bf16 %v1834_v28, %v1831_v3  ;;  %v9583_v11 = vpack.c.bf16 %v1836_v4, %v1833_v47  ;;  %v1845_v9 = vld [vmem:[%s11837_s6 + $0xd0] sm:$0xff]  ;;  %v1848_v3 = vld [vmem:[%s11837_s6 + $0xe8] sm:$0xff]  ;;  %v1850_v47 = vld [vmem:[%s11837_s6 + $0xf8] sm:$0xff] }
 0x293   :  { %7014 = vmatpush1.bf16.msra.mxu0 %v9295_v35  ;;  %7045 = vmatpush3.bf16.msra.mxu1 %v9297_v41  ;;  %v9639_v28 = vpack.c.bf16 %v1848_v3, %v1845_v9  ;;  %v1853_v4 = vld [vmem:[%s11837_s6 + $0x110] sm:$0xff]  ;;  %v1859_v57 = vld [vmem:[%s11837_s6 + $0x140] sm:$0xff]  ;;  %v1858_v3 = vld [vmem:[%s11837_s6 + $0x138] sm:$0xff] }
 0x294   :  { %7016 = vmatprep.subr.bf16.mxu0 %v9304_v55  ;;  %7046 = vmatprep.subr.bf16.mxu1 %v11974_v59  ;;  %v9651_v27 = vpack.c.bf16 %v1853_v4, %v1850_v47  ;;  %v1855_v0 = vld [vmem:[%s11837_s6 + $0x120] sm:$0xff]  ;;  %v9678_v9 = vpack.c.bf16 %v1859_v57, %v1856_v21  ;;  %v1857_v47 = vld [vmem:[%s11837_s6 + $0x130] sm:$0xff]  ;;  %v1860_v4 = vld [vmem:[%s11837_s6 + $0x148] sm:$0xff]  ;;  %v9702_v21 = vpack.c.bf16 %v1865_v22, %v1862_v39 }
 0x295   :  { %1721 = vmatprep.mubr.f32.mxu0 %v11976_v30  ;;  %6069 = vmatprep.mubr.msk.f32.mxu1 %vm8260_vm1, %v11976_v30  ;;  %v9696_v33 = vpack.c.bf16 %v1858_v3, %v1855_v0  ;;  %v9700_v40 = vpack.c.bf16 %v1860_v4, %v1857_v47  ;;  %v1861_v57 = vld [vmem:[%s11837_s6 + $0x150] sm:$0xff]  ;;  %v1863_v0 = vld [vmem:[%s11837_s6 + $0x160] sm:$0xff]  ;;  %v1866_v3 = vld [vmem:[%s11837_s6 + $0x178] sm:$0xff] }
 0x296   :  { %12016 = vst [vmem:[#allocation5_spill] sm:$0xff] %v9651_v27  ;;  %12019 = vst [vmem:[#allocation15_spill] sm:$0xff] %v9678_v9  ;;  %v2009_v47 = vld [vmem:[%s11838_s7 + $0x8] sm:$0xff]  ;;  %v2012_v4 = vld [vmem:[%s11838_s7 + $0x20] sm:$0xff]  ;;  %v9728_v22 = vpack.c.bf16 %v1866_v3, %v1863_v0 }
 0x297   :  { %7018 = vmatpush1.bf16.msra.mxu0 %v9325_v32  ;;  %7048 = vmatpush3.bf16.msra.mxu1 %v9327_v36  ;;  %12020 = vst [vmem:[#allocation7_spill] sm:$0xff] %v9696_v33  ;;  %12021 = vst [vmem:[#allocation16_spill] sm:$0xff] %v9700_v40 }
 0x298   :  { %7020 = vmatprep.subr.bf16.mxu0 %v9334_v7  ;;  %7049 = vmatprep.subr.bf16.mxu1 %v11974_v59  ;;  %12022 = vst [vmem:[#allocation17_spill] sm:$0xff] %v9702_v21  ;;  %12024 = vst [vmem:[#allocation19_spill] sm:$0xff] %v9728_v22 }
 0x29b   :  { %7022 = vmatpush1.bf16.msra.mxu0 %v9356_v15  ;;  %7051 = vmatpush3.bf16.msra.mxu1 %v9358_v16 }
 0x29c   :  { %7024 = vmatprep.subr.bf16.mxu0 %v9365_v23  ;;  %7052 = vmatprep.subr.bf16.mxu1 %v11974_v59 }
 0x29f   :  { %7026 = vmatpush1.bf16.msra.mxu0 %v9384_v53  ;;  %7054 = vmatpush3.bf16.msra.mxu1 %v9386_v61 }
 0x2a0   :  { %7028 = vmatprep.subr.bf16.mxu0 %v9393_v2  ;;  %7055 = vmatprep.subr.bf16.mxu1 %v11974_v59 }
 0x2a3   :  { %7030 = vmatpush1.bf16.msra.mxu0 %v9412_v26  ;;  %7057 = vmatpush3.bf16.msra.mxu1 %v9414_v34 }
 0x2a4   :  { %7032 = vmatprep.subr.bf16.mxu0 %v9421_v50  ;;  %7058 = vmatprep.subr.bf16.mxu1 %v11974_v59 }
 0x2a7   :  { %7034 = vmatpush1.bf16.msra.mxu0 %v9440_v17  ;;  %7060 = vmatpush3.bf16.msra.mxu1 %v9442_v54 }
 0x2a8   :  { %7036 = vmatprep.subr.bf16.mxu0 %v9449_v58  ;;  %7061 = vmatprep.subr.bf16.mxu1 %v11974_v59 }
 0x2ab   :  { %7038 = vmatpush1.bf16.msra.mxu0 %v9468_v52  ;;  %7063 = vmatpush3.bf16.msra.mxu1 %v9470_v1 }
 0x2ac   :  { %7040 = vmatprep.subr.bf16.mxu0 %v9477_v13  ;;  %7064 = vmatprep.subr.bf16.mxu1 %v11974_v59 }
 0x2af   :  { %7042 = vmatpush1.bf16.msra.mxu0 %v9490_v24  ;;  %7066 = vmatpush3.bf16.msra.mxu1 %v9492_v60 }
 0x2b0   :  { %7099 = vmatprep.subr.bf16.mxu1 %v11974_v59  ;;  %7068 = vmatprep.subr.bf16.mxu0 %v9510_v31 }
 0x2b2   :  { %1722 = vmatmul.mubr.f32.vlgmr.msra.gmra.mrb[4].mxu0 %v9232_v56  ;;  %6070 = vmatmul.mubr.f32.vlgmr.msra.gmra.mrb[20].mxu1 %v9232_v56 }
 0x2b3   :  { %1931 = vmatprep.mubr.f32.mxu0 %v11976_v30  ;;  %6104 = vmatprep.mubr.msk.f32.mxu1 %vm8260_vm1, %v11976_v30 }
 0x2b4   :  { %7070 = vmatpush1.bf16.msra.mxu0 %v9521_v51  ;;  %7101 = vmatpush3.bf16.msra.mxu1 %v9527_v20 }
 0x2b5   :  { %7102 = vmatprep.subr.bf16.mxu1 %v11974_v59  ;;  %7072 = vmatprep.subr.bf16.mxu0 %v9537_v19 }
 0x2b8   :  { %7074 = vmatpush1.bf16.msra.mxu0 %v9549_v62  ;;  %7104 = vmatpush3.bf16.msra.mxu1 %v9555_v6 }
 0x2b9   :  { %7105 = vmatprep.subr.bf16.mxu1 %v11974_v59  ;;  %7076 = vmatprep.subr.bf16.mxu0 %v9565_v48 }
 0x2bc   :  { %7078 = vmatpush1.bf16.msra.mxu0 %v9577_v49  ;;  %7107 = vmatpush3.bf16.msra.mxu1 %v9583_v11 }
 0x2bd   :  { %7108 = vmatprep.subr.bf16.mxu1 %v11974_v59  ;;  %7080 = vmatprep.subr.bf16.mxu0 %v9593_v12 }
 0x2c0   :  { %7082 = vmatpush1.bf16.msra.mxu0 %v9605_v45  ;;  %7110 = vmatpush3.bf16.msra.mxu1 %v9611_v10 }
 0x2c1   :  { %7111 = vmatprep.subr.bf16.mxu1 %v11974_v59  ;;  %7084 = vmatprep.subr.bf16.mxu0 %v9621_v43 }
 0x2c4   :  { %7086 = vmatpush1.bf16.msra.mxu0 %v9633_v25  ;;  %7113 = vmatpush3.bf16.msra.mxu1 %v9639_v28 }
 0x2c5   :  { %7088 = vmatprep.subr.bf16.mxu0 %v9651_v27  ;;  %7114 = vmatprep.subr.bf16.mxu1 %v11974_v59  ;;  %v1864_v27 = vld [vmem:[%s11837_s6 + $0x168] sm:$0xff] }
 0x2c6   :  { %v9724_v39 = vpack.c.bf16 %v1864_v27, %v1861_v57 }
 0x2c8   :  { %7090 = vmatpush1.bf16.msra.mxu0 %v9663_v63  ;;  %7116 = vmatpush3.bf16.msra.mxu1 %v9665_v14  ;;  %12023 = vst [vmem:[#allocation18_spill] sm:$0xff] %v9724_v39 }
 0x2c9   :  { %7092 = vmatprep.subr.bf16.mxu0 %v9678_v9  ;;  %7117 = vmatprep.subr.bf16.mxu1 %v11974_v59  ;;  %v9730_v9 = vpack.c.bf16 %v2012_v4, %v2009_v47 }
 0x2cb   :  { %12025 = vst [vmem:[#allocation20_spill] sm:$0xff] %v9730_v9 }
 0x2cc   :  { %7094 = vmatpush1.bf16.msra.mxu0 %v9696_v33  ;;  %7119 = vmatpush3.bf16.msra.mxu1 %v9700_v40 }
 0x2cd   :  { %7096 = vmatprep.subr.bf16.mxu0 %v9702_v21  ;;  %7120 = vmatprep.subr.bf16.mxu1 %v11974_v59 }
 0x2d0   :  { %7098 = vmatpush1.bf16.msra.mxu0 %v9724_v39  ;;  %7122 = vmatpush3.bf16.msra.mxu1 %v9728_v22 }
 0x2d1   :  { %7124 = vmatprep.subr.bf16.mxu0 %v9730_v9  ;;  %7155 = vmatprep.subr.bf16.mxu1 %v11974_v59  ;;  %v9742_v9 = vld [vmem:[%s11840_s1] sm:$0xff] }
 0x2d2   :  { %12026 = vst [vmem:[#allocation21_spill] sm:$0xff] %v9742_v9  ;;  %vm2218_vm5 = vcmp.gt.s32.totalorder %v9742_v9, 2 }
 0x345   :  { %v1383_v27 = vpop.f32.mrb[16].mxu1 }
 0x346   :  { %v6001_v57 = vpop.f32.mrb[17].mxu1 }
 0x365   :  { %v1501_v33 = vpop.f32.mrb[18].mxu0  ;;  %v1572_v40 = vpop.f32.mrb[18].mxu1 }
 0x366   :  { %v8037_v21 = vadd.f32 %v1501_v33, %v9200_v42  ;;  %v1503_v0 = vpop.f32.mrb[19].mxu0  ;;  %v6036_v3 = vpop.f32.mrb[19].mxu1  ;;  %v2219_v33 = vsel %vm2218_vm5, 1, %v11996_v29 }
 0x367   :  { %v8038_v4 = vadd.f32 %v1503_v0, %v9205_v8  ;;  %2221 = vperm.xlu1 %8088, %v2219_v33   ;;  %v1384_v0 = vadd.f32 %v1383_v27, %v9217_v46 }
 0x368   :  { %v5360_v47 = vmul.f32 -1.442695, %v8037_v21  ;;  %v1590_v21 = vadd.f32 %v9213_v37, %v1572_v40  ;;  %v1601_v37 = vpop.permute.xlu0 %1600 }
 0x369   :  { %v5361_v14 = vmul.f32 -1.442695, %v8038_v4  ;;  %vm1602_vm6 = vcmp.eq.s32.totalorder %v1601_v37, 1  ;;  %v2008_v37 = vld [vmem:[%s11838_s7] sm:$0xff] }
 0x36a   :  { %8119 = vpow2.f32 %v5360_v47 }
 0x36b   :  { %8121 = vpow2.f32 %v5361_v14 }
 0x374   :  { %v8120_v39 = vpop.eup %8119 }
 0x375   :  { %v1580_v63 = vadd.f32 1.0, %v8120_v39  ;;  %v8122_v57 = vpop.eup %8121 }
 0x376   :  { %v1587_v14 = vadd.f32 1.0, %v8122_v57 }
 0x377   :  { %8123 = vrcp.f32 %v1580_v63 }
 0x381   :  { %v8124_v3 = vpop.eup %8123 }
 0x382   :  { %v1591_v47 = vmul.f32 %v8124_v3, %v1590_v21 }
 0x384   :  { %v1592_v39 = vadd.f32 %v1591_v47, %v1384_v0 }
 0x385   :  { %v1723_v63 = vpop.f32.mrb[4].mxu0  ;;  %v1794_v4 = vpop.f32.mrb[20].mxu1 }
 0x386   :  { %8125 = vtanh.f32 %v1592_v39  ;;  %v8023_v8 = vadd.f32 %v1723_v63, %v8877_v5  ;;  %v1725_v42 = vpop.f32.mrb[5].mxu0  ;;  %v6071_v22 = vpop.f32.mrb[21].mxu1 }
 0x387   :  { %8127 = vrcp.f32 %v1587_v14  ;;  %v8024_v33 = vadd.f32 %v1725_v42, %v8889_v18 }
 0x388   :  { %v5363_v9 = vmul.f32 -1.442695, %v8023_v8  ;;  %v9760_v8 = vld [vmem:[%s11841_s5] ss:$0 sm:$0xff] }
 0x389   :  { %v5364_v21 = vmul.f32 -1.442695, %v8024_v33 }
 0x38a   :  { %8129 = vpow2.f32 %v5363_v9 }
 0x38b   :  { %8131 = vpow2.f32 %v5364_v21  ;;  %v2013_v21 = vld [vmem:[%s11838_s7 + $0x28] sm:$0xff] }
 0x390   :  { %v8126_v29 = vpop.eup %8125 }
 0x391   :  { %v1594_v40 = vsub.f32 %v9223_v44, %v8126_v29  ;;  %v8128_v27 = vpop.eup %8127  ;;  %v1812_v44 = vadd.f32 %v9760_v8, %v1794_v4  ;;  %v2010_v4 = vld [vmem:[%s11838_s7 + $0x10] sm:$0xff] }
 0x393   :  { %v1595_v3 = vmul.f32 %v8128_v27, %v1594_v40  ;;  %v2011_v27 = vld [vmem:[%s11838_s7 + $0x18] sm:$0xff] }
 0x394   :  { %v8130_v57 = vpop.eup %8129 }
 0x395   :  { %v1802_v0 = vadd.f32 1.0, %v8130_v57  ;;  %v9751_v47 = vadd.f32 %v8126_v29, %v1595_v3  ;;  %v8132_v42 = vpop.eup %8131  ;;  %v12027_v29 = vld [vmem:[#allocation10_spill] sm:$0xff] }
 0x396   :  { %v1809_v63 = vadd.f32 1.0, %v8132_v42  ;;  %v2015_v57 = vld [vmem:[%s11838_s7 + $0x38] sm:$0xff]  ;;  %v9785_v42 = vpack.c.bf16 %v2013_v21, %v2010_v4  ;;  %v2020_v4 = vld [vmem:[%s11838_s7 + $0x60] sm:$0xff] }
 0x397   :  { %8133 = vrcp.f32 %v1802_v0  ;;  %v1603_v22 = vsel %vm1602_vm6, %v9751_v47, 0.0 }
 0x398   :  { %5362 = vst [vmem:[%s11844_s10 + $0x8] sm:$0xff] %v1603_v22  ;;  %v9783_v22 = vpack.c.bf16 %v2011_v27, %v2008_v37  ;;  %v2021_v37 = vld [vmem:[%s11838_s7 + $0x68] sm:$0xff] }
 0x3a1   :  { %v8134_v9 = vpop.eup %8133 }
 0x3a2   :  { %v1813_v39 = vmul.f32 %v8134_v9, %v1812_v44  ;;  %v2014_v44 = vld [vmem:[%s11838_s7 + $0x30] sm:$0xff] }
 0x3a4   :  { %v1814_v14 = vadd.f32 %v1813_v39, %v12027_v29  ;;  %v2017_v29 = vld [vmem:[%s11838_s7 + $0x48] sm:$0xff] }
 0x3a6   :  { %8135 = vtanh.f32 %v1814_v14  ;;  %v2016_v14 = vld [vmem:[%s11838_s7 + $0x40] sm:$0xff] }
 0x3a7   :  { %8137 = vrcp.f32 %v1809_v63  ;;  %v2019_v63 = vld [vmem:[%s11838_s7 + $0x58] sm:$0xff] }
 0x3a8   :  { %v9815_v27 = vpack.c.bf16 %v2019_v63, %v2016_v14  ;;  %v2026_v63 = vld [vmem:[%s11838_s7 + $0x90] sm:$0xff] }
 0x3aa   :  { %12028 = vst [vmem:[#allocation22_spill] sm:$0xff] %v9815_v27 }
 0x3b0   :  { %v8136_v33 = vpop.eup %8135 }
 0x3b1   :  { %v1816_v40 = vsub.f32 %v9232_v56, %v8136_v33  ;;  %v8138_v3 = vpop.eup %8137  ;;  %v2018_v56 = vld [vmem:[%s11838_s7 + $0x50] sm:$0xff] }
 0x3b2   :  { %v9792_v39 = vpack.c.bf16 %v2018_v56, %v2015_v57  ;;  %v2022_v57 = vld [vmem:[%s11838_s7 + $0x70] sm:$0xff]  ;;  %v2025_v56 = vld [vmem:[%s11838_s7 + $0x88] sm:$0xff] }
 0x3b3   :  { %v1817_v0 = vmul.f32 %v8138_v3, %v1816_v40  ;;  %v9813_v40 = vpack.c.bf16 %v2017_v29, %v2014_v44  ;;  %v2023_v3 = vld [vmem:[%s11838_s7 + $0x78] sm:$0xff]  ;;  %v2030_v44 = vld [vmem:[%s11838_s7 + $0xb0] sm:$0xff]  ;;  %v9846_v14 = vpack.c.bf16 %v2025_v56, %v2022_v57  ;;  %v2033_v57 = vld [vmem:[%s11838_s7 + $0xc8] sm:$0xff] }
 0x3b4   :  { %v9844_v29 = vpack.c.bf16 %v2023_v3, %v2020_v4  ;;  %v2028_v4 = vld [vmem:[%s11838_s7 + $0xa0] sm:$0xff]  ;;  %v2031_v3 = vld [vmem:[%s11838_s7 + $0xb8] sm:$0xff] }
 0x3b5   :  { %v9790_v9 = vadd.f32 %v8136_v33, %v1817_v0  ;;  %v2024_v33 = vld [vmem:[%s11838_s7 + $0x80] sm:$0xff]  ;;  %v2027_v0 = vld [vmem:[%s11838_s7 + $0x98] sm:$0xff]  ;;  %12031 = vst [vmem:[#allocation25_spill] sm:$0xff] %v9846_v14 }
 0x3b6   :  { %v9822_v21 = vpack.c.bf16 %v2024_v33, %v2021_v37  ;;  %12030 = vst [vmem:[#allocation24_spill] sm:$0xff] %v9844_v29  ;;  %v9853_v37 = vpack.c.bf16 %v2030_v44, %v2027_v0  ;;  %v2029_v33 = vld [vmem:[%s11838_s7 + $0xa8] sm:$0xff]  ;;  %v2036_v56 = vld [vmem:[%s11838_s7 + $0xe0] sm:$0xff]  ;;  %v9874_v44 = vpack.c.bf16 %v2031_v3, %v2028_v4  ;;  %v2039_v4 = vld [vmem:[%s11838_s7 + $0xf8] sm:$0xff] }
 0x3b7   :  { %1932 = vmatmul.mubr.f32.vlgmr.msra.gmra.mrb[20].mxu0 %v9790_v9  ;;  %6105 = vmatmul.mubr.f32.vlgmr.msra.gmra.mrb[22].mxu1 %v9790_v9  ;;  %v9872_v0 = vpack.c.bf16 %v2029_v33, %v2026_v63  ;;  %v2034_v63 = vld [vmem:[%s11838_s7 + $0xd0] sm:$0xff]  ;;  %v2037_v33 = vld [vmem:[%s11838_s7 + $0xe8] sm:$0xff] }
 0x3b8   :  { %7126 = vmatpush1.bf16.msra.mxu0 %v9783_v22  ;;  %7157 = vmatpush3.bf16.msra.mxu1 %v9785_v42  ;;  %12029 = vst [vmem:[#allocation23_spill] sm:$0xff] %v9822_v21  ;;  %12032 = vst [vmem:[#allocation26_spill] sm:$0xff] %v9853_v37  ;;  %v2042_v3 = vld [vmem:[%s11838_s7 + $0x110] sm:$0xff] }
 0x3b9   :  { %7128 = vmatprep.subr.bf16.mxu0 %v9792_v39  ;;  %7158 = vmatprep.subr.bf16.mxu1 %v11974_v59  ;;  %12033 = vst [vmem:[#allocation27_spill] sm:$0xff] %v9872_v0  ;;  %12034 = vst [vmem:[#allocation28_spill] sm:$0xff] %v9874_v44 }
 0x3ba   :  { %2120 = vmatprep.mubr.f32.mxu0 %v11976_v30  ;;  %6139 = vmatprep.mubr.msk.f32.mxu1 %vm8260_vm1, %v11976_v30 }
 0x3bc   :  { %7130 = vmatpush1.bf16.msra.mxu0 %v9813_v40  ;;  %7160 = vmatpush3.bf16.msra.mxu1 %v9815_v27  ;;  %v9881_v27 = vpack.c.bf16 %v2036_v56, %v2033_v57  ;;  %v9902_v56 = vpack.c.bf16 %v2037_v33, %v2034_v63  ;;  %v2045_v63 = vld [vmem:[%s11838_s7 + $0x128] sm:$0xff]  ;;  %v2048_v33 = vld [vmem:[%s11838_s7 + $0x140] sm:$0xff] }
 0x3bd   :  { %7132 = vmatprep.subr.bf16.mxu0 %v9822_v21  ;;  %7161 = vmatprep.subr.bf16.mxu1 %v11974_v59  ;;  %v2032_v21 = vld [vmem:[%s11838_s7 + $0xc0] sm:$0xff] }
 0x3be   :  { %12035 = vst [vmem:[#allocation29_spill] sm:$0xff] %v9881_v27  ;;  %12037 = vst [vmem:[#allocation31_spill] sm:$0xff] %v9902_v56 }
 0x3c0   :  { %7134 = vmatpush1.bf16.msra.mxu0 %v9844_v29  ;;  %7163 = vmatpush3.bf16.msra.mxu1 %v9846_v14  ;;  %v2035_v29 = vld [vmem:[%s11838_s7 + $0xd8] sm:$0xff]  ;;  %v9909_v14 = vpack.c.bf16 %v2042_v3, %v2039_v4 }
 0x3c1   :  { %7136 = vmatprep.subr.bf16.mxu0 %v9853_v37  ;;  %7164 = vmatprep.subr.bf16.mxu1 %v11974_v59  ;;  %v9900_v57 = vpack.c.bf16 %v2035_v29, %v2032_v21  ;;  %v2038_v37 = vld [vmem:[%s11838_s7 + $0xf0] sm:$0xff]  ;;  %v2040_v21 = vld [vmem:[%s11838_s7 + $0x100] sm:$0xff]  ;;  %v2043_v29 = vld [vmem:[%s11838_s7 + $0x118] sm:$0xff] }
 0x3c2   :  { %12038 = vst [vmem:[#allocation10_spill] sm:$0xff] %v9909_v14  ;;  %v9930_v3 = vpack.c.bf16 %v2043_v29, %v2040_v21  ;;  %v2051_v21 = vld [vmem:[%s11838_s7 + $0x158] sm:$0xff]  ;;  %v2054_v29 = vld [vmem:[%s11838_s7 + $0x170] sm:$0xff] }
 0x3c3   :  { %12036 = vst [vmem:[#allocation30_spill] sm:$0xff] %v9900_v57 }
 0x3c4   :  { %7138 = vmatpush1.bf16.msra.mxu0 %v9872_v0  ;;  %7166 = vmatpush3.bf16.msra.mxu1 %v9874_v44  ;;  %v2041_v0 = vld [vmem:[%s11838_s7 + $0x108] sm:$0xff]  ;;  %v9937_v44 = vpack.c.bf16 %v2048_v33, %v2045_v63 }
 0x3c5   :  { %7140 = vmatprep.subr.bf16.mxu0 %v9881_v27  ;;  %7167 = vmatprep.subr.bf16.mxu1 %v11974_v59  ;;  %v9928_v4 = vpack.c.bf16 %v2041_v0, %v2038_v37  ;;  %v2044_v27 = vld [vmem:[%s11838_s7 + $0x120] sm:$0xff]  ;;  %v2046_v37 = vld [vmem:[%s11838_s7 + $0x130] sm:$0xff]  ;;  %v2049_v0 = vld [vmem:[%s11838_s7 + $0x148] sm:$0xff] }
 0x3c6   :  { %v9958_v33 = vpack.c.bf16 %v2049_v0, %v2046_v37 }
 0x3c7   :  { %12039 = vst [vmem:[#allocation32_spill] sm:$0xff] %v9928_v4 }
 0x3c8   :  { %7142 = vmatpush1.bf16.msra.mxu0 %v9900_v57  ;;  %7169 = vmatpush3.bf16.msra.mxu1 %v9902_v56  ;;  %v2047_v57 = vld [vmem:[%s11838_s7 + $0x138] sm:$0xff]  ;;  %v9965_v56 = vpack.c.bf16 %v2054_v29, %v2051_v21 }
 0x3c9   :  { %7144 = vmatprep.subr.bf16.mxu0 %v9909_v14  ;;  %7170 = vmatprep.subr.bf16.mxu1 %v11974_v59  ;;  %v9956_v63 = vpack.c.bf16 %v2047_v57, %v2044_v27  ;;  %v2050_v14 = vld [vmem:[%s11838_s7 + $0x150] sm:$0xff]  ;;  %v2052_v27 = vld [vmem:[%s11838_s7 + $0x160] sm:$0xff]  ;;  %v2055_v57 = vld [vmem:[%s11838_s7 + $0x178] sm:$0xff] }
 0x3ca   :  { %v9980_v0 = vpack.c.bf16 %v2055_v57, %v2052_v27 }
 0x3cc   :  { %7146 = vmatpush1.bf16.msra.mxu0 %v9928_v4  ;;  %7172 = vmatpush3.bf16.msra.mxu1 %v9930_v3  ;;  %v2053_v4 = vld [vmem:[%s11838_s7 + $0x168] sm:$0xff] }
 0x3cd   :  { %7148 = vmatprep.subr.bf16.mxu0 %v9937_v44  ;;  %7173 = vmatprep.subr.bf16.mxu1 %v11974_v59  ;;  %v9978_v37 = vpack.c.bf16 %v2053_v4, %v2050_v14 }
 0x3d0   :  { %7150 = vmatpush1.bf16.msra.mxu0 %v9956_v63  ;;  %7175 = vmatpush3.bf16.msra.mxu1 %v9958_v33 }
 0x3d1   :  { %7152 = vmatprep.subr.bf16.mxu0 %v9965_v56  ;;  %7176 = vmatprep.subr.bf16.mxu1 %v11974_v59 }
 0x3d4   :  { %7154 = vmatpush1.bf16.msra.mxu0 %v9978_v37  ;;  %7178 = vmatpush3.bf16.msra.mxu1 %v9980_v0 }
 0x3d5   :  { %7180 = vmatprep.subr.bf16.mxu0 %v9276_v38  ;;  %7211 = vmatprep.subr.bf16.mxu1 %v11974_v59  ;;  %v12040_v38 = vld [vmem:[#allocation5_spill] sm:$0xff] }
 0x3d7   :  { %2121 = vmatmul.mubr.f32.vlgmr.msra.gmra.mrb[20].mxu0 %v9751_v47  ;;  %6140 = vmatmul.mubr.f32.vlgmr.msra.gmra.mrb[24].mxu1 %v9751_v47 }
 0x3d8   :  { %7182 = vmatpush1.bf16.msra.mxu0 %v9295_v35  ;;  %7213 = vmatpush3.bf16.msra.mxu1 %v9297_v41  ;;  %v12041_v35 = vld [vmem:[#allocation6_spill] sm:$0xff]  ;;  %v12042_v41 = vld [vmem:[#allocation8_spill] sm:$0xff] }
 0x3d9   :  { %7184 = vmatprep.subr.bf16.mxu0 %v9304_v55  ;;  %7214 = vmatprep.subr.bf16.mxu1 %v11974_v59  ;;  %v12043_v55 = vld [vmem:[#allocation15_spill] sm:$0xff] }
 0x3da   :  { %2342 = vmatprep.mubr.f32.mxu0 %v11976_v30  ;;  %6174 = vmatprep.mubr.msk.f32.mxu1 %vm8260_vm1, %v11976_v30 }
 0x3dc   :  { %7186 = vmatpush1.bf16.msra.mxu0 %v9325_v32  ;;  %7216 = vmatpush3.bf16.msra.mxu1 %v9327_v36  ;;  %v12044_v32 = vld [vmem:[#allocation7_spill] sm:$0xff]  ;;  %v12045_v36 = vld [vmem:[#allocation16_spill] sm:$0xff] }
 0x3dd   :  { %7188 = vmatprep.subr.bf16.mxu0 %v9334_v7  ;;  %7217 = vmatprep.subr.bf16.mxu1 %v11974_v59  ;;  %v12046_v7 = vld [vmem:[#allocation17_spill] sm:$0xff] }
 0x3e0   :  { %7190 = vmatpush1.bf16.msra.mxu0 %v9356_v15  ;;  %7219 = vmatpush3.bf16.msra.mxu1 %v9358_v16  ;;  %v12047_v15 = vld [vmem:[#allocation18_spill] sm:$0xff]  ;;  %v12048_v16 = vld [vmem:[#allocation19_spill] sm:$0xff] }
 0x3e1   :  { %7192 = vmatprep.subr.bf16.mxu0 %v9365_v23  ;;  %7220 = vmatprep.subr.bf16.mxu1 %v11974_v59  ;;  %v12049_v23 = vld [vmem:[#allocation20_spill] sm:$0xff] }
 0x3e4   :  { %7194 = vmatpush1.bf16.msra.mxu0 %v9384_v53  ;;  %7222 = vmatpush3.bf16.msra.mxu1 %v9386_v61 }
 0x3e5   :  { %7196 = vmatprep.subr.bf16.mxu0 %v9393_v2  ;;  %7223 = vmatprep.subr.bf16.mxu1 %v11974_v59 }
 0x3e6   :  { %v2222_v27 = vpop.permute.xlu1 %2221 }
 0x3e7   :  { %vm2223_vm8 = vcmp.eq.s32.totalorder %v2222_v27, 1  ;;  %v2866_v27 = vld [vmem:[%s11836_s3 + $0x78] sm:$0xff] }
 0x3e8   :  { %7198 = vmatpush1.bf16.msra.mxu0 %v9412_v26  ;;  %7225 = vmatpush3.bf16.msra.mxu1 %v9414_v34  ;;  %v12050_v34 = vld [vmem:[#allocation3_spill] sm:$0xff] }
 0x3e9   :  { %7200 = vmatprep.subr.bf16.mxu0 %v9421_v50  ;;  %7226 = vmatprep.subr.bf16.mxu1 %v11974_v59 }
 0x3ec   :  { %7202 = vmatpush1.bf16.msra.mxu0 %v9440_v17  ;;  %7228 = vmatpush3.bf16.msra.mxu1 %v9442_v54 }
 0x3ed   :  { %7204 = vmatprep.subr.bf16.mxu0 %v9449_v58  ;;  %7229 = vmatprep.subr.bf16.mxu1 %v11974_v59 }
 0x3f0   :  { %7206 = vmatpush1.bf16.msra.mxu0 %v9468_v52  ;;  %7231 = vmatpush3.bf16.msra.mxu1 %v9470_v1  ;;  %v12051_v52 = vld [vmem:[#allocation4_spill] sm:$0xff] }
 0x3f1   :  { %7208 = vmatprep.subr.bf16.mxu0 %v9477_v13  ;;  %7232 = vmatprep.subr.bf16.mxu1 %v11974_v59 }
 0x3f4   :  { %7210 = vmatpush1.bf16.msra.mxu0 %v9490_v24  ;;  %7234 = vmatpush3.bf16.msra.mxu1 %v9492_v60 }
 0x3f5   :  { %7236 = vmatprep.subr.bf16.mxu0 %v9510_v31  ;;  %7267 = vmatprep.subr.bf16.mxu1 %v11974_v59  ;;  %v12052_v31 = vld [vmem:[#allocation21_spill] sm:$0xff] }
 0x3f6   :  { %vm2839_vm7 = vcmp.gt.s32.totalorder %v12052_v31, 3  ;;  %v12065_v31 = vld [vmem:[#allocation10_spill] sm:$0xff] }
 0x3f7   :  { %2343 = vmatmul.mubr.f32.vlgmr.msra.gmra.mrb[6].mxu0 %v9790_v9  ;;  %6175 = vmatmul.mubr.f32.vlgmr.msra.gmra.mrb[26].mxu1 %v9790_v9 }
 0x3f8   :  { %7238 = vmatpush1.bf16.msra.mxu0 %v9521_v51  ;;  %7269 = vmatpush3.bf16.msra.mxu1 %v9527_v20  ;;  %v12053_v51 = vmov 0  }
 0x3f9   :  { %7240 = vmatprep.subr.bf16.mxu0 %v9537_v19  ;;  %7270 = vmatprep.subr.bf16.mxu1 %v11974_v59  ;;  %v2840_v20 = vsel %vm2839_vm7, 1, %v12053_v51 }
 0x3fa   :  { %2552 = vmatprep.mubr.f32.mxu0 %v11976_v30  ;;  %6209 = vmatprep.mubr.msk.f32.mxu1 %vm8260_vm1, %v11976_v30 }
 0x3fb   :  { %2842 = vperm.xlu1 %8088, %v2840_v20   ;;  %v12066_v20 = vld [vmem:[#allocation32_spill] sm:$0xff] }
 0x3fc   :  { %7242 = vmatpush1.bf16.msra.mxu0 %v9549_v62  ;;  %7272 = vmatpush3.bf16.msra.mxu1 %v9555_v6  ;;  %v10069_v62 = vld [vmem:[%s11843_s9] ss:$0 sm:$0xff] }
 0x3fd   :  { %7244 = vmatprep.subr.bf16.mxu0 %v9565_v48  ;;  %7273 = vmatprep.subr.bf16.mxu1 %v11974_v59 }
 0x400   :  { %7246 = vmatpush1.bf16.msra.mxu0 %v9577_v49  ;;  %7275 = vmatpush3.bf16.msra.mxu1 %v9583_v11 }
 0x401   :  { %7248 = vmatprep.subr.bf16.mxu0 %v9593_v12  ;;  %7276 = vmatprep.subr.bf16.mxu1 %v11974_v59 }
 0x404   :  { %7250 = vmatpush1.bf16.msra.mxu0 %v9605_v45  ;;  %7278 = vmatpush3.bf16.msra.mxu1 %v9611_v10 }
 0x405   :  { %7252 = vmatprep.subr.bf16.mxu0 %v9621_v43  ;;  %7279 = vmatprep.subr.bf16.mxu1 %v11974_v59 }
 0x408   :  { %7254 = vmatpush1.bf16.msra.mxu0 %v9633_v25  ;;  %7281 = vmatpush3.bf16.msra.mxu1 %v9639_v28 }
 0x409   :  { %7256 = vmatprep.subr.bf16.mxu0 %v12040_v38  ;;  %7282 = vmatprep.subr.bf16.mxu1 %v11974_v59 }
 0x40c   :  { %7258 = vmatpush1.bf16.msra.mxu0 %v12041_v35  ;;  %7284 = vmatpush3.bf16.msra.mxu1 %v12042_v41 }
 0x40d   :  { %7260 = vmatprep.subr.bf16.mxu0 %v12043_v55  ;;  %7285 = vmatprep.subr.bf16.mxu1 %v11974_v59 }
 0x410   :  { %7262 = vmatpush1.bf16.msra.mxu0 %v12044_v32  ;;  %7287 = vmatpush3.bf16.msra.mxu1 %v12045_v36 }
 0x411   :  { %7264 = vmatprep.subr.bf16.mxu0 %v12046_v7  ;;  %7288 = vmatprep.subr.bf16.mxu1 %v11974_v59 }
 0x414   :  { %7266 = vmatpush1.bf16.msra.mxu0 %v12047_v15  ;;  %7290 = vmatpush3.bf16.msra.mxu1 %v12048_v16 }
 0x415   :  { %7292 = vmatprep.subr.bf16.mxu0 %v12049_v23  ;;  %7323 = vmatprep.subr.bf16.mxu1 %v11974_v59 }
 0x48a   :  { %v2004_v53 = vpop.f32.mrb[22].mxu1 }
 0x48b   :  { %v6106_v61 = vpop.f32.mrb[23].mxu1  ;;  %v2005_v49 = vadd.f32 %v2004_v53, %v9217_v46  ;;  %v12054_v53 = vld [vmem:[#allocation9_spill] sm:$0xff] }
 0x4aa   :  { %v2122_v2 = vpop.f32.mrb[20].mxu0  ;;  %v2193_v26 = vpop.f32.mrb[24].mxu1 }
 0x4ab   :  { %v8039_v50 = vadd.f32 %v2122_v2, %v12050_v34  ;;  %v2124_v17 = vpop.f32.mrb[21].mxu0  ;;  %v6141_v54 = vpop.f32.mrb[25].mxu1  ;;  %v2211_v6 = vadd.f32 %v10069_v62, %v2193_v26 }
 0x4ac   :  { %v8040_v1 = vadd.f32 %v2124_v17, %v12051_v52 }
 0x4ad   :  { %v5365_v58 = vmul.f32 -1.442695, %v8039_v50 }
 0x4ae   :  { %v5366_v13 = vmul.f32 -1.442695, %v8040_v1  ;;  %v12060_v1 = vld [vmem:[#allocation27_spill] sm:$0xff] }
 0x4af   :  { %8139 = vpow2.f32 %v5365_v58 }
 0x4b0   :  { %8141 = vpow2.f32 %v5366_v13  ;;  %v12061_v13 = vld [vmem:[#allocation28_spill] sm:$0xff] }
 0x4b9   :  { %v8140_v24 = vpop.eup %8139 }
 0x4ba   :  { %v2201_v60 = vadd.f32 1.0, %v8140_v24  ;;  %v8142_v19 = vpop.eup %8141  ;;  %v12062_v24 = vld [vmem:[#allocation29_spill] sm:$0xff] }
 0x4bb   :  { %v2208_v45 = vadd.f32 1.0, %v8142_v19  ;;  %v2852_v19 = vld [vmem:[%s11836_s3 + $0x8] sm:$0xff] }
 0x4bc   :  { %8143 = vrcp.f32 %v2201_v60  ;;  %v12064_v60 = vld [vmem:[#allocation31_spill] sm:$0xff] }
 0x4c6   :  { %v8144_v48 = vpop.eup %8143 }
 0x4c7   :  { %v2212_v11 = vmul.f32 %v8144_v48, %v2211_v6  ;;  %v2855_v6 = vld [vmem:[%s11836_s3 + $0x20] sm:$0xff]  ;;  %v2854_v48 = vld [vmem:[%s11836_s3 + $0x18] sm:$0xff] }
 0x4c9   :  { %v2213_v12 = vadd.f32 %v2212_v11, %v2005_v49  ;;  %v2861_v49 = vld [vmem:[%s11836_s3 + $0x50] sm:$0xff] }
 0x4ca   :  { %v2344_v10 = vpop.f32.mrb[6].mxu0  ;;  %v2415_v43 = vpop.f32.mrb[26].mxu1 }
 0x4cb   :  { %8145 = vtanh.f32 %v2213_v12  ;;  %v8025_v25 = vadd.f32 %v2344_v10, %v8877_v5  ;;  %v2346_v28 = vpop.f32.mrb[7].mxu0  ;;  %v6176_v14 = vpop.f32.mrb[27].mxu1  ;;  %v2433_v16 = vadd.f32 %v9760_v8, %v2415_v43  ;;  %v12055_v8 = vld [vmem:[#allocation22_spill] sm:$0xff] }
 0x4cc   :  { %8147 = vrcp.f32 %v2208_v45  ;;  %v8026_v21 = vadd.f32 %v2346_v28, %v8889_v18  ;;  %v2857_v45 = vld [vmem:[%s11836_s3 + $0x30] sm:$0xff]  ;;  %v2862_v43 = vld [vmem:[%s11836_s3 + $0x58] sm:$0xff]  ;;  %v2867_v28 = vld [vmem:[%s11836_s3 + $0x80] sm:$0xff] }
 0x4cd   :  { %v5368_v4 = vmul.f32 -1.442695, %v8025_v25  ;;  %v2864_v25 = vld [vmem:[%s11836_s3 + $0x68] sm:$0xff] }
 0x4ce   :  { %v5369_v35 = vmul.f32 -1.442695, %v8026_v21  ;;  %v2863_v21 = vld [vmem:[%s11836_s3 + $0x60] sm:$0xff] }
 0x4cf   :  { %8149 = vpow2.f32 %v5368_v4 }
 0x4d0   :  { %8151 = vpow2.f32 %v5369_v35  ;;  %v2870_v35 = vld [vmem:[%s11836_s3 + $0x98] sm:$0xff] }
 0x4d5   :  { %v8146_v29 = vpop.eup %8145 }
 0x4d6   :  { %v2215_v57 = vsub.f32 %v9751_v47, %v8146_v29  ;;  %v8148_v38 = vpop.eup %8147 }
 0x4d8   :  { %v2216_v41 = vmul.f32 %v8148_v38, %v2215_v57  ;;  %v2865_v57 = vld [vmem:[%s11836_s3 + $0x70] sm:$0xff]  ;;  %v2868_v38 = vld [vmem:[%s11836_s3 + $0x88] sm:$0xff] }
 0x4d9   :  { %v8150_v55 = vpop.eup %8149 }
 0x4da   :  { %v2423_v32 = vadd.f32 1.0, %v8150_v55  ;;  %v10076_v36 = vadd.f32 %v8146_v29, %v2216_v41  ;;  %v8152_v15 = vpop.eup %8151  ;;  %v10187_v29 = vpack.c.bf16 %v2867_v28, %v2864_v25  ;;  %v2873_v41 = vld [vmem:[%s11836_s3 + $0xb0] sm:$0xff]  ;;  %v10209_v55 = vpack.c.bf16 %v2866_v27, %v2863_v21  ;;  %v2896_v21 = vld [vmem:[%s11836_s3 + $0x168] sm:$0xff]  ;;  %v2895_v27 = vld [vmem:[%s11836_s3 + $0x160] sm:$0xff] }
 0x4db   :  { %v2430_v2 = vadd.f32 1.0, %v8152_v15  ;;  %v10218_v15 = vpack.c.bf16 %v2873_v41, %v2870_v35  ;;  %v2893_v25 = vld [vmem:[%s11836_s3 + $0x150] sm:$0xff]  ;;  %v3062_v41 = vld [vmem:[%s11837_s6 + $0x8] sm:$0xff] }
 0x4dc   :  { %8153 = vrcp.f32 %v2423_v32  ;;  %v2224_v7 = vsel %vm2223_vm8, %v10076_v36, 0.0  ;;  %v10211_v32 = vpack.c.bf16 %v2868_v38, %v2865_v57  ;;  %v2898_v57 = vld [vmem:[%s11836_s3 + $0x178] sm:$0xff]  ;;  %v10343_v38 = vpack.c.bf16 %v2896_v21, %v2893_v25  ;;  %v3078_v25 = vld [vmem:[%s11837_s6 + $0x88] sm:$0xff] }
 0x4dd   :  { %5367 = vst [vmem:[%s11844_s10 + $0x10] sm:$0xff] %v2224_v7  ;;  %v2869_v7 = vld [vmem:[%s11836_s3 + $0x90] sm:$0xff]  ;;  %v10345_v35 = vpack.c.bf16 %v2898_v57, %v2895_v27  ;;  %v3080_v27 = vld [vmem:[%s11837_s6 + $0x98] sm:$0xff] }
 0x4de   :  { %v3083_v57 = vld [vmem:[%s11837_s6 + $0xb0] sm:$0xff] }
 0x4e6   :  { %v8154_v47 = vpop.eup %8153 }
 0x4e7   :  { %v2434_v23 = vmul.f32 %v8154_v47, %v2433_v16  ;;  %v2872_v16 = vld [vmem:[%s11836_s3 + $0xa8] sm:$0xff]  ;;  %v2871_v47 = vld [vmem:[%s11836_s3 + $0xa0] sm:$0xff] }
 0x4e9   :  { %v2435_v61 = vadd.f32 %v2434_v23, %v12054_v53  ;;  %v2874_v23 = vld [vmem:[%s11836_s3 + $0xb8] sm:$0xff]  ;;  %v2876_v53 = vld [vmem:[%s11836_s3 + $0xc8] sm:$0xff] }
 0x4eb   :  { %8155 = vtanh.f32 %v2435_v61  ;;  %v2879_v61 = vld [vmem:[%s11836_s3 + $0xe0] sm:$0xff] }
 0x4ec   :  { %8157 = vrcp.f32 %v2430_v2  ;;  %v10237_v2 = vpack.c.bf16 %v2872_v16, %v2869_v7  ;;  %v3065_v7 = vld [vmem:[%s11837_s6 + $0x20] sm:$0xff] }
 0x4ed   :  { %v10363_v16 = vpack.c.bf16 %v3065_v7, %v3062_v41  ;;  %v10446_v41 = vpack.c.bf16 %v3083_v57, %v3080_v27  ;;  %v3079_v7 = vld [vmem:[%s11837_s6 + $0x90] sm:$0xff] }
 0x4ee   :  { %v3091_v27 = vld [vmem:[%s11837_s6 + $0xf0] sm:$0xff] }
 0x4f5   :  { %v8156_v26 = vpop.eup %8155 }
 0x4f6   :  { %v2437_v50 = vsub.f32 %v9790_v9, %v8156_v26  ;;  %v8158_v17 = vpop.eup %8157  ;;  %v12056_v9 = vld [vmem:[#allocation23_spill] sm:$0xff] }
 0x4f8   :  { %v2438_v54 = vmul.f32 %v8158_v17, %v2437_v50  ;;  %v2875_v50 = vld [vmem:[%s11836_s3 + $0xc0] sm:$0xff]  ;;  %v10246_v17 = vpack.c.bf16 %v2879_v61, %v2876_v53  ;;  %v3063_v53 = vld [vmem:[%s11837_s6 + $0x10] sm:$0xff] }
 0x4fa   :  { %v10085_v58 = vadd.f32 %v8156_v26, %v2438_v54  ;;  %v10239_v26 = vpack.c.bf16 %v2874_v23, %v2871_v47  ;;  %v2878_v54 = vld [vmem:[%s11836_s3 + $0xd8] sm:$0xff]  ;;  %v3061_v47 = vld [vmem:[%s11837_s6] sm:$0xff] }
 0x4fb   :  { %v3064_v23 = vld [vmem:[%s11837_s6 + $0x18] sm:$0xff] }
 0x4fc   :  { %2553 = vmatmul.mubr.f32.vlgmr.msra.gmra.mrb[22].mxu0 %v10085_v58  ;;  %6210 = vmatmul.mubr.f32.vlgmr.msra.gmra.mrb[28].mxu1 %v10085_v58  ;;  %v10374_v61 = vpack.c.bf16 %v3064_v23, %v3061_v47  ;;  %v3082_v47 = vld [vmem:[%s11837_s6 + $0xa8] sm:$0xff]  ;;  %v3081_v23 = vld [vmem:[%s11837_s6 + $0xa0] sm:$0xff] }
 0x4fd   :  { %7294 = vmatpush1.bf16.msra.mxu0 %v9783_v22  ;;  %7325 = vmatpush3.bf16.msra.mxu1 %v9785_v42  ;;  %v12057_v22 = vld [vmem:[#allocation24_spill] sm:$0xff]  ;;  %v12058_v42 = vld [vmem:[#allocation25_spill] sm:$0xff] }
 0x4fe   :  { %7296 = vmatprep.subr.bf16.mxu0 %v9792_v39  ;;  %7326 = vmatprep.subr.bf16.mxu1 %v11974_v59  ;;  %v12059_v39 = vld [vmem:[#allocation26_spill] sm:$0xff] }
 0x4ff   :  { %2741 = vmatprep.mubr.f32.mxu0 %v11976_v30  ;;  %6244 = vmatprep.mubr.msk.f32.mxu1 %vm8260_vm1, %v11976_v30 }
 0x501   :  { %7298 = vmatpush1.bf16.msra.mxu0 %v9813_v40  ;;  %7328 = vmatpush3.bf16.msra.mxu1 %v12055_v8  ;;  %v12063_v40 = vld [vmem:[#allocation30_spill] sm:$0xff]  ;;  %v2877_v8 = vld [vmem:[%s11836_s3 + $0xd0] sm:$0xff] }
 0x502   :  { %7300 = vmatprep.subr.bf16.mxu0 %v12056_v9  ;;  %7329 = vmatprep.subr.bf16.mxu1 %v11974_v59  ;;  %v2880_v9 = vld [vmem:[%s11836_s3 + $0xe8] sm:$0xff] }
 0x505   :  { %7302 = vmatpush1.bf16.msra.mxu0 %v12057_v22  ;;  %7331 = vmatpush3.bf16.msra.mxu1 %v12058_v42  ;;  %v2882_v22 = vld [vmem:[%s11836_s3 + $0xf8] sm:$0xff]  ;;  %v2885_v42 = vld [vmem:[%s11836_s3 + $0x110] sm:$0xff] }
 0x506   :  { %7304 = vmatprep.subr.bf16.mxu0 %v12059_v39  ;;  %7332 = vmatprep.subr.bf16.mxu1 %v11974_v59  ;;  %v10265_v39 = vpack.c.bf16 %v2878_v54, %v2875_v50  ;;  %v3066_v50 = vld [vmem:[%s11837_s6 + $0x28] sm:$0xff] }
 0x507   :  { %v10380_v54 = vpack.c.bf16 %v3066_v50, %v3063_v53  ;;  %v10458_v53 = vpack.c.bf16 %v3082_v47, %v3079_v7  ;;  %v3084_v50 = vld [vmem:[%s11837_s6 + $0xb8] sm:$0xff]  ;;  %v3094_v7 = vld [vmem:[%s11837_s6 + $0x108] sm:$0xff]  ;;  %v3093_v47 = vld [vmem:[%s11837_s6 + $0x100] sm:$0xff] }
 0x509   :  { %7306 = vmatpush1.bf16.msra.mxu0 %v12060_v1  ;;  %7334 = vmatpush3.bf16.msra.mxu1 %v12061_v13  ;;  %v10267_v1 = vpack.c.bf16 %v2880_v9, %v2877_v8  ;;  %v2881_v13 = vld [vmem:[%s11836_s3 + $0xf0] sm:$0xff]  ;;  %v3068_v8 = vld [vmem:[%s11837_s6 + $0x38] sm:$0xff] }
 0x50a   :  { %7308 = vmatprep.subr.bf16.mxu0 %v12062_v24  ;;  %7335 = vmatprep.subr.bf16.mxu1 %v11974_v59  ;;  %v10274_v24 = vpack.c.bf16 %v2885_v42, %v2882_v22  ;;  %v3071_v9 = vld [vmem:[%s11837_s6 + $0x50] sm:$0xff] }
 0x50b   :  { %v10390_v22 = vpack.c.bf16 %v3071_v9, %v3068_v8  ;;  %v3067_v42 = vld [vmem:[%s11837_s6 + $0x30] sm:$0xff]  ;;  %v10464_v8 = vpack.c.bf16 %v3084_v50, %v3081_v23  ;;  %v3086_v9 = vld [vmem:[%s11837_s6 + $0xc8] sm:$0xff]  ;;  %v3096_v23 = vld [vmem:[%s11837_s6 + $0x118] sm:$0xff]  ;;  %v10516_v50 = vpack.c.bf16 %v3094_v7, %v3091_v27 }
 0x50c   :  { %v3104_v27 = vld [vmem:[%s11837_s6 + $0x158] sm:$0xff]  ;;  %v3107_v7 = vld [vmem:[%s11837_s6 + $0x170] sm:$0xff] }
 0x50d   :  { %7310 = vmatpush1.bf16.msra.mxu0 %v12063_v40  ;;  %7337 = vmatpush3.bf16.msra.mxu1 %v12064_v60  ;;  %v2884_v40 = vld [vmem:[%s11836_s3 + $0x108] sm:$0xff]  ;;  %v2883_v60 = vld [vmem:[%s11836_s3 + $0x100] sm:$0xff]  ;;  %12068 = vst [vmem:[#allocation6_spill] sm:$0xff] %v10516_v50 }
 0x50e   :  { %7312 = vmatprep.subr.bf16.mxu0 %v12065_v31  ;;  %7338 = vmatprep.subr.bf16.mxu1 %v11974_v59  ;;  %v2886_v31 = vld [vmem:[%s11836_s3 + $0x118] sm:$0xff] }
 0x511   :  { %7314 = vmatpush1.bf16.msra.mxu0 %v12066_v20  ;;  %7340 = vmatpush3.bf16.msra.mxu1 %v9930_v3  ;;  %v2851_v3 = vld [vmem:[%s11836_s3] sm:$0xff]  ;;  %v2888_v20 = vld [vmem:[%s11836_s3 + $0x128] sm:$0xff] }
 0x512   :  { %7316 = vmatprep.subr.bf16.mxu0 %v9937_v44  ;;  %7341 = vmatprep.subr.bf16.mxu1 %v11974_v59  ;;  %v10129_v44 = vpack.c.bf16 %v2855_v6, %v2852_v19  ;;  %v10148_v11 = vpack.c.bf16 %v2854_v48, %v2851_v3  ;;  %v2891_v19 = vld [vmem:[%s11836_s3 + $0x140] sm:$0xff]  ;;  %v10293_v6 = vpack.c.bf16 %v2884_v40, %v2881_v13  ;;  %v3070_v13 = vld [vmem:[%s11837_s6 + $0x48] sm:$0xff] }
 0x513   :  { %v10295_v3 = vpack.c.bf16 %v2886_v31, %v2883_v60  ;;  %v2887_v48 = vld [vmem:[%s11836_s3 + $0x120] sm:$0xff]  ;;  %v10402_v60 = vpack.c.bf16 %v3070_v13, %v3067_v42  ;;  %v3072_v31 = vld [vmem:[%s11837_s6 + $0x58] sm:$0xff] }
 0x514   :  { %v3069_v40 = vld [vmem:[%s11837_s6 + $0x40] sm:$0xff] }
 0x515   :  { %7318 = vmatpush1.bf16.msra.mxu0 %v9956_v63  ;;  %7343 = vmatpush3.bf16.msra.mxu1 %v9958_v33  ;;  %v2853_v63 = vld [vmem:[%s11836_s3 + $0x10] sm:$0xff]  ;;  %v2856_v33 = vld [vmem:[%s11836_s3 + $0x28] sm:$0xff]  ;;  %v3089_v42 = vld [vmem:[%s11837_s6 + $0xe0] sm:$0xff] }
 0x516   :  { %7320 = vmatprep.subr.bf16.mxu0 %v9965_v56  ;;  %7344 = vmatprep.subr.bf16.mxu1 %v11974_v59  ;;  %v2858_v56 = vld [vmem:[%s11836_s3 + $0x38] sm:$0xff]  ;;  %v10150_v12 = vpack.c.bf16 %v2856_v33, %v2853_v63  ;;  %v10302_v63 = vpack.c.bf16 %v2891_v19, %v2888_v20  ;;  %v10408_v20 = vpack.c.bf16 %v3072_v31, %v3069_v40  ;;  %v3074_v19 = vld [vmem:[%s11837_s6 + $0x68] sm:$0xff]  ;;  %v3085_v40 = vld [vmem:[%s11837_s6 + $0xc0] sm:$0xff] }
 0x517   :  { %v10157_v10 = vpack.c.bf16 %v2861_v49, %v2858_v56  ;;  %v2890_v33 = vld [vmem:[%s11836_s3 + $0x138] sm:$0xff]  ;;  %v2889_v56 = vld [vmem:[%s11836_s3 + $0x130] sm:$0xff]  ;;  %v2892_v49 = vld [vmem:[%s11836_s3 + $0x148] sm:$0xff]  ;;  %v10474_v13 = vpack.c.bf16 %v3089_v42, %v3086_v9  ;;  %v10518_v9 = vpack.c.bf16 %v3096_v23, %v3093_v47 }
 0x518   :  { %v3088_v31 = vld [vmem:[%s11837_s6 + $0xd8] sm:$0xff]  ;;  %v3098_v42 = vld [vmem:[%s11837_s6 + $0x128] sm:$0xff] }
 0x519   :  { %7322 = vmatpush1.bf16.msra.mxu0 %v9978_v37  ;;  %7346 = vmatpush3.bf16.msra.mxu1 %v9980_v0  ;;  %v2860_v37 = vld [vmem:[%s11836_s3 + $0x48] sm:$0xff]  ;;  %v2859_v0 = vld [vmem:[%s11836_s3 + $0x40] sm:$0xff]  ;;  %12069 = vst [vmem:[#allocation8_spill] sm:$0xff] %v10518_v9 }
 0x51a   :  { %7348 = vmatprep.subr.bf16.mxu0 %v10129_v44  ;;  %7379 = vmatprep.subr.bf16.mxu1 %v11974_v59  ;;  %v10178_v14 = vpack.c.bf16 %v2860_v37, %v2857_v45  ;;  %v10180_v4 = vpack.c.bf16 %v2862_v43, %v2859_v0  ;;  %v2894_v45 = vld [vmem:[%s11836_s3 + $0x158] sm:$0xff]  ;;  %v2897_v37 = vld [vmem:[%s11836_s3 + $0x170] sm:$0xff]  ;;  %v10321_v0 = vpack.c.bf16 %v2890_v33, %v2887_v48  ;;  %v3077_v48 = vld [vmem:[%s11837_s6 + $0x80] sm:$0xff] }
 0x51b   :  { %v10323_v43 = vpack.c.bf16 %v2892_v49, %v2889_v56  ;;  %v10330_v28 = vpack.c.bf16 %v2897_v37, %v2894_v45  ;;  %v10418_v33 = vpack.c.bf16 %v3077_v48, %v3074_v19  ;;  %v3073_v56 = vld [vmem:[%s11837_s6 + $0x60] sm:$0xff]  ;;  %v3076_v49 = vld [vmem:[%s11837_s6 + $0x78] sm:$0xff]  ;;  %v3075_v45 = vld [vmem:[%s11837_s6 + $0x70] sm:$0xff]  ;;  %v10486_v48 = vpack.c.bf16 %v3088_v31, %v3085_v40 }
 0x51c   :  { %2742 = vmatmul.mubr.f32.vlgmr.msra.gmra.mrb[22].mxu0 %v10076_v36  ;;  %6245 = vmatmul.mubr.f32.vlgmr.msra.gmra.mrb[30].mxu1 %v10076_v36  ;;  %v10430_v37 = vpack.c.bf16 %v3076_v49, %v3073_v56  ;;  %v10436_v21 = vpack.c.bf16 %v3078_v25, %v3075_v45  ;;  %v3087_v19 = vld [vmem:[%s11837_s6 + $0xd0] sm:$0xff]  ;;  %v3090_v56 = vld [vmem:[%s11837_s6 + $0xe8] sm:$0xff]  ;;  %v3092_v45 = vld [vmem:[%s11837_s6 + $0xf8] sm:$0xff] }
 0x51d   :  { %7350 = vmatpush1.bf16.msra.mxu0 %v10148_v11  ;;  %7381 = vmatpush3.bf16.msra.mxu1 %v10150_v12  ;;  %v10492_v49 = vpack.c.bf16 %v3090_v56, %v3087_v19  ;;  %v3095_v25 = vld [vmem:[%s11837_s6 + $0x110] sm:$0xff]  ;;  %v3101_v40 = vld [vmem:[%s11837_s6 + $0x140] sm:$0xff]  ;;  %v3100_v56 = vld [vmem:[%s11837_s6 + $0x138] sm:$0xff] }
 0x51e   :  { %7352 = vmatprep.subr.bf16.mxu0 %v10157_v10  ;;  %7382 = vmatprep.subr.bf16.mxu1 %v11974_v59  ;;  %v10504_v57 = vpack.c.bf16 %v3095_v25, %v3092_v45  ;;  %v3097_v31 = vld [vmem:[%s11837_s6 + $0x120] sm:$0xff]  ;;  %v10531_v19 = vpack.c.bf16 %v3101_v40, %v3098_v42  ;;  %v3099_v45 = vld [vmem:[%s11837_s6 + $0x130] sm:$0xff]  ;;  %v3102_v25 = vld [vmem:[%s11837_s6 + $0x148] sm:$0xff]  ;;  %v10555_v42 = vpack.c.bf16 %v3107_v7, %v3104_v27 }
 0x51f   :  { %2963 = vmatprep.mubr.f32.mxu0 %v11976_v30  ;;  %6279 = vmatprep.mubr.msk.f32.mxu1 %vm8260_vm1, %v11976_v30  ;;  %v10549_v47 = vpack.c.bf16 %v3100_v56, %v3097_v31  ;;  %v10553_v23 = vpack.c.bf16 %v3102_v25, %v3099_v45  ;;  %v3103_v40 = vld [vmem:[%s11837_s6 + $0x150] sm:$0xff]  ;;  %v3105_v31 = vld [vmem:[%s11837_s6 + $0x160] sm:$0xff]  ;;  %v3108_v56 = vld [vmem:[%s11837_s6 + $0x178] sm:$0xff] }
 0x520   :  { %12067 = vst [vmem:[#allocation5_spill] sm:$0xff] %v10504_v57  ;;  %12070 = vst [vmem:[#allocation15_spill] sm:$0xff] %v10531_v19  ;;  %v3251_v45 = vld [vmem:[%s11838_s7 + $0x8] sm:$0xff]  ;;  %v3254_v25 = vld [vmem:[%s11838_s7 + $0x20] sm:$0xff]  ;;  %v10581_v7 = vpack.c.bf16 %v3108_v56, %v3105_v31 }
 0x521   :  { %7354 = vmatpush1.bf16.msra.mxu0 %v10178_v14  ;;  %7384 = vmatpush3.bf16.msra.mxu1 %v10180_v4  ;;  %12071 = vst [vmem:[#allocation7_spill] sm:$0xff] %v10549_v47  ;;  %12072 = vst [vmem:[#allocation16_spill] sm:$0xff] %v10553_v23 }
 0x522   :  { %7356 = vmatprep.subr.bf16.mxu0 %v10187_v29  ;;  %7385 = vmatprep.subr.bf16.mxu1 %v11974_v59  ;;  %12073 = vst [vmem:[#allocation17_spill] sm:$0xff] %v10555_v42  ;;  %12075 = vst [vmem:[#allocation19_spill] sm:$0xff] %v10581_v7 }
 0x525   :  { %7358 = vmatpush1.bf16.msra.mxu0 %v10209_v55  ;;  %7387 = vmatpush3.bf16.msra.mxu1 %v10211_v32 }
 0x526   :  { %7360 = vmatprep.subr.bf16.mxu0 %v10218_v15  ;;  %7388 = vmatprep.subr.bf16.mxu1 %v11974_v59 }
 0x529   :  { %7362 = vmatpush1.bf16.msra.mxu0 %v10237_v2  ;;  %7390 = vmatpush3.bf16.msra.mxu1 %v10239_v26 }
 0x52a   :  { %7364 = vmatprep.subr.bf16.mxu0 %v10246_v17  ;;  %7391 = vmatprep.subr.bf16.mxu1 %v11974_v59 }
 0x52d   :  { %7366 = vmatpush1.bf16.msra.mxu0 %v10265_v39  ;;  %7393 = vmatpush3.bf16.msra.mxu1 %v10267_v1 }
 0x52e   :  { %7368 = vmatprep.subr.bf16.mxu0 %v10274_v24  ;;  %7394 = vmatprep.subr.bf16.mxu1 %v11974_v59 }
 0x531   :  { %7370 = vmatpush1.bf16.msra.mxu0 %v10293_v6  ;;  %7396 = vmatpush3.bf16.msra.mxu1 %v10295_v3 }
 0x532   :  { %7372 = vmatprep.subr.bf16.mxu0 %v10302_v63  ;;  %7397 = vmatprep.subr.bf16.mxu1 %v11974_v59 }
 0x535   :  { %7374 = vmatpush1.bf16.msra.mxu0 %v10321_v0  ;;  %7399 = vmatpush3.bf16.msra.mxu1 %v10323_v43 }
 0x536   :  { %7376 = vmatprep.subr.bf16.mxu0 %v10330_v28  ;;  %7400 = vmatprep.subr.bf16.mxu1 %v11974_v59 }
 0x539   :  { %7378 = vmatpush1.bf16.msra.mxu0 %v10343_v38  ;;  %7402 = vmatpush3.bf16.msra.mxu1 %v10345_v35 }
 0x53a   :  { %7435 = vmatprep.subr.bf16.mxu1 %v11974_v59  ;;  %7404 = vmatprep.subr.bf16.mxu0 %v10363_v16 }
 0x53c   :  { %2964 = vmatmul.mubr.f32.vlgmr.msra.gmra.mrb[8].mxu0 %v10085_v58  ;;  %6280 = vmatmul.mubr.f32.vlgmr.msra.gmra.mrb[32].mxu1 %v10085_v58 }
 0x53d   :  { %3173 = vmatprep.mubr.f32.mxu0 %v11976_v30  ;;  %6314 = vmatprep.mubr.msk.f32.mxu1 %vm8260_vm1, %v11976_v30 }
 0x53e   :  { %7406 = vmatpush1.bf16.msra.mxu0 %v10374_v61  ;;  %7437 = vmatpush3.bf16.msra.mxu1 %v10380_v54 }
 0x53f   :  { %7438 = vmatprep.subr.bf16.mxu1 %v11974_v59  ;;  %7408 = vmatprep.subr.bf16.mxu0 %v10390_v22 }
 0x542   :  { %7410 = vmatpush1.bf16.msra.mxu0 %v10402_v60  ;;  %7440 = vmatpush3.bf16.msra.mxu1 %v10408_v20 }
 0x543   :  { %7441 = vmatprep.subr.bf16.mxu1 %v11974_v59  ;;  %7412 = vmatprep.subr.bf16.mxu0 %v10418_v33 }
 0x546   :  { %7414 = vmatpush1.bf16.msra.mxu0 %v10430_v37  ;;  %7443 = vmatpush3.bf16.msra.mxu1 %v10436_v21 }
 0x547   :  { %7444 = vmatprep.subr.bf16.mxu1 %v11974_v59  ;;  %7416 = vmatprep.subr.bf16.mxu0 %v10446_v41 }
 0x54a   :  { %7418 = vmatpush1.bf16.msra.mxu0 %v10458_v53  ;;  %7446 = vmatpush3.bf16.msra.mxu1 %v10464_v8 }
 0x54b   :  { %7447 = vmatprep.subr.bf16.mxu1 %v11974_v59  ;;  %7420 = vmatprep.subr.bf16.mxu0 %v10474_v13 }
 0x54e   :  { %7422 = vmatpush1.bf16.msra.mxu0 %v10486_v48  ;;  %7449 = vmatpush3.bf16.msra.mxu1 %v10492_v49 }
 0x54f   :  { %7424 = vmatprep.subr.bf16.mxu0 %v10504_v57  ;;  %7450 = vmatprep.subr.bf16.mxu1 %v11974_v59  ;;  %v3106_v57 = vld [vmem:[%s11837_s6 + $0x168] sm:$0xff] }
 0x550   :  { %v10577_v27 = vpack.c.bf16 %v3106_v57, %v3103_v40 }
 0x552   :  { %7426 = vmatpush1.bf16.msra.mxu0 %v10516_v50  ;;  %7452 = vmatpush3.bf16.msra.mxu1 %v10518_v9  ;;  %12074 = vst [vmem:[#allocation18_spill] sm:$0xff] %v10577_v27 }
 0x553   :  { %7428 = vmatprep.subr.bf16.mxu0 %v10531_v19  ;;  %7453 = vmatprep.subr.bf16.mxu1 %v11974_v59  ;;  %v10583_v19 = vpack.c.bf16 %v3254_v25, %v3251_v45 }
 0x555   :  { %12076 = vst [vmem:[#allocation20_spill] sm:$0xff] %v10583_v19 }
 0x556   :  { %7430 = vmatpush1.bf16.msra.mxu0 %v10549_v47  ;;  %7455 = vmatpush3.bf16.msra.mxu1 %v10553_v23 }
 0x557   :  { %7432 = vmatprep.subr.bf16.mxu0 %v10555_v42  ;;  %7456 = vmatprep.subr.bf16.mxu1 %v11974_v59 }
 0x55a   :  { %7434 = vmatpush1.bf16.msra.mxu0 %v10577_v27  ;;  %7458 = vmatpush3.bf16.msra.mxu1 %v10581_v7 }
 0x55b   :  { %7460 = vmatprep.subr.bf16.mxu0 %v10583_v19  ;;  %7491 = vmatprep.subr.bf16.mxu1 %v11974_v59  ;;  %v10595_v19 = vld [vmem:[%s11840_s1] sm:$0xff] }
 0x55c   :  { %12077 = vst [vmem:[#allocation21_spill] sm:$0xff] %v10595_v19  ;;  %vm3460_vm9 = vcmp.gt.s32.totalorder %v10595_v19, 4 }
 0x5cf   :  { %v2625_v57 = vpop.f32.mrb[28].mxu1 }
 0x5d0   :  { %v6211_v40 = vpop.f32.mrb[29].mxu1 }
 0x5ef   :  { %v2743_v47 = vpop.f32.mrb[22].mxu0  ;;  %v2814_v23 = vpop.f32.mrb[30].mxu1 }
 0x5f0   :  { %v8041_v42 = vadd.f32 %v2743_v47, %v12050_v34  ;;  %v2745_v31 = vpop.f32.mrb[23].mxu0  ;;  %v6246_v56 = vpop.f32.mrb[31].mxu1  ;;  %v3461_v47 = vsel %vm3460_vm9, 1, %v12053_v51 }
 0x5f1   :  { %v8042_v25 = vadd.f32 %v2745_v31, %v12051_v52  ;;  %3463 = vperm.xlu0 %8087, %v3461_v47   ;;  %v2626_v31 = vadd.f32 %v2625_v57, %v9217_v46 }
 0x5f2   :  { %v5370_v45 = vmul.f32 -1.442695, %v8041_v42  ;;  %v2832_v42 = vadd.f32 %v10069_v62, %v2814_v23  ;;  %v2843_v62 = vpop.permute.xlu1 %2842 }
 0x5f3   :  { %v5371_v9 = vmul.f32 -1.442695, %v8042_v25  ;;  %vm2844_vm10 = vcmp.eq.s32.totalorder %v2843_v62, 1  ;;  %v3250_v62 = vld [vmem:[%s11838_s7] sm:$0xff] }
 0x5f4   :  { %8159 = vpow2.f32 %v5370_v45 }
 0x5f5   :  { %8161 = vpow2.f32 %v5371_v9 }
 0x5fe   :  { %v8160_v27 = vpop.eup %8159 }
 0x5ff   :  { %v2822_v50 = vadd.f32 1.0, %v8160_v27  ;;  %v8162_v40 = vpop.eup %8161 }
 0x600   :  { %v2829_v9 = vadd.f32 1.0, %v8162_v40 }
 0x601   :  { %8163 = vrcp.f32 %v2822_v50 }
 0x60b   :  { %v8164_v56 = vpop.eup %8163 }
 0x60c   :  { %v2833_v45 = vmul.f32 %v8164_v56, %v2832_v42 }
 0x60e   :  { %v2834_v27 = vadd.f32 %v2833_v45, %v2626_v31 }
 0x60f   :  { %v2965_v50 = vpop.f32.mrb[8].mxu0  ;;  %v3036_v25 = vpop.f32.mrb[32].mxu1 }
 0x610   :  { %8165 = vtanh.f32 %v2834_v27  ;;  %v8027_v52 = vadd.f32 %v2965_v50, %v8877_v5  ;;  %v2967_v34 = vpop.f32.mrb[9].mxu0  ;;  %v6281_v7 = vpop.f32.mrb[33].mxu1 }
 0x611   :  { %8167 = vrcp.f32 %v2829_v9  ;;  %v8028_v47 = vadd.f32 %v2967_v34, %v8889_v18 }
 0x612   :  { %v5373_v19 = vmul.f32 -1.442695, %v8027_v52  ;;  %v10613_v52 = vld [vmem:[%s11841_s5] ss:$0 sm:$0xff] }
 0x613   :  { %v5374_v42 = vmul.f32 -1.442695, %v8028_v47 }
 0x614   :  { %8169 = vpow2.f32 %v5373_v19 }
 0x615   :  { %8171 = vpow2.f32 %v5374_v42  ;;  %v3255_v42 = vld [vmem:[%s11838_s7 + $0x28] sm:$0xff] }
 0x61a   :  { %v8166_v51 = vpop.eup %8165 }
 0x61b   :  { %v2836_v23 = vsub.f32 %v10076_v36, %v8166_v51  ;;  %v8168_v57 = vpop.eup %8167  ;;  %v3054_v36 = vadd.f32 %v10613_v52, %v3036_v25  ;;  %v3252_v25 = vld [vmem:[%s11838_s7 + $0x10] sm:$0xff] }
 0x61d   :  { %v2837_v56 = vmul.f32 %v8168_v57, %v2836_v23  ;;  %v3253_v57 = vld [vmem:[%s11838_s7 + $0x18] sm:$0xff] }
 0x61e   :  { %v8170_v40 = vpop.eup %8169 }
 0x61f   :  { %v3044_v31 = vadd.f32 1.0, %v8170_v40  ;;  %v10604_v45 = vadd.f32 %v8166_v51, %v2837_v56  ;;  %v8172_v34 = vpop.eup %8171  ;;  %v12078_v51 = vld [vmem:[#allocation12_spill] sm:$0xff]  ;;  %v3257_v40 = vld [vmem:[%s11838_s7 + $0x38] sm:$0xff] }
 0x620   :  { %v3051_v50 = vadd.f32 1.0, %v8172_v34  ;;  %v10638_v34 = vpack.c.bf16 %v3255_v42, %v3252_v25  ;;  %v3262_v25 = vld [vmem:[%s11838_s7 + $0x60] sm:$0xff] }
 0x621   :  { %8173 = vrcp.f32 %v3044_v31  ;;  %v2845_v7 = vsel %vm2844_vm10, %v10604_v45, 0.0 }
 0x622   :  { %5372 = vst [vmem:[%s11844_s10 + $0x18] sm:$0xff] %v2845_v7  ;;  %v10636_v7 = vpack.c.bf16 %v3253_v57, %v3250_v62  ;;  %v3263_v62 = vld [vmem:[%s11838_s7 + $0x68] sm:$0xff] }
 0x62b   :  { %v8174_v19 = vpop.eup %8173 }
 0x62c   :  { %v3055_v27 = vmul.f32 %v8174_v19, %v3054_v36  ;;  %v3256_v36 = vld [vmem:[%s11838_s7 + $0x30] sm:$0xff] }
 0x62e   :  { %v3056_v9 = vadd.f32 %v3055_v27, %v12078_v51  ;;  %v3259_v51 = vld [vmem:[%s11838_s7 + $0x48] sm:$0xff] }
 0x630   :  { %8175 = vtanh.f32 %v3056_v9  ;;  %v3258_v9 = vld [vmem:[%s11838_s7 + $0x40] sm:$0xff] }
 0x631   :  { %8177 = vrcp.f32 %v3051_v50  ;;  %v3261_v50 = vld [vmem:[%s11838_s7 + $0x58] sm:$0xff] }
 0x632   :  { %v10668_v57 = vpack.c.bf16 %v3261_v50, %v3258_v9  ;;  %v3268_v50 = vld [vmem:[%s11838_s7 + $0x90] sm:$0xff] }
 0x634   :  { %12079 = vst [vmem:[#allocation9_spill] sm:$0xff] %v10668_v57 }
 0x63a   :  { %v8176_v47 = vpop.eup %8175 }
 0x63b   :  { %v3058_v23 = vsub.f32 %v10085_v58, %v8176_v47  ;;  %v8178_v56 = vpop.eup %8177  ;;  %v3260_v58 = vld [vmem:[%s11838_s7 + $0x50] sm:$0xff] }
 0x63c   :  { %v10645_v27 = vpack.c.bf16 %v3260_v58, %v3257_v40  ;;  %v3264_v40 = vld [vmem:[%s11838_s7 + $0x70] sm:$0xff]  ;;  %v3267_v58 = vld [vmem:[%s11838_s7 + $0x88] sm:$0xff] }
 0x63d   :  { %v3059_v31 = vmul.f32 %v8178_v56, %v3058_v23  ;;  %v10666_v23 = vpack.c.bf16 %v3259_v51, %v3256_v36  ;;  %v3265_v56 = vld [vmem:[%s11838_s7 + $0x78] sm:$0xff]  ;;  %v3272_v36 = vld [vmem:[%s11838_s7 + $0xb0] sm:$0xff]  ;;  %v10699_v9 = vpack.c.bf16 %v3267_v58, %v3264_v40  ;;  %v3275_v40 = vld [vmem:[%s11838_s7 + $0xc8] sm:$0xff] }
 0x63e   :  { %v10697_v51 = vpack.c.bf16 %v3265_v56, %v3262_v25  ;;  %v3270_v25 = vld [vmem:[%s11838_s7 + $0xa0] sm:$0xff]  ;;  %v3273_v56 = vld [vmem:[%s11838_s7 + $0xb8] sm:$0xff] }
 0x63f   :  { %v10643_v19 = vadd.f32 %v8176_v47, %v3059_v31  ;;  %v3266_v47 = vld [vmem:[%s11838_s7 + $0x80] sm:$0xff]  ;;  %v3269_v31 = vld [vmem:[%s11838_s7 + $0x98] sm:$0xff]  ;;  %12082 = vst [vmem:[#allocation24_spill] sm:$0xff] %v10699_v9 }
 0x640   :  { %v10675_v42 = vpack.c.bf16 %v3266_v47, %v3263_v62  ;;  %12081 = vst [vmem:[#allocation23_spill] sm:$0xff] %v10697_v51  ;;  %v10706_v62 = vpack.c.bf16 %v3272_v36, %v3269_v31  ;;  %v3271_v47 = vld [vmem:[%s11838_s7 + $0xa8] sm:$0xff]  ;;  %v3278_v58 = vld [vmem:[%s11838_s7 + $0xe0] sm:$0xff]  ;;  %v10727_v36 = vpack.c.bf16 %v3273_v56, %v3270_v25  ;;  %v3281_v25 = vld [vmem:[%s11838_s7 + $0xf8] sm:$0xff] }
 0x641   :  { %3174 = vmatmul.mubr.f32.vlgmr.msra.gmra.mrb[24].mxu0 %v10643_v19  ;;  %6315 = vmatmul.mubr.f32.vlgmr.msra.gmra.mrb[34].mxu1 %v10643_v19  ;;  %v10725_v31 = vpack.c.bf16 %v3271_v47, %v3268_v50  ;;  %v3276_v50 = vld [vmem:[%s11838_s7 + $0xd0] sm:$0xff]  ;;  %v3279_v47 = vld [vmem:[%s11838_s7 + $0xe8] sm:$0xff] }
 0x642   :  { %7462 = vmatpush1.bf16.msra.mxu0 %v10636_v7  ;;  %7493 = vmatpush3.bf16.msra.mxu1 %v10638_v34  ;;  %12080 = vst [vmem:[#allocation22_spill] sm:$0xff] %v10675_v42  ;;  %12083 = vst [vmem:[#allocation25_spill] sm:$0xff] %v10706_v62  ;;  %v3284_v56 = vld [vmem:[%s11838_s7 + $0x110] sm:$0xff] }
 0x643   :  { %7464 = vmatprep.subr.bf16.mxu0 %v10645_v27  ;;  %7494 = vmatprep.subr.bf16.mxu1 %v11974_v59  ;;  %12084 = vst [vmem:[#allocation26_spill] sm:$0xff] %v10725_v31  ;;  %12085 = vst [vmem:[#allocation27_spill] sm:$0xff] %v10727_v36 }
 0x644   :  { %3362 = vmatprep.mubr.f32.mxu0 %v11976_v30  ;;  %6349 = vmatprep.mubr.msk.f32.mxu1 %vm8260_vm1, %v11976_v30 }
 0x646   :  { %7466 = vmatpush1.bf16.msra.mxu0 %v10666_v23  ;;  %7496 = vmatpush3.bf16.msra.mxu1 %v10668_v57  ;;  %v10734_v57 = vpack.c.bf16 %v3278_v58, %v3275_v40  ;;  %v10755_v58 = vpack.c.bf16 %v3279_v47, %v3276_v50  ;;  %v3287_v50 = vld [vmem:[%s11838_s7 + $0x128] sm:$0xff]  ;;  %v3290_v47 = vld [vmem:[%s11838_s7 + $0x140] sm:$0xff] }
 0x647   :  { %7468 = vmatprep.subr.bf16.mxu0 %v10675_v42  ;;  %7497 = vmatprep.subr.bf16.mxu1 %v11974_v59  ;;  %v3274_v42 = vld [vmem:[%s11838_s7 + $0xc0] sm:$0xff] }
 0x648   :  { %12086 = vst [vmem:[#allocation28_spill] sm:$0xff] %v10734_v57  ;;  %12088 = vst [vmem:[#allocation30_spill] sm:$0xff] %v10755_v58 }
 0x64a   :  { %7470 = vmatpush1.bf16.msra.mxu0 %v10697_v51  ;;  %7499 = vmatpush3.bf16.msra.mxu1 %v10699_v9  ;;  %v3277_v51 = vld [vmem:[%s11838_s7 + $0xd8] sm:$0xff]  ;;  %v10762_v9 = vpack.c.bf16 %v3284_v56, %v3281_v25 }
 0x64b   :  { %7472 = vmatprep.subr.bf16.mxu0 %v10706_v62  ;;  %7500 = vmatprep.subr.bf16.mxu1 %v11974_v59  ;;  %v10753_v40 = vpack.c.bf16 %v3277_v51, %v3274_v42  ;;  %v3280_v62 = vld [vmem:[%s11838_s7 + $0xf0] sm:$0xff]  ;;  %v3282_v42 = vld [vmem:[%s11838_s7 + $0x100] sm:$0xff]  ;;  %v3285_v51 = vld [vmem:[%s11838_s7 + $0x118] sm:$0xff] }
 0x64c   :  { %12089 = vst [vmem:[#allocation31_spill] sm:$0xff] %v10762_v9  ;;  %v10783_v56 = vpack.c.bf16 %v3285_v51, %v3282_v42  ;;  %v3293_v42 = vld [vmem:[%s11838_s7 + $0x158] sm:$0xff]  ;;  %v3296_v51 = vld [vmem:[%s11838_s7 + $0x170] sm:$0xff] }
 0x64d   :  { %12087 = vst [vmem:[#allocation29_spill] sm:$0xff] %v10753_v40 }
 0x64e   :  { %7474 = vmatpush1.bf16.msra.mxu0 %v10725_v31  ;;  %7502 = vmatpush3.bf16.msra.mxu1 %v10727_v36  ;;  %v3283_v31 = vld [vmem:[%s11838_s7 + $0x108] sm:$0xff]  ;;  %v10790_v36 = vpack.c.bf16 %v3290_v47, %v3287_v50 }
 0x64f   :  { %7476 = vmatprep.subr.bf16.mxu0 %v10734_v57  ;;  %7503 = vmatprep.subr.bf16.mxu1 %v11974_v59  ;;  %v10781_v25 = vpack.c.bf16 %v3283_v31, %v3280_v62  ;;  %v3286_v57 = vld [vmem:[%s11838_s7 + $0x120] sm:$0xff]  ;;  %v3288_v62 = vld [vmem:[%s11838_s7 + $0x130] sm:$0xff]  ;;  %v3291_v31 = vld [vmem:[%s11838_s7 + $0x148] sm:$0xff] }
 0x650   :  { %v10811_v47 = vpack.c.bf16 %v3291_v31, %v3288_v62 }
 0x651   :  { %12090 = vst [vmem:[#allocation10_spill] sm:$0xff] %v10781_v25 }
 0x652   :  { %7478 = vmatpush1.bf16.msra.mxu0 %v10753_v40  ;;  %7505 = vmatpush3.bf16.msra.mxu1 %v10755_v58  ;;  %v3289_v40 = vld [vmem:[%s11838_s7 + $0x138] sm:$0xff]  ;;  %v10818_v58 = vpack.c.bf16 %v3296_v51, %v3293_v42 }
 0x653   :  { %7480 = vmatprep.subr.bf16.mxu0 %v10762_v9  ;;  %7506 = vmatprep.subr.bf16.mxu1 %v11974_v59  ;;  %v10809_v50 = vpack.c.bf16 %v3289_v40, %v3286_v57  ;;  %v3292_v9 = vld [vmem:[%s11838_s7 + $0x150] sm:$0xff]  ;;  %v3294_v57 = vld [vmem:[%s11838_s7 + $0x160] sm:$0xff]  ;;  %v3297_v40 = vld [vmem:[%s11838_s7 + $0x178] sm:$0xff] }
 0x654   :  { %v10833_v31 = vpack.c.bf16 %v3297_v40, %v3294_v57 }
 0x656   :  { %7482 = vmatpush1.bf16.msra.mxu0 %v10781_v25  ;;  %7508 = vmatpush3.bf16.msra.mxu1 %v10783_v56  ;;  %v3295_v25 = vld [vmem:[%s11838_s7 + $0x168] sm:$0xff] }
 0x657   :  { %7484 = vmatprep.subr.bf16.mxu0 %v10790_v36  ;;  %7509 = vmatprep.subr.bf16.mxu1 %v11974_v59  ;;  %v10831_v62 = vpack.c.bf16 %v3295_v25, %v3292_v9 }
 0x65a   :  { %7486 = vmatpush1.bf16.msra.mxu0 %v10809_v50  ;;  %7511 = vmatpush3.bf16.msra.mxu1 %v10811_v47 }
 0x65b   :  { %7488 = vmatprep.subr.bf16.mxu0 %v10818_v58  ;;  %7512 = vmatprep.subr.bf16.mxu1 %v11974_v59 }
 0x65e   :  { %7490 = vmatpush1.bf16.msra.mxu0 %v10831_v62  ;;  %7514 = vmatpush3.bf16.msra.mxu1 %v10833_v31 }
 0x65f   :  { %7516 = vmatprep.subr.bf16.mxu0 %v10129_v44  ;;  %7547 = vmatprep.subr.bf16.mxu1 %v11974_v59  ;;  %v12091_v44 = vld [vmem:[#allocation5_spill] sm:$0xff] }
 0x661   :  { %3363 = vmatmul.mubr.f32.vlgmr.msra.gmra.mrb[24].mxu0 %v10604_v45  ;;  %6350 = vmatmul.mubr.f32.vlgmr.msra.gmra.mrb[36].mxu1 %v10604_v45 }
 0x662   :  { %7518 = vmatpush1.bf16.msra.mxu0 %v10148_v11  ;;  %7549 = vmatpush3.bf16.msra.mxu1 %v10150_v12  ;;  %v12092_v11 = vld [vmem:[#allocation6_spill] sm:$0xff]  ;;  %v12093_v12 = vld [vmem:[#allocation8_spill] sm:$0xff] }
 0x663   :  { %7520 = vmatprep.subr.bf16.mxu0 %v10157_v10  ;;  %7550 = vmatprep.subr.bf16.mxu1 %v11974_v59  ;;  %v12094_v10 = vld [vmem:[#allocation15_spill] sm:$0xff] }
 0x664   :  { %3584 = vmatprep.mubr.f32.mxu0 %v11976_v30  ;;  %6384 = vmatprep.mubr.msk.f32.mxu1 %vm8260_vm1, %v11976_v30 }
 0x666   :  { %7522 = vmatpush1.bf16.msra.mxu0 %v10178_v14  ;;  %7552 = vmatpush3.bf16.msra.mxu1 %v10180_v4  ;;  %v12095_v14 = vld [vmem:[#allocation7_spill] sm:$0xff]  ;;  %v12096_v4 = vld [vmem:[#allocation16_spill] sm:$0xff] }
 0x667   :  { %7524 = vmatprep.subr.bf16.mxu0 %v10187_v29  ;;  %7553 = vmatprep.subr.bf16.mxu1 %v11974_v59  ;;  %v12097_v29 = vld [vmem:[#allocation17_spill] sm:$0xff] }
 0x66a   :  { %7526 = vmatpush1.bf16.msra.mxu0 %v10209_v55  ;;  %7555 = vmatpush3.bf16.msra.mxu1 %v10211_v32  ;;  %v12098_v55 = vld [vmem:[#allocation18_spill] sm:$0xff]  ;;  %v12099_v32 = vld [vmem:[#allocation19_spill] sm:$0xff] }
 0x66b   :  { %7528 = vmatprep.subr.bf16.mxu0 %v10218_v15  ;;  %7556 = vmatprep.subr.bf16.mxu1 %v11974_v59  ;;  %v12100_v15 = vld [vmem:[#allocation20_spill] sm:$0xff] }
 0x66e   :  { %7530 = vmatpush1.bf16.msra.mxu0 %v10237_v2  ;;  %7558 = vmatpush3.bf16.msra.mxu1 %v10239_v26 }
 0x66f   :  { %7532 = vmatprep.subr.bf16.mxu0 %v10246_v17  ;;  %7559 = vmatprep.subr.bf16.mxu1 %v11974_v59 }
 0x670   :  { %v3464_v57 = vpop.permute.xlu0 %3463 }
 0x671   :  { %vm3465_vm12 = vcmp.eq.s32.totalorder %v3464_v57, 1  ;;  %v4108_v57 = vld [vmem:[%s11836_s3 + $0x78] sm:$0xff] }
 0x672   :  { %7534 = vmatpush1.bf16.msra.mxu0 %v10265_v39  ;;  %7561 = vmatpush3.bf16.msra.mxu1 %v10267_v1  ;;  %v12101_v1 = vld [vmem:[#allocation3_spill] sm:$0xff] }
 0x673   :  { %7536 = vmatprep.subr.bf16.mxu0 %v10274_v24  ;;  %7562 = vmatprep.subr.bf16.mxu1 %v11974_v59 }
 0x676   :  { %7538 = vmatpush1.bf16.msra.mxu0 %v10293_v6  ;;  %7564 = vmatpush3.bf16.msra.mxu1 %v10295_v3 }
 0x677   :  { %7540 = vmatprep.subr.bf16.mxu0 %v10302_v63  ;;  %7565 = vmatprep.subr.bf16.mxu1 %v11974_v59 }
 0x67a   :  { %7542 = vmatpush1.bf16.msra.mxu0 %v10321_v0  ;;  %7567 = vmatpush3.bf16.msra.mxu1 %v10323_v43  ;;  %v12102_v0 = vld [vmem:[#allocation4_spill] sm:$0xff] }
 0x67b   :  { %7544 = vmatprep.subr.bf16.mxu0 %v10330_v28  ;;  %7568 = vmatprep.subr.bf16.mxu1 %v11974_v59 }
 0x67e   :  { %7546 = vmatpush1.bf16.msra.mxu0 %v10343_v38  ;;  %7570 = vmatpush3.bf16.msra.mxu1 %v10345_v35 }
 0x67f   :  { %7572 = vmatprep.subr.bf16.mxu0 %v10363_v16  ;;  %7603 = vmatprep.subr.bf16.mxu1 %v11974_v59  ;;  %v12103_v16 = vld [vmem:[#allocation21_spill] sm:$0xff] }
 0x680   :  { %vm4081_vm11 = vcmp.gt.s32.totalorder %v12103_v16, 5  ;;  %v12116_v16 = vld [vmem:[#allocation31_spill] sm:$0xff] }
 0x681   :  { %3585 = vmatmul.mubr.f32.vlgmr.msra.gmra.mrb[10].mxu0 %v10643_v19  ;;  %6385 = vmatmul.mubr.f32.vlgmr.msra.gmra.mrb[38].mxu1 %v10643_v19 }
 0x682   :  { %7574 = vmatpush1.bf16.msra.mxu0 %v10374_v61  ;;  %7605 = vmatpush3.bf16.msra.mxu1 %v10380_v54  ;;  %v12104_v61 = vmov 0  }
 0x683   :  { %7576 = vmatprep.subr.bf16.mxu0 %v10390_v22  ;;  %7606 = vmatprep.subr.bf16.mxu1 %v11974_v59  ;;  %v4082_v54 = vsel %vm4081_vm11, 1, %v12104_v61 }
 0x684   :  { %3794 = vmatprep.mubr.f32.mxu0 %v11976_v30  ;;  %6419 = vmatprep.mubr.msk.f32.mxu1 %vm8260_vm1, %v11976_v30 }
 0x685   :  { %4084 = vperm.xlu1 %8088, %v4082_v54   ;;  %v12117_v54 = vld [vmem:[#allocation10_spill] sm:$0xff] }
 0x686   :  { %7578 = vmatpush1.bf16.msra.mxu0 %v10402_v60  ;;  %7608 = vmatpush3.bf16.msra.mxu1 %v10408_v20  ;;  %v10922_v60 = vld [vmem:[%s11843_s9] ss:$0 sm:$0xff] }
 0x687   :  { %7580 = vmatprep.subr.bf16.mxu0 %v10418_v33  ;;  %7609 = vmatprep.subr.bf16.mxu1 %v11974_v59 }
 0x68a   :  { %7582 = vmatpush1.bf16.msra.mxu0 %v10430_v37  ;;  %7611 = vmatpush3.bf16.msra.mxu1 %v10436_v21 }
 0x68b   :  { %7584 = vmatprep.subr.bf16.mxu0 %v10446_v41  ;;  %7612 = vmatprep.subr.bf16.mxu1 %v11974_v59 }
 0x68e   :  { %7586 = vmatpush1.bf16.msra.mxu0 %v10458_v53  ;;  %7614 = vmatpush3.bf16.msra.mxu1 %v10464_v8 }
 0x68f   :  { %7588 = vmatprep.subr.bf16.mxu0 %v10474_v13  ;;  %7615 = vmatprep.subr.bf16.mxu1 %v11974_v59 }
 0x692   :  { %7590 = vmatpush1.bf16.msra.mxu0 %v10486_v48  ;;  %7617 = vmatpush3.bf16.msra.mxu1 %v10492_v49 }
 0x693   :  { %7592 = vmatprep.subr.bf16.mxu0 %v12091_v44  ;;  %7618 = vmatprep.subr.bf16.mxu1 %v11974_v59 }
 0x696   :  { %7594 = vmatpush1.bf16.msra.mxu0 %v12092_v11  ;;  %7620 = vmatpush3.bf16.msra.mxu1 %v12093_v12 }
 0x697   :  { %7596 = vmatprep.subr.bf16.mxu0 %v12094_v10  ;;  %7621 = vmatprep.subr.bf16.mxu1 %v11974_v59 }
 0x69a   :  { %7598 = vmatpush1.bf16.msra.mxu0 %v12095_v14  ;;  %7623 = vmatpush3.bf16.msra.mxu1 %v12096_v4 }
 0x69b   :  { %7600 = vmatprep.subr.bf16.mxu0 %v12097_v29  ;;  %7624 = vmatprep.subr.bf16.mxu1 %v11974_v59 }
 0x69e   :  { %7602 = vmatpush1.bf16.msra.mxu0 %v12098_v55  ;;  %7626 = vmatpush3.bf16.msra.mxu1 %v12099_v32 }
 0x69f   :  { %7628 = vmatprep.subr.bf16.mxu0 %v12100_v15  ;;  %7659 = vmatprep.subr.bf16.mxu1 %v11974_v59 }
 0x714   :  { %v3246_v2 = vpop.f32.mrb[34].mxu1 }
 0x715   :  { %v6316_v26 = vpop.f32.mrb[35].mxu1  ;;  %v3247_v37 = vadd.f32 %v3246_v2, %v9217_v46  ;;  %v12105_v2 = vld [vmem:[#allocation11_spill] sm:$0xff] }
 0x734   :  { %v3364_v17 = vpop.f32.mrb[24].mxu0  ;;  %v3435_v39 = vpop.f32.mrb[36].mxu1 }
 0x735   :  { %v8043_v24 = vadd.f32 %v3364_v17, %v12101_v1  ;;  %v3366_v6 = vpop.f32.mrb[25].mxu0  ;;  %v6351_v3 = vpop.f32.mrb[37].mxu1  ;;  %v3453_v20 = vadd.f32 %v10922_v60, %v3435_v39 }
 0x736   :  { %v8044_v43 = vadd.f32 %v3366_v6, %v12102_v0 }
 0x737   :  { %v5375_v63 = vmul.f32 -1.442695, %v8043_v24 }
 0x738   :  { %v5376_v28 = vmul.f32 -1.442695, %v8044_v43  ;;  %v12111_v43 = vld [vmem:[#allocation26_spill] sm:$0xff] }
 0x739   :  { %8179 = vpow2.f32 %v5375_v63 }
 0x73a   :  { %8181 = vpow2.f32 %v5376_v28  ;;  %v12112_v28 = vld [vmem:[#allocation27_spill] sm:$0xff] }
 0x743   :  { %v8180_v38 = vpop.eup %8179 }
 0x744   :  { %v3443_v35 = vadd.f32 1.0, %v8180_v38  ;;  %v8182_v22 = vpop.eup %8181  ;;  %v12113_v38 = vld [vmem:[#allocation28_spill] sm:$0xff] }
 0x745   :  { %v3450_v53 = vadd.f32 1.0, %v8182_v22  ;;  %v4094_v22 = vld [vmem:[%s11836_s3 + $0x8] sm:$0xff] }
 0x746   :  { %8183 = vrcp.f32 %v3443_v35  ;;  %v12115_v35 = vld [vmem:[#allocation30_spill] sm:$0xff] }
 0x750   :  { %v8184_v33 = vpop.eup %8183 }
 0x751   :  { %v3454_v21 = vmul.f32 %v8184_v33, %v3453_v20  ;;  %v4097_v20 = vld [vmem:[%s11836_s3 + $0x20] sm:$0xff]  ;;  %v4096_v33 = vld [vmem:[%s11836_s3 + $0x18] sm:$0xff] }
 0x753   :  { %v3455_v41 = vadd.f32 %v3454_v21, %v3247_v37  ;;  %v4103_v37 = vld [vmem:[%s11836_s3 + $0x50] sm:$0xff] }
 0x754   :  { %v3586_v8 = vpop.f32.mrb[10].mxu0  ;;  %v3657_v13 = vpop.f32.mrb[38].mxu1 }
 0x755   :  { %8185 = vtanh.f32 %v3455_v41  ;;  %v8029_v48 = vadd.f32 %v3586_v8, %v8877_v5  ;;  %v3588_v49 = vpop.f32.mrb[11].mxu0  ;;  %v6386_v9 = vpop.f32.mrb[39].mxu1  ;;  %v3675_v32 = vadd.f32 %v10613_v52, %v3657_v13  ;;  %v12106_v52 = vld [vmem:[#allocation9_spill] sm:$0xff]  ;;  %v4104_v13 = vld [vmem:[%s11836_s3 + $0x58] sm:$0xff] }
 0x756   :  { %8187 = vrcp.f32 %v3450_v53  ;;  %v8030_v42 = vadd.f32 %v3588_v49, %v8889_v18  ;;  %v4099_v53 = vld [vmem:[%s11836_s3 + $0x30] sm:$0xff]  ;;  %v4109_v49 = vld [vmem:[%s11836_s3 + $0x80] sm:$0xff] }
 0x757   :  { %v5378_v25 = vmul.f32 -1.442695, %v8029_v48  ;;  %v4106_v48 = vld [vmem:[%s11836_s3 + $0x68] sm:$0xff] }
 0x758   :  { %v5379_v11 = vmul.f32 -1.442695, %v8030_v42  ;;  %v4105_v42 = vld [vmem:[%s11836_s3 + $0x60] sm:$0xff] }
 0x759   :  { %8189 = vpow2.f32 %v5378_v25 }
 0x75a   :  { %8191 = vpow2.f32 %v5379_v11  ;;  %v4112_v11 = vld [vmem:[%s11836_s3 + $0x98] sm:$0xff] }
 0x75f   :  { %v8186_v51 = vpop.eup %8185 }
 0x760   :  { %v3457_v40 = vsub.f32 %v10604_v45, %v8186_v51  ;;  %v8188_v44 = vpop.eup %8187 }
 0x762   :  { %v3458_v12 = vmul.f32 %v8188_v44, %v3457_v40  ;;  %v4107_v40 = vld [vmem:[%s11836_s3 + $0x70] sm:$0xff]  ;;  %v4110_v44 = vld [vmem:[%s11836_s3 + $0x88] sm:$0xff] }
 0x763   :  { %v8190_v10 = vpop.eup %8189 }
 0x764   :  { %v3665_v14 = vadd.f32 1.0, %v8190_v10  ;;  %v10929_v4 = vadd.f32 %v8186_v51, %v3458_v12  ;;  %v8192_v55 = vpop.eup %8191  ;;  %v11040_v51 = vpack.c.bf16 %v4109_v49, %v4106_v48  ;;  %v4115_v12 = vld [vmem:[%s11836_s3 + $0xb0] sm:$0xff]  ;;  %v11062_v10 = vpack.c.bf16 %v4108_v57, %v4105_v42  ;;  %v4138_v42 = vld [vmem:[%s11836_s3 + $0x168] sm:$0xff]  ;;  %v4137_v57 = vld [vmem:[%s11836_s3 + $0x160] sm:$0xff] }
 0x765   :  { %v3672_v17 = vadd.f32 1.0, %v8192_v55  ;;  %v11071_v55 = vpack.c.bf16 %v4115_v12, %v4112_v11  ;;  %v4135_v48 = vld [vmem:[%s11836_s3 + $0x150] sm:$0xff]  ;;  %v4304_v12 = vld [vmem:[%s11837_s6 + $0x8] sm:$0xff] }
 0x766   :  { %8193 = vrcp.f32 %v3665_v14  ;;  %v3466_v29 = vsel %vm3465_vm12, %v10929_v4, 0.0  ;;  %v11064_v14 = vpack.c.bf16 %v4110_v44, %v4107_v40  ;;  %v4140_v40 = vld [vmem:[%s11836_s3 + $0x178] sm:$0xff]  ;;  %v11196_v44 = vpack.c.bf16 %v4138_v42, %v4135_v48  ;;  %v4320_v48 = vld [vmem:[%s11837_s6 + $0x88] sm:$0xff] }
 0x767   :  { %5377 = vst [vmem:[%s11844_s10 + $0x20] sm:$0xff] %v3466_v29  ;;  %v4111_v29 = vld [vmem:[%s11836_s3 + $0x90] sm:$0xff]  ;;  %v11198_v11 = vpack.c.bf16 %v4140_v40, %v4137_v57  ;;  %v4322_v57 = vld [vmem:[%s11837_s6 + $0x98] sm:$0xff] }
 0x768   :  { %v4325_v40 = vld [vmem:[%s11837_s6 + $0xb0] sm:$0xff] }
 0x770   :  { %v8194_v45 = vpop.eup %8193 }
 0x771   :  { %v3676_v15 = vmul.f32 %v8194_v45, %v3675_v32  ;;  %v4114_v32 = vld [vmem:[%s11836_s3 + $0xa8] sm:$0xff]  ;;  %v4113_v45 = vld [vmem:[%s11836_s3 + $0xa0] sm:$0xff] }
 0x773   :  { %v3677_v26 = vadd.f32 %v3676_v15, %v12105_v2  ;;  %v4116_v15 = vld [vmem:[%s11836_s3 + $0xb8] sm:$0xff]  ;;  %v4118_v2 = vld [vmem:[%s11836_s3 + $0xc8] sm:$0xff] }
 0x775   :  { %8195 = vtanh.f32 %v3677_v26  ;;  %v4121_v26 = vld [vmem:[%s11836_s3 + $0xe0] sm:$0xff] }
 0x776   :  { %8197 = vrcp.f32 %v3672_v17  ;;  %v11090_v17 = vpack.c.bf16 %v4114_v32, %v4111_v29  ;;  %v4307_v29 = vld [vmem:[%s11837_s6 + $0x20] sm:$0xff] }
 0x777   :  { %v11216_v32 = vpack.c.bf16 %v4307_v29, %v4304_v12  ;;  %v11299_v12 = vpack.c.bf16 %v4325_v40, %v4322_v57  ;;  %v4321_v29 = vld [vmem:[%s11837_s6 + $0x90] sm:$0xff] }
 0x778   :  { %v4333_v57 = vld [vmem:[%s11837_s6 + $0xf0] sm:$0xff] }
 0x77f   :  { %v8196_v39 = vpop.eup %8195 }
 0x780   :  { %v3679_v24 = vsub.f32 %v10643_v19, %v8196_v39  ;;  %v8198_v6 = vpop.eup %8197  ;;  %v12107_v19 = vld [vmem:[#allocation22_spill] sm:$0xff] }
 0x782   :  { %v3680_v3 = vmul.f32 %v8198_v6, %v3679_v24  ;;  %v4117_v24 = vld [vmem:[%s11836_s3 + $0xc0] sm:$0xff]  ;;  %v11099_v6 = vpack.c.bf16 %v4121_v26, %v4118_v2  ;;  %v4305_v2 = vld [vmem:[%s11837_s6 + $0x10] sm:$0xff] }
 0x784   :  { %v10938_v63 = vadd.f32 %v8196_v39, %v3680_v3  ;;  %v11092_v39 = vpack.c.bf16 %v4116_v15, %v4113_v45  ;;  %v4120_v3 = vld [vmem:[%s11836_s3 + $0xd8] sm:$0xff]  ;;  %v4303_v45 = vld [vmem:[%s11837_s6] sm:$0xff] }
 0x785   :  { %v4306_v15 = vld [vmem:[%s11837_s6 + $0x18] sm:$0xff] }
 0x786   :  { %3795 = vmatmul.mubr.f32.vlgmr.msra.gmra.mrb[26].mxu0 %v10938_v63  ;;  %6420 = vmatmul.mubr.f32.vlgmr.msra.gmra.mrb[40].mxu1 %v10938_v63  ;;  %v11227_v26 = vpack.c.bf16 %v4306_v15, %v4303_v45  ;;  %v4324_v45 = vld [vmem:[%s11837_s6 + $0xa8] sm:$0xff]  ;;  %v4323_v15 = vld [vmem:[%s11837_s6 + $0xa0] sm:$0xff] }
 0x787   :  { %7630 = vmatpush1.bf16.msra.mxu0 %v10636_v7  ;;  %7661 = vmatpush3.bf16.msra.mxu1 %v10638_v34  ;;  %v12108_v7 = vld [vmem:[#allocation23_spill] sm:$0xff]  ;;  %v12109_v34 = vld [vmem:[#allocation24_spill] sm:$0xff] }
 0x788   :  { %7632 = vmatprep.subr.bf16.mxu0 %v10645_v27  ;;  %7662 = vmatprep.subr.bf16.mxu1 %v11974_v59  ;;  %v12110_v27 = vld [vmem:[#allocation25_spill] sm:$0xff] }
 0x789   :  { %3983 = vmatprep.mubr.f32.mxu0 %v11976_v30  ;;  %6454 = vmatprep.mubr.msk.f32.mxu1 %vm8260_vm1, %v11976_v30 }
 0x78b   :  { %7634 = vmatpush1.bf16.msra.mxu0 %v10666_v23  ;;  %7664 = vmatpush3.bf16.msra.mxu1 %v12106_v52  ;;  %v12114_v23 = vld [vmem:[#allocation29_spill] sm:$0xff] }
 0x78c   :  { %7636 = vmatprep.subr.bf16.mxu0 %v12107_v19  ;;  %7665 = vmatprep.subr.bf16.mxu1 %v11974_v59  ;;  %v4119_v52 = vld [vmem:[%s11836_s3 + $0xd0] sm:$0xff]  ;;  %v4122_v19 = vld [vmem:[%s11836_s3 + $0xe8] sm:$0xff] }
 0x78f   :  { %7638 = vmatpush1.bf16.msra.mxu0 %v12108_v7  ;;  %7667 = vmatpush3.bf16.msra.mxu1 %v12109_v34  ;;  %v4124_v7 = vld [vmem:[%s11836_s3 + $0xf8] sm:$0xff]  ;;  %v4127_v34 = vld [vmem:[%s11836_s3 + $0x110] sm:$0xff] }
 0x790   :  { %7640 = vmatprep.subr.bf16.mxu0 %v12110_v27  ;;  %7668 = vmatprep.subr.bf16.mxu1 %v11974_v59  ;;  %v11118_v27 = vpack.c.bf16 %v4120_v3, %v4117_v24  ;;  %v4308_v24 = vld [vmem:[%s11837_s6 + $0x28] sm:$0xff] }
 0x791   :  { %v11233_v3 = vpack.c.bf16 %v4308_v24, %v4305_v2  ;;  %v11311_v2 = vpack.c.bf16 %v4324_v45, %v4321_v29  ;;  %v4326_v24 = vld [vmem:[%s11837_s6 + $0xb8] sm:$0xff]  ;;  %v4336_v29 = vld [vmem:[%s11837_s6 + $0x108] sm:$0xff]  ;;  %v4335_v45 = vld [vmem:[%s11837_s6 + $0x100] sm:$0xff] }
 0x793   :  { %7642 = vmatpush1.bf16.msra.mxu0 %v12111_v43  ;;  %7670 = vmatpush3.bf16.msra.mxu1 %v12112_v28  ;;  %v11120_v43 = vpack.c.bf16 %v4122_v19, %v4119_v52  ;;  %v4123_v28 = vld [vmem:[%s11836_s3 + $0xf0] sm:$0xff]  ;;  %v4310_v52 = vld [vmem:[%s11837_s6 + $0x38] sm:$0xff] }
 0x794   :  { %7644 = vmatprep.subr.bf16.mxu0 %v12113_v38  ;;  %7671 = vmatprep.subr.bf16.mxu1 %v11974_v59  ;;  %v11127_v38 = vpack.c.bf16 %v4127_v34, %v4124_v7  ;;  %v4313_v19 = vld [vmem:[%s11837_s6 + $0x50] sm:$0xff] }
 0x795   :  { %v11243_v7 = vpack.c.bf16 %v4313_v19, %v4310_v52  ;;  %v4309_v34 = vld [vmem:[%s11837_s6 + $0x30] sm:$0xff]  ;;  %v11317_v52 = vpack.c.bf16 %v4326_v24, %v4323_v15  ;;  %v4328_v19 = vld [vmem:[%s11837_s6 + $0xc8] sm:$0xff]  ;;  %v4338_v15 = vld [vmem:[%s11837_s6 + $0x118] sm:$0xff]  ;;  %v11369_v24 = vpack.c.bf16 %v4336_v29, %v4333_v57 }
 0x796   :  { %v4346_v57 = vld [vmem:[%s11837_s6 + $0x158] sm:$0xff]  ;;  %v4349_v29 = vld [vmem:[%s11837_s6 + $0x170] sm:$0xff] }
 0x797   :  { %7646 = vmatpush1.bf16.msra.mxu0 %v12114_v23  ;;  %7673 = vmatpush3.bf16.msra.mxu1 %v12115_v35  ;;  %v4126_v23 = vld [vmem:[%s11836_s3 + $0x108] sm:$0xff]  ;;  %v4125_v35 = vld [vmem:[%s11836_s3 + $0x100] sm:$0xff]  ;;  %12119 = vst [vmem:[#allocation12_spill] sm:$0xff] %v11369_v24 }
 0x798   :  { %7648 = vmatprep.subr.bf16.mxu0 %v12116_v16  ;;  %7674 = vmatprep.subr.bf16.mxu1 %v11974_v59  ;;  %v4128_v16 = vld [vmem:[%s11836_s3 + $0x118] sm:$0xff] }
 0x79b   :  { %7650 = vmatpush1.bf16.msra.mxu0 %v12117_v54  ;;  %7676 = vmatpush3.bf16.msra.mxu1 %v10783_v56  ;;  %v4093_v56 = vld [vmem:[%s11836_s3] sm:$0xff]  ;;  %v4130_v54 = vld [vmem:[%s11836_s3 + $0x128] sm:$0xff] }
 0x79c   :  { %7652 = vmatprep.subr.bf16.mxu0 %v10790_v36  ;;  %7677 = vmatprep.subr.bf16.mxu1 %v11974_v59  ;;  %v10982_v36 = vpack.c.bf16 %v4097_v20, %v4094_v22  ;;  %v11001_v21 = vpack.c.bf16 %v4096_v33, %v4093_v56  ;;  %v4133_v22 = vld [vmem:[%s11836_s3 + $0x140] sm:$0xff]  ;;  %v11146_v20 = vpack.c.bf16 %v4126_v23, %v4123_v28  ;;  %v4312_v28 = vld [vmem:[%s11837_s6 + $0x48] sm:$0xff] }
 0x79d   :  { %v11148_v56 = vpack.c.bf16 %v4128_v16, %v4125_v35  ;;  %v4129_v33 = vld [vmem:[%s11836_s3 + $0x120] sm:$0xff]  ;;  %v11255_v35 = vpack.c.bf16 %v4312_v28, %v4309_v34  ;;  %v4314_v16 = vld [vmem:[%s11837_s6 + $0x58] sm:$0xff] }
 0x79e   :  { %v4311_v23 = vld [vmem:[%s11837_s6 + $0x40] sm:$0xff] }
 0x79f   :  { %7654 = vmatpush1.bf16.msra.mxu0 %v10809_v50  ;;  %7679 = vmatpush3.bf16.msra.mxu1 %v10811_v47  ;;  %v4095_v50 = vld [vmem:[%s11836_s3 + $0x10] sm:$0xff]  ;;  %v4098_v47 = vld [vmem:[%s11836_s3 + $0x28] sm:$0xff]  ;;  %v4331_v34 = vld [vmem:[%s11837_s6 + $0xe0] sm:$0xff] }
 0x7a0   :  { %7656 = vmatprep.subr.bf16.mxu0 %v10818_v58  ;;  %7680 = vmatprep.subr.bf16.mxu1 %v11974_v59  ;;  %v4100_v58 = vld [vmem:[%s11836_s3 + $0x38] sm:$0xff]  ;;  %v11003_v41 = vpack.c.bf16 %v4098_v47, %v4095_v50  ;;  %v11155_v50 = vpack.c.bf16 %v4133_v22, %v4130_v54  ;;  %v11261_v54 = vpack.c.bf16 %v4314_v16, %v4311_v23  ;;  %v4316_v22 = vld [vmem:[%s11837_s6 + $0x68] sm:$0xff]  ;;  %v4327_v23 = vld [vmem:[%s11837_s6 + $0xc0] sm:$0xff] }
 0x7a1   :  { %v11010_v8 = vpack.c.bf16 %v4103_v37, %v4100_v58  ;;  %v4132_v47 = vld [vmem:[%s11836_s3 + $0x138] sm:$0xff]  ;;  %v4131_v58 = vld [vmem:[%s11836_s3 + $0x130] sm:$0xff]  ;;  %v4134_v37 = vld [vmem:[%s11836_s3 + $0x148] sm:$0xff]  ;;  %v11327_v28 = vpack.c.bf16 %v4331_v34, %v4328_v19  ;;  %v11371_v19 = vpack.c.bf16 %v4338_v15, %v4335_v45 }
 0x7a2   :  { %v4330_v16 = vld [vmem:[%s11837_s6 + $0xd8] sm:$0xff]  ;;  %v4340_v34 = vld [vmem:[%s11837_s6 + $0x128] sm:$0xff] }
 0x7a3   :  { %7658 = vmatpush1.bf16.msra.mxu0 %v10831_v62  ;;  %7682 = vmatpush3.bf16.msra.mxu1 %v10833_v31  ;;  %v4102_v62 = vld [vmem:[%s11836_s3 + $0x48] sm:$0xff]  ;;  %v4101_v31 = vld [vmem:[%s11836_s3 + $0x40] sm:$0xff]  ;;  %12120 = vst [vmem:[#allocation5_spill] sm:$0xff] %v11371_v19 }
 0x7a4   :  { %7684 = vmatprep.subr.bf16.mxu0 %v10982_v36  ;;  %7715 = vmatprep.subr.bf16.mxu1 %v11974_v59  ;;  %v11031_v9 = vpack.c.bf16 %v4102_v62, %v4099_v53  ;;  %v11033_v25 = vpack.c.bf16 %v4104_v13, %v4101_v31  ;;  %v4136_v53 = vld [vmem:[%s11836_s3 + $0x158] sm:$0xff]  ;;  %v4139_v62 = vld [vmem:[%s11836_s3 + $0x170] sm:$0xff]  ;;  %v11174_v31 = vpack.c.bf16 %v4132_v47, %v4129_v33  ;;  %v4319_v33 = vld [vmem:[%s11837_s6 + $0x80] sm:$0xff] }
 0x7a5   :  { %v11176_v13 = vpack.c.bf16 %v4134_v37, %v4131_v58  ;;  %v11183_v49 = vpack.c.bf16 %v4139_v62, %v4136_v53  ;;  %v11271_v47 = vpack.c.bf16 %v4319_v33, %v4316_v22  ;;  %v4315_v58 = vld [vmem:[%s11837_s6 + $0x60] sm:$0xff]  ;;  %v4318_v37 = vld [vmem:[%s11837_s6 + $0x78] sm:$0xff]  ;;  %v4317_v53 = vld [vmem:[%s11837_s6 + $0x70] sm:$0xff]  ;;  %v11339_v33 = vpack.c.bf16 %v4330_v16, %v4327_v23 }
 0x7a6   :  { %3984 = vmatmul.mubr.f32.vlgmr.msra.gmra.mrb[26].mxu0 %v10929_v4  ;;  %6455 = vmatmul.mubr.f32.vlgmr.msra.gmra.mrb[42].mxu1 %v10929_v4  ;;  %v11283_v62 = vpack.c.bf16 %v4318_v37, %v4315_v58  ;;  %v11289_v42 = vpack.c.bf16 %v4320_v48, %v4317_v53  ;;  %v4329_v22 = vld [vmem:[%s11837_s6 + $0xd0] sm:$0xff]  ;;  %v4332_v58 = vld [vmem:[%s11837_s6 + $0xe8] sm:$0xff]  ;;  %v4334_v53 = vld [vmem:[%s11837_s6 + $0xf8] sm:$0xff] }
 0x7a7   :  { %7686 = vmatpush1.bf16.msra.mxu0 %v11001_v21  ;;  %7717 = vmatpush3.bf16.msra.mxu1 %v11003_v41  ;;  %v11345_v37 = vpack.c.bf16 %v4332_v58, %v4329_v22  ;;  %v4337_v48 = vld [vmem:[%s11837_s6 + $0x110] sm:$0xff]  ;;  %v4343_v23 = vld [vmem:[%s11837_s6 + $0x140] sm:$0xff]  ;;  %v4342_v58 = vld [vmem:[%s11837_s6 + $0x138] sm:$0xff] }
 0x7a8   :  { %7688 = vmatprep.subr.bf16.mxu0 %v11010_v8  ;;  %7718 = vmatprep.subr.bf16.mxu1 %v11974_v59  ;;  %v11357_v40 = vpack.c.bf16 %v4337_v48, %v4334_v53  ;;  %v4339_v16 = vld [vmem:[%s11837_s6 + $0x120] sm:$0xff]  ;;  %v11384_v22 = vpack.c.bf16 %v4343_v23, %v4340_v34  ;;  %v4341_v53 = vld [vmem:[%s11837_s6 + $0x130] sm:$0xff]  ;;  %v4344_v48 = vld [vmem:[%s11837_s6 + $0x148] sm:$0xff]  ;;  %v11408_v34 = vpack.c.bf16 %v4349_v29, %v4346_v57 }
 0x7a9   :  { %4205 = vmatprep.mubr.f32.mxu0 %v11976_v30  ;;  %6489 = vmatprep.mubr.msk.f32.mxu1 %vm8260_vm1, %v11976_v30  ;;  %v11402_v45 = vpack.c.bf16 %v4342_v58, %v4339_v16  ;;  %v11406_v15 = vpack.c.bf16 %v4344_v48, %v4341_v53  ;;  %v4345_v23 = vld [vmem:[%s11837_s6 + $0x150] sm:$0xff]  ;;  %v4347_v16 = vld [vmem:[%s11837_s6 + $0x160] sm:$0xff]  ;;  %v4350_v58 = vld [vmem:[%s11837_s6 + $0x178] sm:$0xff] }
 0x7aa   :  { %12118 = vst [vmem:[#allocation32_spill] sm:$0xff] %v11357_v40  ;;  %12121 = vst [vmem:[#allocation6_spill] sm:$0xff] %v11384_v22  ;;  %v4493_v53 = vld [vmem:[%s11838_s7 + $0x8] sm:$0xff]  ;;  %v4496_v48 = vld [vmem:[%s11838_s7 + $0x20] sm:$0xff]  ;;  %v11434_v29 = vpack.c.bf16 %v4350_v58, %v4347_v16 }
 0x7ab   :  { %7690 = vmatpush1.bf16.msra.mxu0 %v11031_v9  ;;  %7720 = vmatpush3.bf16.msra.mxu1 %v11033_v25  ;;  %12122 = vst [vmem:[#allocation8_spill] sm:$0xff] %v11402_v45  ;;  %12123 = vst [vmem:[#allocation15_spill] sm:$0xff] %v11406_v15 }
 0x7ac   :  { %7692 = vmatprep.subr.bf16.mxu0 %v11040_v51  ;;  %7721 = vmatprep.subr.bf16.mxu1 %v11974_v59  ;;  %12124 = vst [vmem:[#allocation7_spill] sm:$0xff] %v11408_v34  ;;  %12126 = vst [vmem:[#allocation17_spill] sm:$0xff] %v11434_v29 }
 0x7af   :  { %7694 = vmatpush1.bf16.msra.mxu0 %v11062_v10  ;;  %7723 = vmatpush3.bf16.msra.mxu1 %v11064_v14 }
 0x7b0   :  { %7696 = vmatprep.subr.bf16.mxu0 %v11071_v55  ;;  %7724 = vmatprep.subr.bf16.mxu1 %v11974_v59 }
 0x7b3   :  { %7698 = vmatpush1.bf16.msra.mxu0 %v11090_v17  ;;  %7726 = vmatpush3.bf16.msra.mxu1 %v11092_v39 }
 0x7b4   :  { %7700 = vmatprep.subr.bf16.mxu0 %v11099_v6  ;;  %7727 = vmatprep.subr.bf16.mxu1 %v11974_v59 }
 0x7b7   :  { %7702 = vmatpush1.bf16.msra.mxu0 %v11118_v27  ;;  %7729 = vmatpush3.bf16.msra.mxu1 %v11120_v43 }
 0x7b8   :  { %7704 = vmatprep.subr.bf16.mxu0 %v11127_v38  ;;  %7730 = vmatprep.subr.bf16.mxu1 %v11974_v59 }
 0x7bb   :  { %7706 = vmatpush1.bf16.msra.mxu0 %v11146_v20  ;;  %7732 = vmatpush3.bf16.msra.mxu1 %v11148_v56 }
 0x7bc   :  { %7708 = vmatprep.subr.bf16.mxu0 %v11155_v50  ;;  %7733 = vmatprep.subr.bf16.mxu1 %v11974_v59 }
 0x7bf   :  { %7710 = vmatpush1.bf16.msra.mxu0 %v11174_v31  ;;  %7735 = vmatpush3.bf16.msra.mxu1 %v11176_v13 }
 0x7c0   :  { %7712 = vmatprep.subr.bf16.mxu0 %v11183_v49  ;;  %7736 = vmatprep.subr.bf16.mxu1 %v11974_v59 }
 0x7c3   :  { %7714 = vmatpush1.bf16.msra.mxu0 %v11196_v44  ;;  %7738 = vmatpush3.bf16.msra.mxu1 %v11198_v11 }
 0x7c4   :  { %7771 = vmatprep.subr.bf16.mxu1 %v11974_v59  ;;  %7740 = vmatprep.subr.bf16.mxu0 %v11216_v32 }
 0x7c6   :  { %4206 = vmatmul.mubr.f32.vlgmr.msra.gmra.mrb[12].mxu0 %v10938_v63  ;;  %6490 = vmatmul.mubr.f32.vlgmr.msra.gmra.mrb[44].mxu1 %v10938_v63 }
 0x7c7   :  { %4415 = vmatprep.mubr.f32.mxu0 %v11976_v30  ;;  %6524 = vmatprep.mubr.msk.f32.mxu1 %vm8260_vm1, %v11976_v30 }
 0x7c8   :  { %7742 = vmatpush1.bf16.msra.mxu0 %v11227_v26  ;;  %7773 = vmatpush3.bf16.msra.mxu1 %v11233_v3 }
 0x7c9   :  { %7774 = vmatprep.subr.bf16.mxu1 %v11974_v59  ;;  %7744 = vmatprep.subr.bf16.mxu0 %v11243_v7 }
 0x7cc   :  { %7746 = vmatpush1.bf16.msra.mxu0 %v11255_v35  ;;  %7776 = vmatpush3.bf16.msra.mxu1 %v11261_v54 }
 0x7cd   :  { %7777 = vmatprep.subr.bf16.mxu1 %v11974_v59  ;;  %7748 = vmatprep.subr.bf16.mxu0 %v11271_v47 }
 0x7d0   :  { %7750 = vmatpush1.bf16.msra.mxu0 %v11283_v62  ;;  %7779 = vmatpush3.bf16.msra.mxu1 %v11289_v42 }
 0x7d1   :  { %7780 = vmatprep.subr.bf16.mxu1 %v11974_v59  ;;  %7752 = vmatprep.subr.bf16.mxu0 %v11299_v12 }
 0x7d4   :  { %7754 = vmatpush1.bf16.msra.mxu0 %v11311_v2  ;;  %7782 = vmatpush3.bf16.msra.mxu1 %v11317_v52 }
 0x7d5   :  { %7783 = vmatprep.subr.bf16.mxu1 %v11974_v59  ;;  %7756 = vmatprep.subr.bf16.mxu0 %v11327_v28 }
 0x7d8   :  { %7758 = vmatpush1.bf16.msra.mxu0 %v11339_v33  ;;  %7785 = vmatpush3.bf16.msra.mxu1 %v11345_v37 }
 0x7d9   :  { %7760 = vmatprep.subr.bf16.mxu0 %v11357_v40  ;;  %7786 = vmatprep.subr.bf16.mxu1 %v11974_v59  ;;  %v4348_v40 = vld [vmem:[%s11837_s6 + $0x168] sm:$0xff] }
 0x7da   :  { %v11430_v57 = vpack.c.bf16 %v4348_v40, %v4345_v23 }
 0x7dc   :  { %7762 = vmatpush1.bf16.msra.mxu0 %v11369_v24  ;;  %7788 = vmatpush3.bf16.msra.mxu1 %v11371_v19  ;;  %12125 = vst [vmem:[#allocation16_spill] sm:$0xff] %v11430_v57 }
 0x7dd   :  { %7764 = vmatprep.subr.bf16.mxu0 %v11384_v22  ;;  %7789 = vmatprep.subr.bf16.mxu1 %v11974_v59  ;;  %v11436_v22 = vpack.c.bf16 %v4496_v48, %v4493_v53 }
 0x7df   :  { %12127 = vst [vmem:[#allocation18_spill] sm:$0xff] %v11436_v22 }
 0x7e0   :  { %7766 = vmatpush1.bf16.msra.mxu0 %v11402_v45  ;;  %7791 = vmatpush3.bf16.msra.mxu1 %v11406_v15 }
 0x7e1   :  { %7768 = vmatprep.subr.bf16.mxu0 %v11408_v34  ;;  %7792 = vmatprep.subr.bf16.mxu1 %v11974_v59 }
 0x7e4   :  { %7770 = vmatpush1.bf16.msra.mxu0 %v11430_v57  ;;  %7794 = vmatpush3.bf16.msra.mxu1 %v11434_v29 }
 0x7e5   :  { %7796 = vmatprep.subr.bf16.mxu0 %v11436_v22  ;;  %7827 = vmatprep.subr.bf16.mxu1 %v11974_v59  ;;  %v11448_v22 = vld [vmem:[%s11840_s1] sm:$0xff] }
 0x7e6   :  { %12128 = vst [vmem:[#allocation19_spill] sm:$0xff] %v11448_v22  ;;  %vm4702_vm13 = vcmp.gt.s32.totalorder %v11448_v22, 6 }
 0x859   :  { %v3867_v40 = vpop.f32.mrb[40].mxu1 }
 0x85a   :  { %v6421_v23 = vpop.f32.mrb[41].mxu1 }
 0x879   :  { %v3985_v45 = vpop.f32.mrb[26].mxu0  ;;  %v4056_v15 = vpop.f32.mrb[42].mxu1 }
 0x87a   :  { %v8045_v34 = vadd.f32 %v3985_v45, %v12101_v1  ;;  %v3987_v16 = vpop.f32.mrb[27].mxu0  ;;  %v6456_v58 = vpop.f32.mrb[43].mxu1  ;;  %v4703_v45 = vsel %vm4702_vm13, 1, %v12104_v61 }
 0x87b   :  { %v8046_v48 = vadd.f32 %v3987_v16, %v12102_v0  ;;  %4705 = vperm.xlu0 %8087, %v4703_v45   ;;  %v3868_v16 = vadd.f32 %v3867_v40, %v9217_v46 }
 0x87c   :  { %v5380_v53 = vmul.f32 -1.442695, %v8045_v34  ;;  %v4074_v34 = vadd.f32 %v10922_v60, %v4056_v15  ;;  %v4085_v60 = vpop.permute.xlu1 %4084 }
 0x87d   :  { %v5381_v19 = vmul.f32 -1.442695, %v8046_v48  ;;  %vm4086_vm14 = vcmp.eq.s32.totalorder %v4085_v60, 1  ;;  %v4492_v60 = vld [vmem:[%s11838_s7] sm:$0xff] }
 0x87e   :  { %8199 = vpow2.f32 %v5380_v53 }
 0x87f   :  { %8201 = vpow2.f32 %v5381_v19 }
 0x888   :  { %v8200_v57 = vpop.eup %8199 }
 0x889   :  { %v4064_v24 = vadd.f32 1.0, %v8200_v57  ;;  %v8202_v23 = vpop.eup %8201 }
 0x88a   :  { %v4071_v19 = vadd.f32 1.0, %v8202_v23 }
 0x88b   :  { %8203 = vrcp.f32 %v4064_v24 }
 0x895   :  { %v8204_v58 = vpop.eup %8203 }
 0x896   :  { %v4075_v53 = vmul.f32 %v8204_v58, %v4074_v34 }
 0x898   :  { %v4076_v57 = vadd.f32 %v4075_v53, %v3868_v16 }
 0x899   :  { %v4207_v24 = vpop.f32.mrb[12].mxu0  ;;  %v4278_v48 = vpop.f32.mrb[44].mxu1 }
 0x89a   :  { %8205 = vtanh.f32 %v4076_v57  ;;  %v8031_v0 = vadd.f32 %v4207_v24, %v8877_v5  ;;  %v4209_v1 = vpop.f32.mrb[13].mxu0  ;;  %v6491_v29 = vpop.f32.mrb[45].mxu1 }
 0x89b   :  { %8207 = vrcp.f32 %v4071_v19  ;;  %v8032_v45 = vadd.f32 %v4209_v1, %v8889_v18 }
 0x89c   :  { %v5383_v22 = vmul.f32 -1.442695, %v8031_v0  ;;  %v11466_v0 = vld [vmem:[%s11841_s5] ss:$0 sm:$0xff] }
 0x89d   :  { %v5384_v34 = vmul.f32 -1.442695, %v8032_v45 }
 0x89e   :  { %8209 = vpow2.f32 %v5383_v22 }
 0x89f   :  { %8211 = vpow2.f32 %v5384_v34  ;;  %v4497_v34 = vld [vmem:[%s11838_s7 + $0x28] sm:$0xff] }
 0x8a4   :  { %v8206_v61 = vpop.eup %8205 }
 0x8a5   :  { %v4078_v15 = vsub.f32 %v10929_v4, %v8206_v61  ;;  %v8208_v40 = vpop.eup %8207  ;;  %v4296_v4 = vadd.f32 %v11466_v0, %v4278_v48  ;;  %v4494_v48 = vld [vmem:[%s11838_s7 + $0x10] sm:$0xff] }
 0x8a7   :  { %v4079_v58 = vmul.f32 %v8208_v40, %v4078_v15  ;;  %v4495_v40 = vld [vmem:[%s11838_s7 + $0x18] sm:$0xff] }
 0x8a8   :  { %v8210_v23 = vpop.eup %8209 }
 0x8a9   :  { %v4286_v16 = vadd.f32 1.0, %v8210_v23  ;;  %v11457_v53 = vadd.f32 %v8206_v61, %v4079_v58  ;;  %v8212_v1 = vpop.eup %8211  ;;  %v12129_v61 = vld [vmem:[#allocation14_spill] sm:$0xff] }
 0x8aa   :  { %v4293_v24 = vadd.f32 1.0, %v8212_v1  ;;  %v4499_v23 = vld [vmem:[%s11838_s7 + $0x38] sm:$0xff]  ;;  %v11491_v1 = vpack.c.bf16 %v4497_v34, %v4494_v48  ;;  %v4504_v48 = vld [vmem:[%s11838_s7 + $0x60] sm:$0xff] }
 0x8ab   :  { %8213 = vrcp.f32 %v4286_v16  ;;  %v4087_v29 = vsel %vm4086_vm14, %v11457_v53, 0.0 }
 0x8ac   :  { %5382 = vst [vmem:[%s11844_s10 + $0x28] sm:$0xff] %v4087_v29  ;;  %v11489_v29 = vpack.c.bf16 %v4495_v40, %v4492_v60  ;;  %v4505_v60 = vld [vmem:[%s11838_s7 + $0x68] sm:$0xff] }
 0x8b5   :  { %v8214_v22 = vpop.eup %8213 }
 0x8b6   :  { %v4297_v57 = vmul.f32 %v8214_v22, %v4296_v4  ;;  %v4498_v4 = vld [vmem:[%s11838_s7 + $0x30] sm:$0xff] }
 0x8b8   :  { %v4298_v19 = vadd.f32 %v4297_v57, %v12129_v61  ;;  %v4501_v61 = vld [vmem:[%s11838_s7 + $0x48] sm:$0xff] }
 0x8ba   :  { %8215 = vtanh.f32 %v4298_v19  ;;  %v4500_v19 = vld [vmem:[%s11838_s7 + $0x40] sm:$0xff] }
 0x8bb   :  { %8217 = vrcp.f32 %v4293_v24  ;;  %v4503_v24 = vld [vmem:[%s11838_s7 + $0x58] sm:$0xff] }
 0x8bc   :  { %v11521_v40 = vpack.c.bf16 %v4503_v24, %v4500_v19  ;;  %v4510_v24 = vld [vmem:[%s11838_s7 + $0x90] sm:$0xff] }
 0x8be   :  { %12130 = vst [vmem:[#allocation20_spill] sm:$0xff] %v11521_v40 }
 0x8c4   :  { %v8216_v45 = vpop.eup %8215 }
 0x8c5   :  { %v4300_v15 = vsub.f32 %v10938_v63, %v8216_v45  ;;  %v8218_v58 = vpop.eup %8217  ;;  %v4502_v63 = vld [vmem:[%s11838_s7 + $0x50] sm:$0xff] }
 0x8c6   :  { %v11498_v57 = vpack.c.bf16 %v4502_v63, %v4499_v23  ;;  %v4506_v23 = vld [vmem:[%s11838_s7 + $0x70] sm:$0xff]  ;;  %v4509_v63 = vld [vmem:[%s11838_s7 + $0x88] sm:$0xff] }
 0x8c7   :  { %v4301_v16 = vmul.f32 %v8218_v58, %v4300_v15  ;;  %v11519_v15 = vpack.c.bf16 %v4501_v61, %v4498_v4  ;;  %v4507_v58 = vld [vmem:[%s11838_s7 + $0x78] sm:$0xff]  ;;  %v4514_v4 = vld [vmem:[%s11838_s7 + $0xb0] sm:$0xff]  ;;  %v11552_v19 = vpack.c.bf16 %v4509_v63, %v4506_v23  ;;  %v4517_v23 = vld [vmem:[%s11838_s7 + $0xc8] sm:$0xff] }
 0x8c8   :  { %v11550_v61 = vpack.c.bf16 %v4507_v58, %v4504_v48  ;;  %v4512_v48 = vld [vmem:[%s11838_s7 + $0xa0] sm:$0xff]  ;;  %v4515_v58 = vld [vmem:[%s11838_s7 + $0xb8] sm:$0xff] }
 0x8c9   :  { %v11496_v22 = vadd.f32 %v8216_v45, %v4301_v16  ;;  %v4508_v45 = vld [vmem:[%s11838_s7 + $0x80] sm:$0xff]  ;;  %v4511_v16 = vld [vmem:[%s11838_s7 + $0x98] sm:$0xff]  ;;  %12133 = vst [vmem:[#allocation9_spill] sm:$0xff] %v11552_v19 }
 0x8ca   :  { %v11528_v34 = vpack.c.bf16 %v4508_v45, %v4505_v60  ;;  %12132 = vst [vmem:[#allocation11_spill] sm:$0xff] %v11550_v61  ;;  %v11559_v60 = vpack.c.bf16 %v4514_v4, %v4511_v16  ;;  %v4513_v45 = vld [vmem:[%s11838_s7 + $0xa8] sm:$0xff]  ;;  %v4520_v63 = vld [vmem:[%s11838_s7 + $0xe0] sm:$0xff]  ;;  %v11580_v4 = vpack.c.bf16 %v4515_v58, %v4512_v48  ;;  %v4523_v48 = vld [vmem:[%s11838_s7 + $0xf8] sm:$0xff] }
 0x8cb   :  { %4416 = vmatmul.mubr.f32.vlgmr.msra.gmra.mrb[28].mxu0 %v11496_v22  ;;  %6525 = vmatmul.mubr.f32.vlgmr.msra.gmra.mrb[46].mxu1 %v11496_v22  ;;  %v11578_v16 = vpack.c.bf16 %v4513_v45, %v4510_v24  ;;  %v4518_v24 = vld [vmem:[%s11838_s7 + $0xd0] sm:$0xff]  ;;  %v4521_v45 = vld [vmem:[%s11838_s7 + $0xe8] sm:$0xff] }
 0x8cc   :  { %7798 = vmatpush1.bf16.msra.mxu0 %v11489_v29  ;;  %7829 = vmatpush3.bf16.msra.mxu1 %v11491_v1  ;;  %12131 = vst [vmem:[#allocation21_spill] sm:$0xff] %v11528_v34  ;;  %12134 = vst [vmem:[#allocation22_spill] sm:$0xff] %v11559_v60  ;;  %v4526_v58 = vld [vmem:[%s11838_s7 + $0x110] sm:$0xff] }
 0x8cd   :  { %7800 = vmatprep.subr.bf16.mxu0 %v11498_v57  ;;  %7830 = vmatprep.subr.bf16.mxu1 %v11974_v59  ;;  %12135 = vst [vmem:[#allocation23_spill] sm:$0xff] %v11578_v16  ;;  %12136 = vst [vmem:[#allocation24_spill] sm:$0xff] %v11580_v4 }
 0x8ce   :  { %4604 = vmatprep.mubr.f32.mxu0 %v11976_v30  ;;  %6559 = vmatprep.mubr.msk.f32.mxu1 %vm8260_vm1, %v11976_v30 }
 0x8d0   :  { %7802 = vmatpush1.bf16.msra.mxu0 %v11519_v15  ;;  %7832 = vmatpush3.bf16.msra.mxu1 %v11521_v40  ;;  %v11587_v40 = vpack.c.bf16 %v4520_v63, %v4517_v23  ;;  %v11608_v63 = vpack.c.bf16 %v4521_v45, %v4518_v24  ;;  %v4529_v24 = vld [vmem:[%s11838_s7 + $0x128] sm:$0xff]  ;;  %v4532_v45 = vld [vmem:[%s11838_s7 + $0x140] sm:$0xff] }
 0x8d1   :  { %7804 = vmatprep.subr.bf16.mxu0 %v11528_v34  ;;  %7833 = vmatprep.subr.bf16.mxu1 %v11974_v59  ;;  %v4516_v34 = vld [vmem:[%s11838_s7 + $0xc0] sm:$0xff] }
 0x8d2   :  { %12137 = vst [vmem:[#allocation25_spill] sm:$0xff] %v11587_v40  ;;  %12139 = vst [vmem:[#allocation27_spill] sm:$0xff] %v11608_v63 }
 0x8d4   :  { %7806 = vmatpush1.bf16.msra.mxu0 %v11550_v61  ;;  %7835 = vmatpush3.bf16.msra.mxu1 %v11552_v19  ;;  %v4519_v61 = vld [vmem:[%s11838_s7 + $0xd8] sm:$0xff]  ;;  %v11615_v19 = vpack.c.bf16 %v4526_v58, %v4523_v48 }
 0x8d5   :  { %7808 = vmatprep.subr.bf16.mxu0 %v11559_v60  ;;  %7836 = vmatprep.subr.bf16.mxu1 %v11974_v59  ;;  %v11606_v23 = vpack.c.bf16 %v4519_v61, %v4516_v34  ;;  %v4522_v60 = vld [vmem:[%s11838_s7 + $0xf0] sm:$0xff]  ;;  %v4524_v34 = vld [vmem:[%s11838_s7 + $0x100] sm:$0xff]  ;;  %v4527_v61 = vld [vmem:[%s11838_s7 + $0x118] sm:$0xff] }
 0x8d6   :  { %12140 = vst [vmem:[#allocation28_spill] sm:$0xff] %v11615_v19  ;;  %v11636_v58 = vpack.c.bf16 %v4527_v61, %v4524_v34  ;;  %v4535_v34 = vld [vmem:[%s11838_s7 + $0x158] sm:$0xff]  ;;  %v4538_v61 = vld [vmem:[%s11838_s7 + $0x170] sm:$0xff] }
 0x8d7   :  { %12138 = vst [vmem:[#allocation26_spill] sm:$0xff] %v11606_v23 }
 0x8d8   :  { %7810 = vmatpush1.bf16.msra.mxu0 %v11578_v16  ;;  %7838 = vmatpush3.bf16.msra.mxu1 %v11580_v4  ;;  %v4525_v16 = vld [vmem:[%s11838_s7 + $0x108] sm:$0xff]  ;;  %v11643_v4 = vpack.c.bf16 %v4532_v45, %v4529_v24 }
 0x8d9   :  { %7812 = vmatprep.subr.bf16.mxu0 %v11587_v40  ;;  %7839 = vmatprep.subr.bf16.mxu1 %v11974_v59  ;;  %v11634_v48 = vpack.c.bf16 %v4525_v16, %v4522_v60  ;;  %v4528_v40 = vld [vmem:[%s11838_s7 + $0x120] sm:$0xff]  ;;  %v4530_v60 = vld [vmem:[%s11838_s7 + $0x130] sm:$0xff]  ;;  %v4533_v16 = vld [vmem:[%s11838_s7 + $0x148] sm:$0xff] }
 0x8da   :  { %v11664_v45 = vpack.c.bf16 %v4533_v16, %v4530_v60 }
 0x8db   :  { %12141 = vst [vmem:[#allocation29_spill] sm:$0xff] %v11634_v48 }
 0x8dc   :  { %7814 = vmatpush1.bf16.msra.mxu0 %v11606_v23  ;;  %7841 = vmatpush3.bf16.msra.mxu1 %v11608_v63  ;;  %v4531_v23 = vld [vmem:[%s11838_s7 + $0x138] sm:$0xff]  ;;  %v11671_v63 = vpack.c.bf16 %v4538_v61, %v4535_v34 }
 0x8dd   :  { %7816 = vmatprep.subr.bf16.mxu0 %v11615_v19  ;;  %7842 = vmatprep.subr.bf16.mxu1 %v11974_v59  ;;  %v11662_v24 = vpack.c.bf16 %v4531_v23, %v4528_v40  ;;  %v4534_v19 = vld [vmem:[%s11838_s7 + $0x150] sm:$0xff]  ;;  %v4536_v40 = vld [vmem:[%s11838_s7 + $0x160] sm:$0xff]  ;;  %v4539_v23 = vld [vmem:[%s11838_s7 + $0x178] sm:$0xff] }
 0x8de   :  { %v11686_v16 = vpack.c.bf16 %v4539_v23, %v4536_v40 }
 0x8e0   :  { %7818 = vmatpush1.bf16.msra.mxu0 %v11634_v48  ;;  %7844 = vmatpush3.bf16.msra.mxu1 %v11636_v58  ;;  %v4537_v48 = vld [vmem:[%s11838_s7 + $0x168] sm:$0xff] }
 0x8e1   :  { %7820 = vmatprep.subr.bf16.mxu0 %v11643_v4  ;;  %7845 = vmatprep.subr.bf16.mxu1 %v11974_v59  ;;  %v11684_v60 = vpack.c.bf16 %v4537_v48, %v4534_v19 }
 0x8e4   :  { %7822 = vmatpush1.bf16.msra.mxu0 %v11662_v24  ;;  %7847 = vmatpush3.bf16.msra.mxu1 %v11664_v45 }
 0x8e5   :  { %7824 = vmatprep.subr.bf16.mxu0 %v11671_v63  ;;  %7848 = vmatprep.subr.bf16.mxu1 %v11974_v59 }
 0x8e8   :  { %7826 = vmatpush1.bf16.msra.mxu0 %v11684_v60  ;;  %7850 = vmatpush3.bf16.msra.mxu1 %v11686_v16 }
 0x8e9   :  { %7852 = vmatprep.subr.bf16.mxu0 %v10982_v36  ;;  %7883 = vmatprep.subr.bf16.mxu1 %v11974_v59  ;;  %v12142_v36 = vld [vmem:[#allocation32_spill] sm:$0xff] }
 0x8eb   :  { %4605 = vmatmul.mubr.f32.vlgmr.msra.gmra.mrb[28].mxu0 %v11457_v53  ;;  %6560 = vmatmul.mubr.f32.vlgmr.msra.gmra.mrb[48].mxu1 %v11457_v53 }
 0x8ec   :  { %7854 = vmatpush1.bf16.msra.mxu0 %v11001_v21  ;;  %7885 = vmatpush3.bf16.msra.mxu1 %v11003_v41  ;;  %v12143_v21 = vld [vmem:[#allocation12_spill] sm:$0xff]  ;;  %v12144_v41 = vld [vmem:[#allocation5_spill] sm:$0xff] }
 0x8ed   :  { %7856 = vmatprep.subr.bf16.mxu0 %v11010_v8  ;;  %7886 = vmatprep.subr.bf16.mxu1 %v11974_v59  ;;  %v12145_v8 = vld [vmem:[#allocation6_spill] sm:$0xff] }
 0x8ee   :  { %4826 = vmatprep.mubr.f32.mxu0 %v11976_v30  ;;  %6594 = vmatprep.mubr.msk.f32.mxu1 %vm8260_vm1, %v11976_v30 }
 0x8f0   :  { %7858 = vmatpush1.bf16.msra.mxu0 %v11031_v9  ;;  %7888 = vmatpush3.bf16.msra.mxu1 %v11033_v25  ;;  %v12146_v9 = vld [vmem:[#allocation8_spill] sm:$0xff]  ;;  %v12147_v25 = vld [vmem:[#allocation15_spill] sm:$0xff] }
 0x8f1   :  { %7860 = vmatprep.subr.bf16.mxu0 %v11040_v51  ;;  %7889 = vmatprep.subr.bf16.mxu1 %v11974_v59  ;;  %v12148_v51 = vld [vmem:[#allocation7_spill] sm:$0xff] }
 0x8f4   :  { %7862 = vmatpush1.bf16.msra.mxu0 %v11062_v10  ;;  %7891 = vmatpush3.bf16.msra.mxu1 %v11064_v14  ;;  %v12149_v10 = vld [vmem:[#allocation16_spill] sm:$0xff]  ;;  %v12150_v14 = vld [vmem:[#allocation17_spill] sm:$0xff] }
 0x8f5   :  { %7864 = vmatprep.subr.bf16.mxu0 %v11071_v55  ;;  %7892 = vmatprep.subr.bf16.mxu1 %v11974_v59  ;;  %v12151_v55 = vld [vmem:[#allocation18_spill] sm:$0xff] }
 0x8f8   :  { %7866 = vmatpush1.bf16.msra.mxu0 %v11090_v17  ;;  %7894 = vmatpush3.bf16.msra.mxu1 %v11092_v39 }
 0x8f9   :  { %7868 = vmatprep.subr.bf16.mxu0 %v11099_v6  ;;  %7895 = vmatprep.subr.bf16.mxu1 %v11974_v59  ;;  %v12152_v6 = vld [vmem:[#allocation19_spill] sm:$0xff] }
 0x8fa   :  { %vm5323_vm15 = vcmp.gt.s32.totalorder %v12152_v6, 7  ;;  %v4706_v40 = vpop.permute.xlu0 %4705 }
 0x8fb   :  { %vm4707_vm0 = vcmp.eq.s32.totalorder %v4706_v40, 1 }
 0x8fc   :  { %7870 = vmatpush1.bf16.msra.mxu0 %v11118_v27  ;;  %7897 = vmatpush3.bf16.msra.mxu1 %v11120_v43  ;;  %v12153_v27 = vmov 0  }
 0x8fd   :  { %7872 = vmatprep.subr.bf16.mxu0 %v11127_v38  ;;  %7898 = vmatprep.subr.bf16.mxu1 %v11974_v59  ;;  %v5324_v43 = vsel %vm5323_vm15, 1, %v12153_v27 }
 0x8fe   :  { %5326 = vperm.xlu1 %8088, %v5324_v43  }
 0x900   :  { %7874 = vmatpush1.bf16.msra.mxu0 %v11146_v20  ;;  %7900 = vmatpush3.bf16.msra.mxu1 %v11148_v56  ;;  %v12154_v56 = vld [vmem:[#allocation3_spill] sm:$0xff] }
 0x901   :  { %7876 = vmatprep.subr.bf16.mxu0 %v11155_v50  ;;  %7901 = vmatprep.subr.bf16.mxu1 %v11974_v59 }
 0x904   :  { %7878 = vmatpush1.bf16.msra.mxu0 %v11174_v31  ;;  %7903 = vmatpush3.bf16.msra.mxu1 %v11176_v13 }
 0x905   :  { %7880 = vmatprep.subr.bf16.mxu0 %v11183_v49  ;;  %7904 = vmatprep.subr.bf16.mxu1 %v11974_v59 }
 0x908   :  { %7882 = vmatpush1.bf16.msra.mxu0 %v11196_v44  ;;  %7906 = vmatpush3.bf16.msra.mxu1 %v11198_v11  ;;  %v12155_v44 = vld [vmem:[#allocation4_spill] sm:$0xff] }
 0x909   :  { %7908 = vmatprep.subr.bf16.mxu0 %v11216_v32  ;;  %7939 = vmatprep.subr.bf16.mxu1 %v11974_v59 }
 0x90b   :  { %4827 = vmatmul.mubr.f32.vlgmr.msra.gmra.mrb[14].mxu0 %v11496_v22  ;;  %6595 = vmatmul.mubr.f32.vlgmr.msra.gmra.mrb[50].mxu1 %v11496_v22 }
 0x90c   :  { %7910 = vmatpush1.bf16.msra.mxu0 %v11227_v26  ;;  %7941 = vmatpush3.bf16.msra.mxu1 %v11233_v3 }
 0x90d   :  { %7912 = vmatprep.subr.bf16.mxu0 %v11243_v7  ;;  %7942 = vmatprep.subr.bf16.mxu1 %v11974_v59 }
 0x90e   :  { %5036 = vmatprep.mubr.f32.mxu0 %v11976_v30  ;;  %6629 = vmatprep.mubr.msk.f32.mxu1 %vm8260_vm1, %v11976_v30 }
 0x910   :  { %7914 = vmatpush1.bf16.msra.mxu0 %v11255_v35  ;;  %7944 = vmatpush3.bf16.msra.mxu1 %v11261_v54  ;;  %v11775_v35 = vld [vmem:[%s11843_s9] ss:$0 sm:$0xff] }
 0x911   :  { %7916 = vmatprep.subr.bf16.mxu0 %v11271_v47  ;;  %7945 = vmatprep.subr.bf16.mxu1 %v11974_v59 }
 0x914   :  { %7918 = vmatpush1.bf16.msra.mxu0 %v11283_v62  ;;  %7947 = vmatpush3.bf16.msra.mxu1 %v11289_v42 }
 0x915   :  { %7920 = vmatprep.subr.bf16.mxu0 %v11299_v12  ;;  %7948 = vmatprep.subr.bf16.mxu1 %v11974_v59 }
 0x918   :  { %7922 = vmatpush1.bf16.msra.mxu0 %v11311_v2  ;;  %7950 = vmatpush3.bf16.msra.mxu1 %v11317_v52 }
 0x919   :  { %7924 = vmatprep.subr.bf16.mxu0 %v11327_v28  ;;  %7951 = vmatprep.subr.bf16.mxu1 %v11974_v59 }
 0x91c   :  { %7926 = vmatpush1.bf16.msra.mxu0 %v11339_v33  ;;  %7953 = vmatpush3.bf16.msra.mxu1 %v11345_v37 }
 0x91d   :  { %7928 = vmatprep.subr.bf16.mxu0 %v12142_v36  ;;  %7954 = vmatprep.subr.bf16.mxu1 %v11974_v59 }
 0x920   :  { %7930 = vmatpush1.bf16.msra.mxu0 %v12143_v21  ;;  %7956 = vmatpush3.bf16.msra.mxu1 %v12144_v41 }
 0x921   :  { %7932 = vmatprep.subr.bf16.mxu0 %v12145_v8  ;;  %7957 = vmatprep.subr.bf16.mxu1 %v11974_v59 }
 0x924   :  { %7934 = vmatpush1.bf16.msra.mxu0 %v12146_v9  ;;  %7959 = vmatpush3.bf16.msra.mxu1 %v12147_v25 }
 0x925   :  { %7936 = vmatprep.subr.bf16.mxu0 %v12148_v51  ;;  %7960 = vmatprep.subr.bf16.mxu1 %v11974_v59 }
 0x928   :  { %7938 = vmatpush1.bf16.msra.mxu0 %v12149_v10  ;;  %7962 = vmatpush3.bf16.msra.mxu1 %v12150_v14  ;;  %v12156_v14 = vld [vmem:[#allocation13_spill] sm:$0xff] }
 0x929   :  { %7964 = vmatprep.subr.bf16.mxu0 %v12151_v55  ;;  %7995 = vmatprep.subr.bf16.mxu1 %v11974_v59 }
 0x99e   :  { %v4488_v17 = vpop.f32.mrb[46].mxu1 }
 0x99f   :  { %v6526_v39 = vpop.f32.mrb[47].mxu1  ;;  %v4489_v62 = vadd.f32 %v4488_v17, %v9217_v46 }
 0x9be   :  { %v4606_v38 = vpop.f32.mrb[28].mxu0  ;;  %v4677_v20 = vpop.f32.mrb[48].mxu1 }
 0x9bf   :  { %v8047_v50 = vadd.f32 %v4606_v38, %v12154_v56  ;;  %v4608_v31 = vpop.f32.mrb[29].mxu0  ;;  %v6561_v13 = vpop.f32.mrb[49].mxu1  ;;  %v4695_v54 = vadd.f32 %v11775_v35, %v4677_v20  ;;  %v12162_v20 = vld [vmem:[#allocation23_spill] sm:$0xff] }
 0x9c0   :  { %v8048_v11 = vadd.f32 %v4608_v31, %v12155_v44  ;;  %v12166_v31 = vld [vmem:[#allocation27_spill] sm:$0xff]  ;;  %v12167_v13 = vld [vmem:[#allocation28_spill] sm:$0xff] }
 0x9c1   :  { %v5385_v49 = vmul.f32 -1.442695, %v8047_v50  ;;  %v12163_v50 = vld [vmem:[#allocation24_spill] sm:$0xff] }
 0x9c2   :  { %v5386_v32 = vmul.f32 -1.442695, %v8048_v11 }
 0x9c3   :  { %8219 = vpow2.f32 %v5385_v49  ;;  %v12168_v49 = vld [vmem:[#allocation29_spill] sm:$0xff] }
 0x9c4   :  { %8221 = vpow2.f32 %v5386_v32 }
 0x9cd   :  { %v8220_v26 = vpop.eup %8219 }
 0x9ce   :  { %v4685_v3 = vadd.f32 1.0, %v8220_v26  ;;  %v8222_v7 = vpop.eup %8221 }
 0x9cf   :  { %v4692_v2 = vadd.f32 1.0, %v8222_v7 }
 0x9d0   :  { %8223 = vrcp.f32 %v4685_v3 }
 0x9da   :  { %v8224_v47 = vpop.eup %8223 }
 0x9db   :  { %v4696_v42 = vmul.f32 %v8224_v47, %v4695_v54 }
 0x9dd   :  { %v4697_v12 = vadd.f32 %v4696_v42, %v4489_v62 }
 0x9de   :  { %v4828_v52 = vpop.f32.mrb[14].mxu0  ;;  %v4899_v28 = vpop.f32.mrb[50].mxu1 }
 0x9df   :  { %8225 = vtanh.f32 %v4697_v12  ;;  %v8033_v33 = vadd.f32 %v4828_v52, %v8877_v5  ;;  %v4830_v37 = vpop.f32.mrb[15].mxu0  ;;  %v6596_v19 = vpop.f32.mrb[51].mxu1  ;;  %v4917_v51 = vadd.f32 %v11466_v0, %v4899_v28  ;;  %v12157_v0 = vld [vmem:[#allocation20_spill] sm:$0xff] }
 0x9e0   :  { %8227 = vrcp.f32 %v4692_v2  ;;  %v8034_v34 = vadd.f32 %v4830_v37, %v8889_v18  ;;  %v5327_v28 = vpop.permute.xlu1 %5326 }
 0x9e1   :  { %v5388_v48 = vmul.f32 -1.442695, %v8033_v33 }
 0x9e2   :  { %v5389_v21 = vmul.f32 -1.442695, %v8034_v34 }
 0x9e3   :  { %8229 = vpow2.f32 %v5388_v48 }
 0x9e4   :  { %8231 = vpow2.f32 %v5389_v21 }
 0x9e9   :  { %v8226_v61 = vpop.eup %8225 }
 0x9ea   :  { %v4699_v23 = vsub.f32 %v11457_v53, %v8226_v61  ;;  %v8228_v36 = vpop.eup %8227 }
 0x9ec   :  { %v4700_v41 = vmul.f32 %v8228_v36, %v4699_v23 }
 0x9ed   :  { %v8230_v8 = vpop.eup %8229 }
 0x9ee   :  { %v4907_v9 = vadd.f32 1.0, %v8230_v8  ;;  %v11782_v25 = vadd.f32 %v8226_v61, %v4700_v41  ;;  %v8232_v18 = vpop.eup %8231 }
 0x9ef   :  { %v4914_v17 = vadd.f32 1.0, %v8232_v18 }
 0x9f0   :  { %8233 = vrcp.f32 %v4907_v9  ;;  %v4708_v5 = vsel %vm4707_vm0, %v11782_v25, 0.0 }
 0x9f1   :  { %5387 = vst [vmem:[%s11844_s10 + $0x30] sm:$0xff] %v4708_v5 }
 0x9fa   :  { %v8234_v53 = vpop.eup %8233 }
 0x9fb   :  { %v4918_v10 = vmul.f32 %v8234_v53, %v4917_v51 }
 0x9fd   :  { %v4919_v55 = vadd.f32 %v4918_v10, %v12156_v14 }
 0x9ff   :  { %8235 = vtanh.f32 %v4919_v55 }
 0xa00   :  { %8237 = vrcp.f32 %v4914_v17 }
 0xa09   :  { %v8236_v39 = vpop.eup %8235 }
 0xa0a   :  { %v4921_v6 = vsub.f32 %v11496_v22, %v8236_v39  ;;  %v8238_v27 = vpop.eup %8237  ;;  %v12158_v22 = vld [vmem:[#allocation21_spill] sm:$0xff] }
 0xa0c   :  { %v4922_v43 = vmul.f32 %v8238_v27, %v4921_v6 }
 0xa0e   :  { %v4923_v38 = vadd.f32 %v8236_v39, %v4922_v43 }
 0xa10   :  { %5037 = vmatmul.mubr.f32.vlgmr.msra.gmra.mrb[30].mxu0 %v4923_v38  ;;  %6630 = vmatmul.mubr.f32.vlgmr.msra.gmra.mrb[52].mxu1 %v4923_v38 }
 0xa11   :  { %7966 = vmatpush1.bf16.msra.mxu0 %v11489_v29  ;;  %7997 = vmatpush3.bf16.msra.mxu1 %v11491_v1  ;;  %v12159_v29 = vld [vmem:[#allocation11_spill] sm:$0xff]  ;;  %v12160_v1 = vld [vmem:[#allocation9_spill] sm:$0xff] }
 0xa12   :  { %7968 = vmatprep.subr.bf16.mxu0 %v11498_v57  ;;  %7998 = vmatprep.subr.bf16.mxu1 %v11974_v59  ;;  %v12161_v57 = vld [vmem:[#allocation22_spill] sm:$0xff] }
 0xa13   :  { %5225 = vmatprep.mubr.f32.mxu0 %v11976_v30  ;;  %6664 = vmatprep.mubr.msk.f32.mxu1 %vm8260_vm1, %v11976_v30  ;;  %v12164_v30 = vld [vmem:[#allocation25_spill] sm:$0xff]  ;;  %vm5328_vm1 = vcmp.eq.s32.totalorder %v5327_v28, 1 }
 0xa15   :  { %7970 = vmatpush1.bf16.msra.mxu0 %v11519_v15  ;;  %8000 = vmatpush3.bf16.msra.mxu1 %v12157_v0  ;;  %v12165_v15 = vld [vmem:[#allocation26_spill] sm:$0xff] }
 0xa16   :  { %7972 = vmatprep.subr.bf16.mxu0 %v12158_v22  ;;  %8001 = vmatprep.subr.bf16.mxu1 %v11974_v59 }
 0xa19   :  { %7974 = vmatpush1.bf16.msra.mxu0 %v12159_v29  ;;  %8003 = vmatpush3.bf16.msra.mxu1 %v12160_v1 }
 0xa1a   :  { %7976 = vmatprep.subr.bf16.mxu0 %v12161_v57  ;;  %8004 = vmatprep.subr.bf16.mxu1 %v11974_v59 }
 0xa1d   :  { %7978 = vmatpush1.bf16.msra.mxu0 %v12162_v20  ;;  %8006 = vmatpush3.bf16.msra.mxu1 %v12163_v50 }
 0xa1e   :  { %7980 = vmatprep.subr.bf16.mxu0 %v12164_v30  ;;  %8007 = vmatprep.subr.bf16.mxu1 %v11974_v59 }
 0xa21   :  { %7982 = vmatpush1.bf16.msra.mxu0 %v12165_v15  ;;  %8009 = vmatpush3.bf16.msra.mxu1 %v12166_v31 }
 0xa22   :  { %7984 = vmatprep.subr.bf16.mxu0 %v12167_v13  ;;  %8010 = vmatprep.subr.bf16.mxu1 %v11974_v59 }
 0xa25   :  { %7986 = vmatpush1.bf16.msra.mxu0 %v12168_v49  ;;  %8012 = vmatpush3.bf16.msra.mxu1 %v11636_v58 }
 0xa26   :  { %7988 = vmatprep.subr.bf16.mxu0 %v11643_v4  ;;  %8013 = vmatprep.subr.bf16.mxu1 %v11974_v59 }
 0xa29   :  { %7990 = vmatpush1.bf16.msra.mxu0 %v11662_v24  ;;  %8015 = vmatpush3.bf16.msra.mxu1 %v11664_v45 }
 0xa2a   :  { %7992 = vmatprep.subr.bf16.mxu0 %v11671_v63  ;;  %8016 = vmatprep.subr.bf16.mxu1 %v11974_v59 }
 0xa2d   :  { %7994 = vmatpush1.bf16.msra.mxu0 %v11684_v60  ;;  %8018 = vmatpush3.bf16.msra.mxu1 %v11686_v16 }
 0xa30   :  { %5226 = vmatmul.mubr.f32.vlgmr.msra.gmra.mrb[30].mxu0 %v11782_v25  ;;  %6665 = vmatmul.mubr.f32.vlgmr.msra.gmra.mrb[54].mxu1 %v11782_v25 }
 0xae3   :  { %v5109_v58 = vpop.f32.mrb[52].mxu1 }
 0xae4   :  { %v6631_v4 = vpop.f32.mrb[53].mxu1  ;;  %v5110_v62 = vadd.f32 %v5109_v58, %v9217_v46 }
 0xb03   :  { %v5227_v11 = vpop.f32.mrb[30].mxu0  ;;  %v5298_v32 = vpop.f32.mrb[54].mxu1 }
 0xb04   :  { %v8049_v24 = vadd.f32 %v5227_v11, %v12154_v56  ;;  %v5229_v26 = vpop.f32.mrb[31].mxu0  ;;  %v6666_v45 = vpop.f32.mrb[55].mxu1  ;;  %v5316_v54 = vadd.f32 %v11775_v35, %v5298_v32 }
 0xb05   :  { %v8050_v59 = vadd.f32 %v5229_v26, %v12155_v44 }
 0xb06   :  { %v5390_v3 = vmul.f32 -1.442695, %v8049_v24 }
 0xb07   :  { %v5391_v63 = vmul.f32 -1.442695, %v8050_v59 }
 0xb08   :  { %8239 = vpow2.f32 %v5390_v3 }
 0xb09   :  { %8241 = vpow2.f32 %v5391_v63 }
 0xb12   :  { %v8240_v60 = vpop.eup %8239 }
 0xb13   :  { %v5306_v7 = vadd.f32 1.0, %v8240_v60  ;;  %v8242_v16 = vpop.eup %8241 }
 0xb14   :  { %v5313_v56 = vadd.f32 1.0, %v8242_v16 }
 0xb15   :  { %8243 = vrcp.f32 %v5306_v7 }
 0xb1f   :  { %v8244_v47 = vpop.eup %8243 }
 0xb20   :  { %v5317_v42 = vmul.f32 %v8244_v47, %v5316_v54 }
 0xb22   :  { %v5318_v12 = vadd.f32 %v5317_v42, %v5110_v62 }
 0xb24   :  { %8245 = vtanh.f32 %v5318_v12 }
 0xb25   :  { %8247 = vrcp.f32 %v5313_v56 }
 0xb2e   :  { %v8246_v2 = vpop.eup %8245 }
 0xb2f   :  { %v5320_v52 = vsub.f32 %v11782_v25, %v8246_v2  ;;  %v8248_v44 = vpop.eup %8247 }
 0xb31   :  { %v5321_v33 = vmul.f32 %v8248_v44, %v5320_v52 }
 0xb33   :  { %v5322_v37 = vadd.f32 %v8246_v2, %v5321_v33 }
 0xb35   :  { %v5329_v19 = vsel %vm5328_vm1, %v5322_v37, 0.0 }
 0xb36   :  { %5392 = vst [vmem:[%s11844_s10 + $0x38] sm:$0xff] %v5329_v19 }

</bundles_post_ra>
